<compile_context>
chip_gen: v5e
topology: v5e:2x2
jax: 0.10.0
libtpu: 0.0.40
codegen_flags: <defaults>
</compile_context>

<pallas_src>
import functools
import math

import jax
import jax.numpy as jnp
from jax.experimental import pallas as pl
from jax.experimental.pallas import tpu as pltpu


def _round_up(x, m):
    return (x + m - 1) // m * m


def _apply_activation(y, activation):
    if activation is None:
        return y
    act = activation.lower()
    if act == "relu":
        return jnp.maximum(y, 0.0)
    if act == "relu6":
        return jnp.clip(y, 0.0, 6.0)
    if act == "tanh":
        return jnp.tanh(y)
    if act == "leakyrelu":
        return jnp.where(y >= 0.0, y, 0.01 * y)
    if act == "silu":
        return y * jax.nn.sigmoid(y)
    if act == "sigmoid":
        return jax.nn.sigmoid(y)
    raise ValueError(f"Unknown activation: {activation}")


def _make_conv_stats_kernel(KH, KW, Ho, Wo, stride):
    """Per-image fused conv (in-kernel im2col, single MXU contraction) + BN statistics.

    Refs:
      x_ref     : (1, Hp, Wp, Cin) bf16  zero-padded NHWC image tile
      w_ref     : (K, Cp)          bf16  weight slab, K = KH*KW*Cin (resident, constant index_map)
      y_ref     : (1, Ho*Wo, Cp)   bf16  conv output (lane-dense, Cp = 128-multiple)
      stats_ref : (1, 2, Cp)       f32   per-image partials: row0 = sum, row1 = sum of squares
    """

    def kernel(x_ref, w_ref, y_ref, stats_ref):
        # --- in-kernel im2col: KH*KW static window reads of the VMEM-resident image ---
        # Taps are upcast to f32 so the concat/reshape relayouts run on the plain 32-bit
        # path; the patch is downcast to bf16 right before the MXU push.
        taps = []
        for kh in range(KH):
            hsl = pl.ds(kh, Ho) if stride == 1 else pl.ds(kh, Ho, stride)
            for kw in range(KW):
                wsl = pl.ds(kw, Wo) if stride == 1 else pl.ds(kw, Wo, stride)
                taps.append(x_ref[0, hsl, wsl, :].astype(jnp.float32))  # (Ho, Wo, Cin)
        patch = jnp.concatenate(taps, axis=-1)            # (Ho, Wo, K)  k = (kh, kw, cin)
        patch = patch.reshape(Ho * Wo, patch.shape[-1])   # (Ho*Wo, K)
        patch = patch.astype(jnp.bfloat16)

        # Single bf16 MXU contraction over the full K axis, f32 accumulation.
        acc = jnp.dot(patch, w_ref[...], preferred_element_type=jnp.float32)  # (Ho*Wo, Cp)

        # bf16 conv slab -> HBM (halves post-conv traffic; stats use the f32 acc).
        y_ref[0] = acc.astype(y_ref.dtype)

        # Per-image partial BN statistics (no resident accumulator, no masking needed:
        # every row of this tile is a real output position of image n).
        psum = jnp.sum(acc, axis=0, keepdims=True)         # (1, Cp)
        psq = jnp.sum(acc * acc, axis=0, keepdims=True)    # (1, Cp)
        stats_ref[0] = jnp.concatenate([psum, psq], axis=0)

    return kernel


def conv_block_forward(x_nchw, weight, gamma, beta, *, stride, padding,
                       activation="relu", eps=1e-5):
    """ConvBlock forward. x_nchw: (N, Cin, H, W), weight: (Cout, Cin, KH, KW)."""
    N, Cin, H, W = x_nchw.shape
    Cout, Cin_w, KH, KW = weight.shape
    assert Cin == Cin_w, "groups=1 only"  # TODO(synk): grouped conv (groups>1) not implemented
    Ho = (H + 2 * padding - KH) // stride + 1
    Wo = (W + 2 * padding - KW) // stride + 1
    Hp, Wp = H + 2 * padding, W + 2 * padding
    rows = N * Ho * Wo

    K = KH * KW * Cin                 # contraction axis; NOT padded in HBM (Mosaic pads MXU-side)
    Cp = _round_up(Cout, 128)         # lane-dense output channels
    # TODO(synk): round Cp toward 256 multiples on v6e/v7x (2x256^2 MXU) once Cout is large.

    # ---- wrapper glue (plain JAX, 1x input size): NHWC relayout + spatial pad + bf16 ----
    # TODO(synk): keep the surrounding model NHWC end-to-end to avoid this transpose.
    x_nhwc = jnp.transpose(x_nchw, (0, 2, 3, 1))
    x_padded = jnp.pad(
        x_nhwc, ((0, 0), (padding, padding), (padding, padding), (0, 0))
    ).astype(jnp.bfloat16)

    # (Cout, Cin, KH, KW) -> (KH*KW*Cin, Cout); pad only Cout to Cp.
    w2d = jnp.transpose(weight, (2, 3, 1, 0)).reshape(K, Cout).astype(jnp.bfloat16)
    w2d = jnp.pad(w2d, ((0, 0), (0, Cp - Cout)))

    # ---- VMEM budget: double-buffered x/y/stats tiles + weight slab + patch scratch ----
    # (Weight slab is tiny here; if K*Cp grows, stage it once / pl.Buffered(1) it.)
    x_tile = Hp * Wp * Cin * 2
    y_tile = Ho * Wo * Cp * 2
    st_tile = 8 * Cp * 4
    w_bytes = K * Cp * 2
    patch_scratch = Ho * Wo * (_round_up(K, 128) * 4 + Cp * 4)
    need = 2 * (x_tile + y_tile + st_tile + w_bytes) + patch_scratch
    vmem_limit = int(min(48 * 2**20, max(need + (8 << 20), 24 << 20)))  # v7x-safe cap

    cost = pl.CostEstimate(
        flops=2 * rows * K * Cp,
        transcendentals=0,
        bytes_accessed=(x_padded.size * 2 + w2d.size * 2
                        + N * Ho * Wo * Cp * 2 + N * 2 * Cp * 4))

    # TODO(synk): for very large Ho*Wo, add an output-row grid axis with a halo'd manual
    # DMA (memory_space=pl.ANY) instead of whole-image tiles.
    conv_out, stats = pl.pallas_call(
        _make_conv_stats_kernel(KH, KW, Ho, Wo, stride),
        out_shape=(jax.ShapeDtypeStruct((N, Ho * Wo, Cp), jnp.bfloat16),
                   jax.ShapeDtypeStruct((N, 2, Cp), jnp.float32)),
        grid_spec=pltpu.PrefetchScalarGridSpec(
            num_scalar_prefetch=0,
            grid=(N,),
            in_specs=[pl.BlockSpec((1, Hp, Wp, Cin), lambda n: (n, 0, 0, 0)),
                      pl.BlockSpec((K, Cp), lambda n: (0, 0))],
            out_specs=[pl.BlockSpec((1, Ho * Wo, Cp), lambda n: (n, 0, 0)),
                       pl.BlockSpec((1, 2, Cp), lambda n: (n, 0, 0))]),
        compiler_params=pltpu.CompilerParams(
            # Per-image stats partials -> no accumulator races, so the whole grid is
            # "parallel" (v7x shards images across its 2 TensorCores).
            dimension_semantics=("parallel",),
            vmem_limit_bytes=vmem_limit),
        cost_estimate=cost,
    )(x_padded, w2d)

    # ---- BN fold (training-mode batch stats, biased var) + activation + layout epilogue.
    # Left in plain JAX so XLA fuses scale/shift/act/crop directly onto the single bf16
    # conv_out read and the NCHW write (the former Pallas pass-2 round trip is gone).
    ssum = jnp.sum(stats[:, 0, :], axis=0)
    ssq = jnp.sum(stats[:, 1, :], axis=0)
    mean = ssum / rows
    # NOTE: single-pass E[x^2]-E[x]^2 in f32; fine at these scales (see review concern).
    var = jnp.maximum(ssq / rows - mean * mean, 0.0)
    inv = jax.lax.rsqrt(var + eps)
    # Keep gamma/beta zero-padded so the padded Cout columns (var==0 -> huge inv) stay 0.
    gamma_p = jnp.pad(gamma.astype(jnp.float32), (0, Cp - Cout))
    beta_p = jnp.pad(beta.astype(jnp.float32), (0, Cp - Cout))
    scale = gamma_p * inv
    shift = beta_p - mean * scale

    y = conv_out.astype(jnp.float32) * scale + shift
    y = _apply_activation(y, activation)
    y = y[:, :, :Cout].reshape(N, Ho, Wo, Cout)
    return jnp.transpose(y, (0, 3, 1, 2))  # back to NCHW


def _reference(x_nchw, weight, gamma, beta, *, stride, padding, eps=1e-5):
    """Pure-JAX reference: conv (no bias) + training-mode BN + ReLU."""
    y = jax.lax.conv_general_dilated(
        x_nchw.astype(jnp.float32), weight.astype(jnp.float32),
        window_strides=(stride, stride),
        padding=[(padding, padding), (padding, padding)],
        dimension_numbers=("NCHW", "OIHW", "NCHW"))
    mean = jnp.mean(y, axis=(0, 2, 3), keepdims=True)
    var = jnp.mean((y - mean) ** 2, axis=(0, 2, 3), keepdims=True)
    y = (y - mean) * jax.lax.rsqrt(var + eps)
    y = y * gamma.reshape(1, -1, 1, 1) + beta.reshape(1, -1, 1, 1)
    return jnp.maximum(y, 0.0)


if __name__ == "__main__":
    # ConvBlock(in_channels=4, out_channels=8, kernel_size=3, stride=1, padding=1,
    #           groups=1, activation='relu', batch_norm=True, drop_out=False)
    N, Cin, H, W = 2, 4, 16, 16
    Cout, Ksz, stride, padding = 8, 3, 1, 1

    key = jax.random.PRNGKey(0)
    kx, kw = jax.random.split(key)
    x = jax.random.normal(kx, (N, Cin, H, W), dtype=jnp.float32)
    # Deterministic synthetic conv weight (no bias since batch_norm=True).
    fan_in = Cin * Ksz * Ksz
    bound = 1.0 / math.sqrt(fan_in)
    weight = jax.random.uniform(kw, (Cout, Cin, Ksz, Ksz), jnp.float32, -bound, bound)
    # BatchNorm2d default init: gamma=1, beta=0.
    gamma = jnp.ones((Cout,), jnp.float32)
    beta = jnp.zeros((Cout,), jnp.float32)

    fwd = jax.jit(functools.partial(conv_block_forward, stride=stride,
                                    padding=padding, activation="relu"))
    out = jax.block_until_ready(fwd(x, weight, gamma, beta))

    ref = _reference(x, weight, gamma, beta, stride=stride, padding=padding)
    assert out.shape == (N, Cout, H, W), out.shape
    # bf16 MXU inputs + bf16 conv_out slab vs f32 reference -> looser tolerance.
    max_err = float(jnp.max(jnp.abs(out - ref)))
    assert jnp.allclose(out, ref, rtol=2e-2, atol=2e-2), max_err

    print("KERNEL_OK")
</pallas_src>

<mosaic_0001>
module attributes {stable_mosaic.version = 11 : i64} {
  func.func @kernel(%arg0: i32, %arg1: memref<1x18x18x4xbf16, #tpu.memory_space<vmem>>, %arg2: memref<36x128xbf16, #tpu.memory_space<vmem>>, %arg3: memref<1x256x128xbf16, #tpu.memory_space<vmem>>, %arg4: memref<1x2x128xf32, #tpu.memory_space<vmem>>) attributes {dimension_semantics = [#tpu.dimension_semantics<parallel>], iteration_bounds = array<i64: 2>, scalar_prefetch = 0 : i64, scratch_operands = 0 : i64, tpu.core_type = #tpu.core_type<tc>, window_params = [{transform_indices = @transform_0, window_bounds = array<i64: 1, 18, 18, 4>}, {pipeline_mode = #tpu.pipeline_mode<synchronous>, transform_indices = @transform_1, window_bounds = array<i64: 36, 128>}, {transform_indices = @transform_2, window_bounds = array<i64: 1, 256, 128>}, {transform_indices = @transform_3, window_bounds = array<i64: 1, 2, 128>}]} {
    %c0 = arith.constant 0 : index
    %c0_0 = arith.constant 0 : index
    %c0_1 = arith.constant 0 : index
    %c0_2 = arith.constant 0 : index
    %0 = vector.load %arg1[%c0, %c0_0, %c0_1, %c0_2] : memref<1x18x18x4xbf16, #tpu.memory_space<vmem>>, vector<1x16x16x4xbf16>
    %1 = vector.shape_cast %0 : vector<1x16x16x4xbf16> to vector<16x16x4xbf16>
    %2 = arith.extf %1 : vector<16x16x4xbf16> to vector<16x16x4xf32>
    %c0_3 = arith.constant 0 : index
    %c0_4 = arith.constant 0 : index
    %c1 = arith.constant 1 : index
    %c0_5 = arith.constant 0 : index
    %3 = vector.load %arg1[%c0_3, %c0_4, %c1, %c0_5] : memref<1x18x18x4xbf16, #tpu.memory_space<vmem>>, vector<1x16x16x4xbf16>
    %4 = vector.shape_cast %3 : vector<1x16x16x4xbf16> to vector<16x16x4xbf16>
    %5 = arith.extf %4 : vector<16x16x4xbf16> to vector<16x16x4xf32>
    %c0_6 = arith.constant 0 : index
    %c0_7 = arith.constant 0 : index
    %c2 = arith.constant 2 : index
    %c0_8 = arith.constant 0 : index
    %6 = vector.load %arg1[%c0_6, %c0_7, %c2, %c0_8] : memref<1x18x18x4xbf16, #tpu.memory_space<vmem>>, vector<1x16x16x4xbf16>
    %7 = vector.shape_cast %6 : vector<1x16x16x4xbf16> to vector<16x16x4xbf16>
    %8 = arith.extf %7 : vector<16x16x4xbf16> to vector<16x16x4xf32>
    %c0_9 = arith.constant 0 : index
    %c1_10 = arith.constant 1 : index
    %c0_11 = arith.constant 0 : index
    %c0_12 = arith.constant 0 : index
    %9 = vector.load %arg1[%c0_9, %c1_10, %c0_11, %c0_12] : memref<1x18x18x4xbf16, #tpu.memory_space<vmem>>, vector<1x16x16x4xbf16>
    %10 = vector.shape_cast %9 : vector<1x16x16x4xbf16> to vector<16x16x4xbf16>
    %11 = arith.extf %10 : vector<16x16x4xbf16> to vector<16x16x4xf32>
    %c0_13 = arith.constant 0 : index
    %c1_14 = arith.constant 1 : index
    %c1_15 = arith.constant 1 : index
    %c0_16 = arith.constant 0 : index
    %12 = vector.load %arg1[%c0_13, %c1_14, %c1_15, %c0_16] : memref<1x18x18x4xbf16, #tpu.memory_space<vmem>>, vector<1x16x16x4xbf16>
    %13 = vector.shape_cast %12 : vector<1x16x16x4xbf16> to vector<16x16x4xbf16>
    %14 = arith.extf %13 : vector<16x16x4xbf16> to vector<16x16x4xf32>
    %c0_17 = arith.constant 0 : index
    %c1_18 = arith.constant 1 : index
    %c2_19 = arith.constant 2 : index
    %c0_20 = arith.constant 0 : index
    %15 = vector.load %arg1[%c0_17, %c1_18, %c2_19, %c0_20] : memref<1x18x18x4xbf16, #tpu.memory_space<vmem>>, vector<1x16x16x4xbf16>
    %16 = vector.shape_cast %15 : vector<1x16x16x4xbf16> to vector<16x16x4xbf16>
    %17 = arith.extf %16 : vector<16x16x4xbf16> to vector<16x16x4xf32>
    %c0_21 = arith.constant 0 : index
    %c2_22 = arith.constant 2 : index
    %c0_23 = arith.constant 0 : index
    %c0_24 = arith.constant 0 : index
    %18 = vector.load %arg1[%c0_21, %c2_22, %c0_23, %c0_24] : memref<1x18x18x4xbf16, #tpu.memory_space<vmem>>, vector<1x16x16x4xbf16>
    %19 = vector.shape_cast %18 : vector<1x16x16x4xbf16> to vector<16x16x4xbf16>
    %20 = arith.extf %19 : vector<16x16x4xbf16> to vector<16x16x4xf32>
    %c0_25 = arith.constant 0 : index
    %c2_26 = arith.constant 2 : index
    %c1_27 = arith.constant 1 : index
    %c0_28 = arith.constant 0 : index
    %21 = vector.load %arg1[%c0_25, %c2_26, %c1_27, %c0_28] : memref<1x18x18x4xbf16, #tpu.memory_space<vmem>>, vector<1x16x16x4xbf16>
    %22 = vector.shape_cast %21 : vector<1x16x16x4xbf16> to vector<16x16x4xbf16>
    %23 = arith.extf %22 : vector<16x16x4xbf16> to vector<16x16x4xf32>
    %c0_29 = arith.constant 0 : index
    %c2_30 = arith.constant 2 : index
    %c2_31 = arith.constant 2 : index
    %c0_32 = arith.constant 0 : index
    %24 = vector.load %arg1[%c0_29, %c2_30, %c2_31, %c0_32] : memref<1x18x18x4xbf16, #tpu.memory_space<vmem>>, vector<1x16x16x4xbf16>
    %25 = vector.shape_cast %24 : vector<1x16x16x4xbf16> to vector<16x16x4xbf16>
    %26 = arith.extf %25 : vector<16x16x4xbf16> to vector<16x16x4xf32>
    %27 = tpu.concatenate %2, %5, %8, %11, %14, %17, %20, %23, %26 in 2 : vector<16x16x4xf32>, vector<16x16x4xf32>, vector<16x16x4xf32>, vector<16x16x4xf32>, vector<16x16x4xf32>, vector<16x16x4xf32>, vector<16x16x4xf32>, vector<16x16x4xf32>, vector<16x16x4xf32> -> vector<16x16x36xf32>
    %28 = vector.shape_cast %27 : vector<16x16x36xf32> to vector<256x36xf32>
    %29 = arith.truncf %28 : vector<256x36xf32> to vector<256x36xbf16>
    %c0_33 = arith.constant 0 : index
    %c0_34 = arith.constant 0 : index
    %30 = vector.load %arg2[%c0_33, %c0_34] : memref<36x128xbf16, #tpu.memory_space<vmem>>, vector<36x128xbf16>
    %cst = arith.constant dense<0.000000e+00> : vector<256x128xf32>
    %31 = tpu.matmul %29, %30, %cst {dimension_numbers = #tpu.dot_dimension_numbers<[1], [0], [0], [1], [0, 0, 1, 1], [], []>} : vector<256x36xbf16>, vector<36x128xbf16>, vector<256x128xf32> -> vector<256x128xf32>
    %32 = arith.truncf %31 : vector<256x128xf32> to vector<256x128xbf16>
    %c0_35 = arith.constant 0 : index
    %c0_36 = arith.constant 0 : index
    %c0_37 = arith.constant 0 : index
    %33 = vector.load %arg3[%c0_35, %c0_36, %c0_37] : memref<1x256x128xbf16, #tpu.memory_space<vmem>>, vector<1x256x128xbf16>
    %34 = vector.shape_cast %33 : vector<1x256x128xbf16> to vector<256x128xbf16>
    %35 = vector.shape_cast %32 : vector<256x128xbf16> to vector<1x256x128xbf16>
    tpu.vector_store %arg3[%c0_35, %c0_36, %c0_37], %35 {strides = array<i32>} : memref<1x256x128xbf16, #tpu.memory_space<vmem>>, vector<1x256x128xbf16>,
    %cst_38 = arith.constant dense<0.000000e+00> : vector<128xf32>
    %36 = vector.multi_reduction <add>, %31, %cst_38 [0] : vector<256x128xf32> to vector<128xf32>
    %37 = vector.shape_cast %36 : vector<128xf32> to vector<1x128xf32>
    %38 = arith.mulf %31, %31 : vector<256x128xf32>
    %cst_39 = arith.constant dense<0.000000e+00> : vector<128xf32>
    %39 = vector.multi_reduction <add>, %38, %cst_39 [0] : vector<256x128xf32> to vector<128xf32>
    %40 = vector.shape_cast %39 : vector<128xf32> to vector<1x128xf32>
    %41 = tpu.concatenate %37, %40 in 0 : vector<1x128xf32>, vector<1x128xf32> -> vector<2x128xf32>
    %c0_40 = arith.constant 0 : index
    %c0_41 = arith.constant 0 : index
    %c0_42 = arith.constant 0 : index
    %42 = vector.load %arg4[%c0_40, %c0_41, %c0_42] : memref<1x2x128xf32, #tpu.memory_space<vmem>>, vector<1x2x128xf32>
    %43 = vector.shape_cast %42 : vector<1x2x128xf32> to vector<2x128xf32>
    %44 = vector.shape_cast %41 : vector<2x128xf32> to vector<1x2x128xf32>
    tpu.vector_store %arg4[%c0_40, %c0_41, %c0_42], %44 {strides = array<i32>} : memref<1x2x128xf32, #tpu.memory_space<vmem>>, vector<1x2x128xf32>,
    return
  }
  func.func @transform_0(%arg0: i32) -> (i32, i32, i32, i32) {
    %c0_i32 = arith.constant 0 : i32
    %c0_i32_0 = arith.constant 0 : i32
    %c0_i32_1 = arith.constant 0 : i32
    %c0_i32_2 = arith.constant 0 : i32
    return %arg0, %c0_i32, %c0_i32_0, %c0_i32_1 : i32, i32, i32, i32
  }
  func.func @transform_1(%arg0: i32) -> (i32, i32) {
    %c0_i32 = arith.constant 0 : i32
    %c0_i32_0 = arith.constant 0 : i32
    %c0_i32_1 = arith.constant 0 : i32
    return %c0_i32, %c0_i32_0 : i32, i32
  }
  func.func @transform_2(%arg0: i32) -> (i32, i32, i32) {
    %c0_i32 = arith.constant 0 : i32
    %c0_i32_0 = arith.constant 0 : i32
    %c0_i32_1 = arith.constant 0 : i32
    return %arg0, %c0_i32, %c0_i32_0 : i32, i32, i32
  }
  func.func @transform_3(%arg0: i32) -> (i32, i32, i32) {
    %c0_i32 = arith.constant 0 : i32
    %c0_i32_0 = arith.constant 0 : i32
    %c0_i32_1 = arith.constant 0 : i32
    return %arg0, %c0_i32, %c0_i32_0 : i32, i32, i32
  }
}

</mosaic_0001>

<bundles_post_ra>
// kernel: conv_block_forward.1
= control target key start
LH: loop header
LB: loop body
LE: loop exit
PB: predicated region body
PF: predicated region fallthrough
CT: control target
= control target key end

     0   :  { %s3794_s12 = smov 0   ;;  %s6014_s0 = inlined_call_operand.vmem [shape: bf16[2,18,18,4], index: 0, kind: input, shape index: {}]   ;;  %s6015_s1 = inlined_call_operand.vmem [shape: bf16[36,128], index: 1, kind: input, shape index: {}]   ;;  %s6016_s2 = inlined_call_operand.vmem [shape: bf16[2,256,128], index: 2, kind: output, shape index: {0}]   ;;  %s6017_s3 = inlined_call_operand.vmem [shape: f32[2,2,128], index: 3, kind: output, shape index: {1}]  }
   0x1 LB: > { %s2712_s13 = sadd.s32 4294967295, %s3764_s12   ;;  %p2716_p0 = scmp.ge.s32.totalorder %s3764_s12, 1  ;;  %s3764_s12 = sphi %s3794_s12, %s14_s12  }
   0x2   : > { %p140_p1 = scmp.lt.s32.totalorder %s3764_s12, 3 }
   0x4   : > { %p141_p2 = pnand %p2716_p0, %p140_p1 }
   0x6   : > { %144 = sbr.rel (%p141_p2) target bundleno = 651 (0x28b), region = 28 }
   0xb   : > { %p168_p3 = scmp.lt.s32.totalorder %s2712_s13, 1  ;;  %vm617_vm0 = vcmask 1046528   ;;  %s3766_s18 = smov 4   ;;  %vm810_vm1 = vcmask 1045504   ;;  %vm2011_vm2 = vcmask 31744   ;;  %vm2044_vm3 = vcmask 64512  }
   0xc   : > { %s3767_s19 = smov 8   ;;  %s3768_s20 = smov 12   ;;  %vm2077_vm4 = vcmask 97280   ;;  %vm2110_vm5 = vcmask 130048   ;;  %vm2143_vm6 = vcmask 162816   ;;  %vm2360_vm7 = vcmask 1041408  }
   0xd   : > { %s6259_s13 = smov (!%p168_p3, %s2712_s13), 1  ;;  %s3769_s21 = smov 16   ;;  %vm2176_vm8 = vcmask 195584   ;;  %vm2209_vm9 = vcmask 228352   ;;  %vm2242_vm10 = vcmask 261120   ;;  %vm2311_vm11 = vcmask 293888  }
   0xe   : > { %s3101_s14 = smul.u32 216, %s6259_s13  ;;  %s3770_s22 = smov 20   ;;  %vm2623_vm12 = vcmask 1040384  }
   0xf   : > { %s3771_s23 = smov 24   ;;  %s3772_s24 = smov 32  }
  0x10   : > { %s3808_s17 = scalar_lea.vmem %s6014_s0, %s3101_s14  ;;  %s3773_s25 = smov 28  }
  0x11   : > { %v3055_v0 = vld [vmem:[%s3808_s17 + $0x30] sm:$0xff]   ;;  %v3812_v1 = vld [vmem:[%s3808_s17 + $0x38] sm:$0x1]  ;;  %v3823_v7 = vld [vmem:[%s3808_s17 + $0x20] sm:$0x1]  ;;  %s2875_s5 = sshll.u32 %s6259_s13, 7 }
  0x12   : > { %v3054_v2 = vld [vmem:[%s3808_s17 + $0x18] sm:$0xff]   ;;  %v3815_v3 = vunpack.c.l.bf16 %v3055_v0  ;;  %v3817_v4 = vunpack.c.h.bf16 %v3055_v0  ;;  %v6031_v5 = vunpack.c.l.bf16 %v3812_v1  ;;  %v3826_v8 = vld [vmem:[%s3808_s17] sm:$0xff]   ;;  %v3829_v9 = vld [vmem:[%s3808_s17 + $0x8] sm:$0x1]  ;;  %v6029_v11 = vunpack.c.l.bf16 %v3823_v7  ;;  %s5947_s8 = scalar_lea.vmem %s6016_s2, %s2875_s5  ;;  %s2720_s9 = sshll.u32 %s6259_s13, 1 }
  0x13   : > { %v3820_v6 = vunpack.c.l.bf16 %v3054_v2  ;;  %6097 = vst [vmem:[#allocation2_spill] sm:$0xff] %v3826_v8  ;;  %v3831_v10 = vunpack.c.h.bf16 %v3054_v2  ;;  %v6020_v12 = vunpack.c.l.bf16 %v3826_v8  ;;  %v3836_v13 = vunpack.c.h.bf16 %v3826_v8  ;;  %v3839_v14 = vld [vmem:[%s3808_s17 + $0x3c] sm:$0xff]   ;;  %v3857_v23 = vld [vmem:[%s3808_s17 + $0x44] sm:$0x1]  ;;  %v3880_v33 = vld [vmem:[%s3808_s17 + $0x2c] sm:$0x1]  ;;  %s181_s14 = scalar_lea.vmem %s6017_s3, %s2720_s9 }
  0x14   : > { %v638_v15 = vrot.slane %v3815_v3, 1  ;;  %v3843_v16 = vrot.slane %v3817_v4, 1  ;;  %v641_v17 = vrot.slane %v6031_v5, 1  ;;  %v631_v20 = vrot.slane %v6029_v11, 1  ;;  %v3868_v28 = vld [vmem:[%s3808_s17 + $0x24] sm:$0xff]   ;;  %v3889_v38 = vld [vmem:[%s3808_s17 + $0xc] sm:$0xff]  }
  0x15   : > { %6098 = vst [vmem:[#allocation3_spill] sm:$0xff] %v3836_v13  ;;  %v628_v18 = vrot.slane %v3820_v6, 1  ;;  %v3849_v19 = vrot.slane %v3831_v10, 1  ;;  %v6032_v21 = vunpack.c.l.bf16 %v3829_v9  ;;  %v618_v22 = vrot.slane %v6020_v12, 1  ;;  %v3900_v43 = vld [vmem:[%s3808_s17 + $0x14] sm:$0x1] }
  0x16   : > { %v3861_v24 = vsel %vm617_vm0, %v638_v15, %v3843_v16  ;;  %v642_v25 = vsel %vm617_vm0, %v3843_v16, %v641_v17  ;;  %v619_v26 = vrot.slane %v3836_v13, 1  ;;  %v6023_v27 = vunpack.c.l.bf16 %v3839_v14  ;;  %6100 = vst [vmem:[#allocation5_spill] sm:$0xff] %v3868_v28  ;;  %v3057_v52 = vld [vmem:[%s3808_s17 + $0x60] sm:$0xff]   ;;  %v3922_v57 = vld [vmem:[%s3808_s17 + $0x68] sm:$0x1]  ;;  %v3925_v58 = vld [vmem:[%s3808_s17 + $0x54] sm:$0xff]  }
  0x17   : > { %6099 = vst [vmem:[#allocation4_spill] sm:$0xff] %v3861_v24  ;;  %v3138_v29 = vpack.i.bf16 %v642_v25, %v3861_v24  ;;  %v3873_v30 = vsel %vm617_vm0, %v628_v18, %v3849_v19  ;;  %v632_v31 = vsel %vm617_vm0, %v3849_v19, %v631_v20  ;;  %v621_v32 = vrot.slane %v6032_v21, 1  ;;  %v3939_v17 = vld [vmem:[%s3808_s17 + $0x5c] sm:$0x1]  ;;  %v281_v24 = vld [vmem:[%s3808_s17 + $0x18] sm:$0xe] }
  0x18   : > { %v3128_v34 = vpack.i.bf16 %v632_v31, %v3873_v30  ;;  %v620_v35 = vsel %vm617_vm0, %v618_v22, %v619_v26  ;;  %v3885_v36 = vunpack.c.h.bf16 %v3839_v14  ;;  %v6025_v37 = vunpack.c.l.bf16 %v3857_v23  ;;  %6101 = vst [vmem:[#allocation6_spill] sm:$0xff] %v3889_v38 }
  0x19   : > { %3139 = vrot.lane.b32.xlu2 %v3138_v29, %s3766_s18  ;;  %v622_v39 = vsel %vm617_vm0, %v619_v26, %v621_v32  ;;  %v643_v40 = vrot.slane %v6023_v27, 1  ;;  %v6018_v41 = vunpack.c.l.bf16 %v3868_v28  ;;  %v3897_v42 = vunpack.c.h.bf16 %v3868_v28  ;;  %6103 = vst [vmem:[#allocation8_spill] sm:$0xff] %v3925_v58  ;;  %v3056_v26 = vld [vmem:[%s3808_s17 + $0x48] sm:$0xff]  }
  0x1a   : > { %3129 = vrot.lane.b32.xlu1 %v3128_v34, %s3766_s18  ;;  %v3118_v44 = vpack.i.bf16 %v622_v39, %v620_v35  ;;  %v644_v45 = vrot.slane %v3885_v36, 1  ;;  %v646_v46 = vrot.slane %v6025_v37, 1  ;;  %v6030_v47 = vunpack.c.l.bf16 %v3880_v33  ;;  %v3954_v35 = vld [vmem:[%s3808_s17 + $0x50] sm:$0x1]  ;;  %v3957_v39 = vld [vmem:[%s3808_s17 + $0x84] sm:$0xff]  }
  0x1b   : > { %v633_v48 = vrot.slane %v6018_v41, 1  ;;  %v634_v49 = vrot.slane %v3897_v42, 1  ;;  %v6021_v50 = vunpack.c.l.bf16 %v3889_v38  ;;  %v3912_v51 = vunpack.c.h.bf16 %v3889_v38  ;;  %6105 = vst [vmem:[#allocation10_spill] sm:$0xff] %v3957_v39  ;;  %v3060_v37 = vld [vmem:[%s3808_s17 + $0xa8] sm:$0xff]  }
  0x1c   : > { %3119 = vrot.lane.b32.xlu0 %v3118_v44, %s3766_s18  ;;  %v645_v53 = vsel %vm617_vm0, %v643_v40, %v644_v45  ;;  %v647_v54 = vsel %vm617_vm0, %v644_v45, %v646_v46  ;;  %v636_v55 = vrot.slane %v6030_v47, 1  ;;  %v6035_v56 = vunpack.c.l.bf16 %v3900_v43 }
  0x1d   : > { %6102 = vst [vmem:[#allocation7_spill] sm:$0xff] %v3912_v51  ;;  %v3143_v59 = vpack.i.bf16 %v647_v54, %v645_v53  ;;  %v635_v60 = vsel %vm617_vm0, %v633_v48, %v634_v49  ;;  %v623_v61 = vrot.slane %v6021_v50, 1  ;;  %v624_v62 = vrot.slane %v3912_v51, 1  ;;  %v3976_v54 = vld [vmem:[%s3808_s17 + $0x8c] sm:$0x1] }
  0x1e   : > { %v637_v63 = vsel %vm617_vm0, %v634_v49, %v636_v55  ;;  %v626_v0 = vrot.slane %v6035_v56, 1  ;;  %v3934_v2 = vunpack.c.l.bf16 %v3057_v52  ;;  %v3936_v15 = vunpack.c.h.bf16 %v3057_v52 }
  0x1f   : > { %v3133_v18 = vpack.i.bf16 %v637_v63, %v635_v60  ;;  %v625_v20 = vsel %vm617_vm0, %v623_v61, %v624_v62  ;;  %v6024_v22 = vunpack.c.l.bf16 %v3922_v57  ;;  %v6019_v25 = vunpack.c.l.bf16 %v3925_v58 }
  0x20   : > { %v627_v29 = vsel %vm617_vm0, %v624_v62, %v626_v0  ;;  %v658_v31 = vrot.slane %v3934_v2, 1  ;;  %v3948_v32 = vrot.slane %v3936_v15, 1  ;;  %v3951_v34 = vunpack.c.h.bf16 %v3925_v58  ;;  %v3058_v62 = vld [vmem:[%s3808_s17 + $0x78] sm:$0xff]  }
  0x21   : > { %3144 = vrot.lane.b32.xlu2 %v3143_v59, %s3766_s18  ;;  %v3123_v40 = vpack.i.bf16 %v627_v29, %v625_v20  ;;  %v661_v44 = vrot.slane %v6024_v22, 1  ;;  %v6028_v45 = vunpack.c.l.bf16 %v3939_v17  ;;  %v653_v46 = vrot.slane %v6019_v25, 1  ;;  %v4083_v58 = vld [vmem:[%s3808_s17 + $0x98] sm:$0x1] }
  0x22   : > { %6104 = vst [vmem:[#allocation9_spill] sm:$0xff] %v3948_v32  ;;  %3134 = vrot.lane.b32.xlu1 %v3133_v18, %s3766_s18  ;;  %v3968_v48 = vsel %vm617_vm0, %v658_v31, %v3948_v32  ;;  %v654_v49 = vrot.slane %v3951_v34, 1  ;;  %v3971_v52 = vunpack.c.l.bf16 %v3056_v26  ;;  %v3973_v53 = vunpack.c.h.bf16 %v3056_v26 }
  0x23   : > { %6106 = vst [vmem:[#allocation11_spill] sm:$0xff] %v3968_v48  ;;  %v662_v55 = vsel %vm617_vm0, %v3948_v32, %v661_v44  ;;  %v656_v59 = vrot.slane %v6028_v45, 1  ;;  %v6027_v60 = vunpack.c.l.bf16 %v3954_v35  ;;  %v6022_v61 = vunpack.c.l.bf16 %v3957_v39  ;;  %v4000_v44 = vld [vmem:[%s3808_s17 + $0x80] sm:$0x1] }
  0x24   : > { %6107 = vst [vmem:[#allocation12_spill] sm:$0xff] %v3971_v52  ;;  %3124 = vrot.lane.b32.xlu0 %v3123_v40, %s3766_s18  ;;  %v3158_v63 = vpack.i.bf16 %v662_v55, %v3968_v48  ;;  %v655_v0 = vsel %vm617_vm0, %v653_v46, %v654_v49  ;;  %v648_v18 = vrot.slane %v3971_v52, 1  ;;  %v3990_v20 = vrot.slane %v3973_v53, 1  ;;  %v4003_v46 = vld [vmem:[%s3808_s17 + $0x6c] sm:$0xff]   ;;  %v4041_v45 = vld [vmem:[%s3808_s17 + $0x9c] sm:$0xff]   ;;  %v4112_v48 = vld [vmem:[%s3808_s17 + $0xb4] sm:$0xff]  }
  0x25   : > { %v657_v26 = vsel %vm617_vm0, %v654_v49, %v656_v59  ;;  %v651_v29 = vrot.slane %v6027_v60, 1  ;;  %v3996_v31 = vunpack.c.h.bf16 %v3957_v39  ;;  %v6026_v40 = vunpack.c.l.bf16 %v3976_v54  ;;  %6108 = vst [vmem:[#allocation13_spill] sm:$0xff] %v4003_v46 }
  0x26   : > { %v3153_v55 = vpack.i.bf16 %v657_v26, %v655_v0  ;;  %v4007_v41 = vsel %vm617_vm0, %v648_v18, %v3990_v20  ;;  %v673_v49 = vrot.slane %v6022_v61, 1  ;;  %v4011_v59 = vunpack.c.l.bf16 %v3058_v62  ;;  %v4021_v26 = vld [vmem:[%s3808_s17 + $0x74] sm:$0x1]  ;;  %6114 = vst [vmem:[#allocation19_spill] sm:$0xff] %v4041_v45 }
  0x27   : > { %6109 = vst [vmem:[#allocation14_spill] sm:$0xff] %v4007_v41  ;;  %v652_v25 = vsel %vm617_vm0, %v3990_v20, %v651_v29  ;;  %v674_v12 = vrot.slane %v3996_v31, 1  ;;  %v676_v50 = vrot.slane %v6026_v40, 1  ;;  %v4018_v0 = vunpack.c.h.bf16 %v3058_v62 }
  0x28   : > { %6110 = vst [vmem:[#allocation15_spill] sm:$0xff] %v4011_v59  ;;  %v3148_v18 = vpack.i.bf16 %v652_v25, %v4007_v41  ;;  %v6034_v61 = vunpack.c.l.bf16 %v4000_v44  ;;  %v668_v27 = vrot.slane %v4011_v59, 1  ;;  %v6033_v22 = vunpack.c.l.bf16 %v4003_v46  ;;  %v4038_v25 = vld [vmem:[%s3808_s17 + $0xb0] sm:$0x1] }
  0x29   : > { %6111 = vst [vmem:[#allocation16_spill] sm:$0xff] %v4018_v0  ;;  %3159 = vrot.lane.b32.xlu2 %v3158_v63, %s3766_s18  ;;  %v675_v29 = vsel %vm617_vm0, %v673_v49, %v674_v12  ;;  %v677_v40 = vsel %vm617_vm0, %v674_v12, %v676_v50  ;;  %v4032_v62 = vrot.slane %v4018_v0, 1  ;;  %v4035_v60 = vunpack.c.h.bf16 %v4003_v46 }
  0x2a   : > { %3154 = vrot.lane.b32.xlu1 %v3153_v55, %s3766_s18  ;;  %v3173_v11 = vpack.i.bf16 %v677_v40, %v675_v29  ;;  %v671_v63 = vrot.slane %v6034_v61, 1  ;;  %v6038_v49 = vunpack.c.l.bf16 %v4021_v26  ;;  %v663_v12 = vrot.slane %v6033_v22, 1  ;;  %v4059_v40 = vld [vmem:[%s3808_s17 + $0xa4] sm:$0x1]  ;;  %v3059_v61 = vld [vmem:[%s3808_s17 + $0x90] sm:$0xff]   ;;  %6125 = vst [vmem:[#allocation29_spill] sm:$0xff] %v4112_v48 }
  0x2b   : > { %6112 = vst [vmem:[#allocation17_spill] sm:$0xff] %v4032_v62  ;;  %v4051_v50 = vsel %vm617_vm0, %v668_v27, %v4032_v62  ;;  %v664_v47 = vrot.slane %v4035_v60, 1  ;;  %v4054_v5 = vunpack.c.l.bf16 %v3060_v37  ;;  %v4056_v21 = vunpack.c.h.bf16 %v3060_v37 }
  0x2c   : > { %6113 = vst [vmem:[#allocation18_spill] sm:$0xff] %v4035_v60  ;;  %3149 = vrot.lane.b32.xlu0 %v3148_v18, %s3766_s18  ;;  %v672_v55 = vsel %vm617_vm0, %v4032_v62, %v671_v63  ;;  %v666_v29 = vrot.slane %v6038_v49, 1  ;;  %v6043_v27 = vunpack.c.l.bf16 %v4038_v25  ;;  %v4079_v49 = vunpack.c.h.bf16 %v4041_v45  ;;  %v280_v62 = vld [vmem:[%s3808_s17 + $0xc] sm:$0xe] }
  0x2d   : > { %6115 = vst [vmem:[#allocation20_spill] sm:$0xff] %v4051_v50  ;;  %v3168_v37 = vpack.i.bf16 %v672_v55, %v4051_v50  ;;  %v665_v56 = vsel %vm617_vm0, %v663_v12, %v664_v47  ;;  %v688_v46 = vrot.slane %v4054_v5, 1  ;;  %v4073_v18 = vrot.slane %v4056_v21, 1 }
  0x2e   : > { %6116 = vst [vmem:[#allocation21_spill] sm:$0xff] %v4054_v5  ;;  %v667_v63 = vsel %vm617_vm0, %v664_v47, %v666_v29  ;;  %v691_v28 = vrot.slane %v6043_v27, 1  ;;  %v6046_v22 = vunpack.c.l.bf16 %v4059_v40  ;;  %v6120_v12 = vunpack.c.l.bf16 %v4041_v45 }
  0x2f   : > { %6117 = vst [vmem:[#allocation22_spill] sm:$0xff] %v4056_v21  ;;  %v4087_v50 = vunpack.c.l.bf16 %v3059_v61  ;;  %v3163_v8 = vpack.i.bf16 %v667_v63, %v665_v56  ;;  %v684_v47 = vrot.slane %v4079_v49, 1  ;;  %v4093_v27 = vunpack.c.h.bf16 %v3059_v61  ;;  %v279_v63 = vld [vmem:[%s3808_s17] sm:$0xe] }
  0x30   : > { %6118 = vst [vmem:[#allocation23_spill] sm:$0xff] %v4073_v18  ;;  %v683_v55 = vrot.slane %v6120_v12, 1  ;;  %v686_v29 = vrot.slane %v6046_v22, 1  ;;  %v4098_v39 = vsel %vm617_vm0, %v688_v46, %v4073_v18  ;;  %v692_v12 = vsel %vm617_vm0, %v4073_v18, %v691_v28 }
  0x31   : > { %6119 = vst [vmem:[#allocation24_spill] sm:$0xff] %v4079_v49  ;;  %3174 = vrot.lane.b32.xlu2 %v3173_v11, %s3766_s18  ;;  %v6049_v45 = vunpack.c.l.bf16 %v4083_v58  ;;  %v678_v56 = vrot.slane %v4087_v50, 1  ;;  %v4109_v11 = vrot.slane %v4093_v27, 1  ;;  %v296_v46 = vunpack.c.l.bf16 %v280_v62 }
  0x32   : > { %6121 = vst [vmem:[#allocation25_spill] sm:$0xff] %v4087_v50  ;;  %3169 = vrot.lane.b32.xlu1 %v3168_v37, %s3766_s18  ;;  %v685_v61 = vsel %vm617_vm0, %v683_v55, %v684_v47  ;;  %v687_v22 = vsel %vm617_vm0, %v684_v47, %v686_v29  ;;  %v3188_v18 = vpack.i.bf16 %v692_v12, %v4098_v39  ;;  %v295_v37 = vunpack.c.l.bf16 %v279_v63  ;;  %v4119_v55 = vld [vmem:[%s3808_s17 + $0xbc] sm:$0x1] }
  0x33   : > { %6122 = vst [vmem:[#allocation26_spill] sm:$0xff] %v4093_v27  ;;  %v681_v28 = vrot.slane %v6049_v45, 1  ;;  %v3183_v47 = vpack.i.bf16 %v687_v22, %v685_v61  ;;  %v4123_v29 = vsel %vm617_vm0, %v678_v56, %v4109_v11  ;;  %v816_v38 = vrot.slane %v296_v46, 2  ;;  %v282_v45 = vld [vmem:[%s3808_s17 + $0x24] sm:$0xe] }
  0x34   : > { %6123 = vst [vmem:[#allocation27_spill] sm:$0xff] %v4098_v39  ;;  %3164 = vrot.lane.b32.xlu0 %v3163_v8, %s3766_s18  ;;  %v817_v8 = vrot.slane %v3912_v51, 2  ;;  %v6127_v12 = vunpack.c.l.bf16 %v3900_v43  ;;  %v4132_v63 = vunpack.c.h.bf16 %v4112_v48  ;;  %v811_v22 = vrot.slane %v295_v37, 2 }
  0x35   : > { %6124 = vst [vmem:[#allocation28_spill] sm:$0xff] %v4109_v11  ;;  %v682_v62 = vsel %vm617_vm0, %v4109_v11, %v681_v28  ;;  %v812_v61 = vrot.slane %v3836_v13, 2  ;;  %v6129_v56 = vunpack.c.l.bf16 %v3829_v9  ;;  %v6058_v28 = vunpack.c.l.bf16 %v4119_v55  ;;  %v283_v11 = vld [vmem:[%s3808_s17 + $0x30] sm:$0xe] }
  0x36   : > { %6126 = vst [vmem:[#allocation30_spill] sm:$0xff] %v4123_v29  ;;  %v819_v39 = vrot.slane %v6127_v12, 2  ;;  %v3178_v46 = vpack.i.bf16 %v682_v62, %v4123_v29  ;;  %v6130_v43 = vunpack.c.l.bf16 %v4112_v48  ;;  %v694_v51 = vrot.slane %v4132_v63, 1 }
  0x37   : > { %6128 = vst [vmem:[#allocation31_spill] sm:$0xff] %v4132_v63  ;;  %v814_v32 = vrot.slane %v6129_v56, 2  ;;  %v696_v37 = vrot.slane %v6058_v28, 1  ;;  %v818_v9 = vsel %vm810_vm1, %v816_v38, %v817_v8  ;;  %v299_v13 = vunpack.c.l.bf16 %v283_v11 }
  0x38   : > { %v693_v12 = vrot.slane %v6130_v43, 1  ;;  %v820_v56 = vsel %vm810_vm1, %v817_v8, %v819_v39  ;;  %v813_v62 = vsel %vm810_vm1, %v811_v22, %v812_v61  ;;  %v298_v43 = vunpack.c.l.bf16 %v282_v45 }
  0x39   : > { %3189 = vrot.lane.b32.xlu2 %v3188_v18, %s3766_s18  ;;  %v815_v18 = vsel %vm810_vm1, %v812_v61, %v814_v32  ;;  %v3203_v48 = vpack.i.bf16 %v820_v56, %v818_v9  ;;  %v297_v29 = vunpack.c.l.bf16 %v281_v24  ;;  %v831_v41 = vrot.slane %v299_v13, 2  ;;  %v285_v9 = vld [vmem:[%s3808_s17 + $0x48] sm:$0xe]  ;;  %v284_v56 = vld [vmem:[%s3808_s17 + $0x3c] sm:$0xe] }
  0x3a   : > { %3184 = vrot.lane.b32.xlu1 %v3183_v47, %s3766_s18  ;;  %v695_v28 = vsel %vm617_vm0, %v693_v12, %v694_v51  ;;  %v697_v47 = vsel %vm617_vm0, %v694_v51, %v696_v37  ;;  %v3198_v38 = vpack.i.bf16 %v815_v18, %v813_v62  ;;  %v4157_v39 = vrot.slane %v3817_v4, 2 }
  0x3b   : > { %v6132_v11 = vunpack.c.l.bf16 %v3812_v1  ;;  %v826_v32 = vrot.slane %v298_v43, 2  ;;  %v827_v45 = vrot.slane %v3897_v42, 2  ;;  %v6133_v22 = vunpack.c.l.bf16 %v3880_v33 }
  0x3c   : > { %3179 = vrot.lane.b32.xlu0 %v3178_v46, %s3766_s18  ;;  %6131 = vst [vmem:[#allocation32_spill] sm:$0xff] %v4157_v39  ;;  %v286_v46 = vld [vmem:[%s3808_s17 + $0x54] sm:$0xe]  ;;  %v3193_v12 = vpack.i.bf16 %v697_v47, %v695_v28  ;;  %v821_v13 = vrot.slane %v297_v29, 2  ;;  %v4168_v24 = vrot.slane %v3831_v10, 2  ;;  %v6135_v1 = vunpack.c.l.bf16 %v3823_v7 }
  0x3d   : > { %v834_v8 = vrot.slane %v6132_v11, 2  ;;  %v829_v61 = vrot.slane %v6133_v22, 2  ;;  %v833_v37 = vsel %vm810_vm1, %v831_v41, %v4157_v39  ;;  %v302_v28 = vunpack.c.l.bf16 %v286_v46 }
  0x3e   : > { %6134 = vst [vmem:[#allocation33_spill] sm:$0xff] %v4168_v24  ;;  %v824_v51 = vrot.slane %v6135_v1, 2  ;;  %v301_v62 = vunpack.c.l.bf16 %v285_v9  ;;  %v823_v18 = vsel %vm810_vm1, %v821_v13, %v4168_v24  ;;  %v300_v43 = vunpack.c.l.bf16 %v284_v56  ;;  %v288_v13 = vld [vmem:[%s3808_s17 + $0x6c] sm:$0xe] }
  0x3f   : > { %v835_v33 = vsel %vm810_vm1, %v4157_v39, %v834_v8  ;;  %v830_v29 = vsel %vm810_vm1, %v827_v45, %v829_v61  ;;  %v847_v11 = vrot.slane %v3951_v34, 2  ;;  %v6136_v8 = vunpack.c.l.bf16 %v3939_v17 }
  0x40   : > { %v3218_v7 = vpack.i.bf16 %v835_v33, %v833_v37  ;;  %v825_v41 = vsel %vm810_vm1, %v4168_v24, %v824_v51  ;;  %v4189_v22 = vrot.slane %v3973_v53, 2  ;;  %v6138_v61 = vunpack.c.l.bf16 %v3954_v35  ;;  %v287_v35 = vld [vmem:[%s3808_s17 + $0x60] sm:$0xe] }
  0x41   : > { %3204 = vrot.lane.b32.xlu2 %v3203_v48, %s3767_s19  ;;  %v828_v48 = vsel %vm810_vm1, %v826_v32, %v827_v45  ;;  %v849_v32 = vrot.slane %v6136_v8, 2  ;;  %v841_v45 = vrot.slane %v301_v62, 2  ;;  %v3208_v9 = vpack.i.bf16 %v825_v41, %v823_v18 }
  0x42   : > { %3199 = vrot.lane.b32.xlu1 %v3198_v38, %s3767_s19  ;;  %v3213_v47 = vpack.i.bf16 %v830_v29, %v828_v48  ;;  %v846_v38 = vrot.slane %v302_v28, 2  ;;  %6137 = vst [vmem:[#allocation34_spill] sm:$0xff] %v4189_v22  ;;  %v844_v46 = vrot.slane %v6138_v61, 2  ;;  %v836_v1 = vrot.slane %v300_v43, 2 }
  0x43   : > { %v837_v51 = vrot.slane %v3885_v36, 2  ;;  %v6139_v37 = vunpack.c.l.bf16 %v3857_v23  ;;  %v850_v28 = vsel %vm810_vm1, %v847_v11, %v849_v32  ;;  %v843_v48 = vsel %vm810_vm1, %v841_v45, %v4189_v22 }
  0x44   : > { %3194 = vrot.lane.b32.xlu0 %v3193_v12, %s3766_s18  ;;  %v289_v12 = vld [vmem:[%s3808_s17 + $0x78] sm:$0xe]  ;;  %v848_v33 = vsel %vm810_vm1, %v846_v38, %v847_v11  ;;  %v845_v29 = vsel %vm810_vm1, %v4189_v22, %v844_v46  ;;  %v304_v62 = vunpack.c.l.bf16 %v288_v13  ;;  %v303_v41 = vunpack.c.l.bf16 %v287_v35  ;;  %v291_v13 = vld [vmem:[%s3808_s17 + $0x90] sm:$0xe] }
  0x45   : > { %v839_v17 = vrot.slane %v6139_v37, 2  ;;  %v305_v56 = vunpack.c.l.bf16 %v289_v12  ;;  %v3233_v23 = vpack.i.bf16 %v850_v28, %v848_v33  ;;  %v3228_v43 = vpack.i.bf16 %v845_v29, %v843_v48  ;;  %v292_v12 = vld [vmem:[%s3808_s17 + $0x9c] sm:$0xe]  ;;  %v290_v28 = vld [vmem:[%s3808_s17 + $0x84] sm:$0xe] }
  0x46   : > { %v4211_v38 = vrot.slane %v4018_v0, 2  ;;  %v6141_v11 = vunpack.c.l.bf16 %v4000_v44  ;;  %v856_v32 = vrot.slane %v304_v62, 2  ;;  %v857_v45 = vrot.slane %v4035_v60, 2 }
  0x47   : > { %v840_v18 = vsel %vm810_vm1, %v837_v51, %v839_v17  ;;  %v6142_v61 = vunpack.c.l.bf16 %v4021_v26  ;;  %v6144_v37 = vunpack.c.l.bf16 %v3922_v57  ;;  %v308_v33 = vunpack.c.l.bf16 %v292_v12 }
  0x48   : > { %6140 = vst [vmem:[#allocation35_spill] sm:$0xff] %v4211_v38  ;;  %v864_v8 = vrot.slane %v6141_v11, 2  ;;  %v307_v48 = vunpack.c.l.bf16 %v291_v13  ;;  %v6148_v13 = vunpack.c.l.bf16 %v3976_v54 }
  0x49   : > { %3219 = vrot.lane.b32.xlu2 %v3218_v7, %s3767_s19  ;;  %v838_v7 = vsel %vm810_vm1, %v836_v1, %v837_v51  ;;  %v859_v46 = vrot.slane %v6142_v61, 2  ;;  %v851_v1 = vrot.slane %v303_v41, 2  ;;  %v4222_v51 = vrot.slane %v3936_v15, 2 }
  0x4a   : > { %3214 = vrot.lane.b32.xlu1 %v3213_v47, %s3767_s19  ;;  %v861_v47 = vrot.slane %v305_v56, 2  ;;  %v854_v44 = vrot.slane %v6144_v37, 2  ;;  %v865_v26 = vsel %vm810_vm1, %v4211_v38, %v864_v8  ;;  %v858_v56 = vsel %vm810_vm1, %v856_v32, %v857_v45 }
  0x4b   : > { %6143 = vst [vmem:[#allocation36_spill] sm:$0xff] %v4222_v51  ;;  %v860_v35 = vsel %vm810_vm1, %v857_v45, %v859_v46  ;;  %v853_v29 = vsel %vm810_vm1, %v851_v1, %v4222_v51  ;;  %v877_v41 = vrot.slane %v4079_v49, 2  ;;  %v871_v11 = vrot.slane %v307_v48, 2  ;;  %v294_v46 = vld [vmem:[%s3808_s17 + $0xb4] sm:$0xe] }
  0x4c   : > { %3209 = vrot.lane.b32.xlu0 %v3208_v9, %s3767_s19  ;;  %v3223_v9 = vpack.i.bf16 %v840_v18, %v838_v7  ;;  %v863_v17 = vsel %vm810_vm1, %v861_v47, %v4211_v38  ;;  %v855_v62 = vsel %vm810_vm1, %v4222_v51, %v854_v44  ;;  %v3243_v7 = vpack.i.bf16 %v860_v35, %v858_v56  ;;  %v293_v44 = vld [vmem:[%s3808_s17 + $0xa8] sm:$0xe]  ;;  %v4264_v56 = vld [vmem:[%s3808_s17 + $0xc] sm:$0xff]  }
  0x4d   : > { %v3248_v57 = vpack.i.bf16 %v865_v26, %v863_v17  ;;  %v876_v18 = vrot.slane %v308_v33, 2  ;;  %v4243_v8 = vrot.slane %v4093_v27, 2  ;;  %v6147_v32 = vunpack.c.l.bf16 %v4083_v58 }
  0x4e   : > { %v3238_v61 = vpack.i.bf16 %v855_v62, %v853_v29  ;;  %v869_v1 = vrot.slane %v6148_v13, 2  ;;  %v310_v26 = vunpack.c.l.bf16 %v294_v46  ;;  %v309_v35 = vunpack.c.l.bf16 %v293_v44 }
  0x4f   : > { %6146 = vst [vmem:[#allocation37_spill] sm:$0xff] %v4243_v8  ;;  %v874_v45 = vrot.slane %v6147_v32, 2  ;;  %v873_v58 = vsel %vm810_vm1, %v871_v11, %v4243_v8  ;;  %v887_v29 = vrot.slane %v4132_v63, 2  ;;  %v6149_v62 = vunpack.c.l.bf16 %v4119_v55 }
  0x50   : > { %v6151_v11 = vunpack.c.l.bf16 %v4038_v25 }
  0x51   : > { %3234 = vrot.lane.b32.xlu2 %v3233_v23, %s3767_s19  ;;  %v306_v23 = vunpack.c.l.bf16 %v290_v28  ;;  %v875_v17 = vsel %vm810_vm1, %v4243_v8, %v874_v45 }
  0x52   : > { %3229 = vrot.lane.b32.xlu1 %v3228_v43, %s3767_s19  ;;  %v6145_v43 = vunpack.c.l.bf16 %v4059_v40  ;;  %v878_v40 = vsel %vm810_vm1, %v876_v18, %v877_v41  ;;  %v3258_v48 = vpack.i.bf16 %v875_v17, %v873_v58  ;;  %v344_v18 = vunpack.c.l.bf16 %v4264_v56  ;;  %v2733_v58 = vld [vmem:[%s3808_s17 + $0x54] sm:$0xff]  }
  0x53   : > { %v866_v12 = vrot.slane %v306_v23, 2  ;;  %v889_v23 = vrot.slane %v6149_v62, 2  ;;  %v884_v32 = vrot.slane %v6151_v11, 2  ;;  %v3283_v17 = vpack.i.bf16 %v3831_v10, %v3820_v6  ;;  %v2737_v62 = vld [vmem:[%s3808_s17 + $0x6c] sm:$0xff]  }
  0x54   : > { %3224 = vrot.lane.b32.xlu0 %v3223_v9, %s3767_s19  ;;  %v879_v47 = vrot.slane %v6145_v43, 2  ;;  %v867_v9 = vrot.slane %v3996_v31, 2  ;;  %v881_v43 = vrot.slane %v309_v35, 2 }
  0x55   : > { %v890_v45 = vsel %vm810_vm1, %v887_v29, %v889_v23 }
  0x56   : > { %v880_v37 = vsel %vm810_vm1, %v877_v41, %v879_v47  ;;  %v868_v54 = vsel %vm810_vm1, %v866_v12, %v867_v9  ;;  %v870_v28 = vsel %vm810_vm1, %v867_v9, %v869_v1  ;;  %v4272_v41 = vunpack.c.h.bf16 %v4264_v56  ;;  %v2725_v9 = vld [vmem:[%s3808_s17 + $0x24] sm:$0xff]  }
  0x57   : > { %v3263_v33 = vpack.i.bf16 %v880_v37, %v878_v40  ;;  %v4275_v47 = vrot.slane %v4056_v21, 2  ;;  %v348_v1 = vunpack.c.l.bf16 %v2725_v9  ;;  %v4293_v40 = vunpack.c.h.bf16 %v2725_v9 }
  0x58   : > { %v3293_v37 = vpack.i.bf16 %v3817_v4, %v3815_v3 }
  0x59   : > { %3249 = vrot.lane.b32.xlu2 %v3248_v57, %s3767_s19  ;;  %v886_v57 = vrot.slane %v310_v26, 2  ;;  %6150 = vst [vmem:[#allocation38_spill] sm:$0xff] %v4275_v47  ;;  %v883_v46 = vsel %vm810_vm1, %v881_v43, %v4275_v47  ;;  %v885_v25 = vsel %vm810_vm1, %v4275_v47, %v884_v32  ;;  %v3288_v44 = vpack.i.bf16 %v4293_v40, %v348_v1 }
  0x5a   : > { %3244 = vrot.lane.b32.xlu1 %v3243_v7, %s3767_s19  ;;  %v3253_v7 = vpack.i.bf16 %v870_v28, %v868_v54  ;;  %v3268_v13 = vpack.i.bf16 %v885_v25, %v883_v46  ;;  %6152 = vst [vmem:[#allocation39_spill] sm:$0xff] %v4293_v40  ;;  %v356_v26 = vunpack.c.l.bf16 %v2733_v58  ;;  %v2729_v54 = vld [vmem:[%s3808_s17 + $0x3c] sm:$0xff]   ;;  %v4319_v43 = vunpack.c.h.bf16 %v2737_v62 }
  0x5b   : > { %v888_v55 = vsel %vm810_vm1, %v886_v57, %v887_v29  ;;  %v352_v35 = vunpack.c.l.bf16 %v2729_v54  ;;  %v3303_v29 = vpack.i.bf16 %v3973_v53, %v3971_v52  ;;  %v3323_v32 = vpack.i.bf16 %v4018_v0, %v4011_v59  ;;  %v4411_v59 = vld [vmem:[%s3808_s17 + $0x74] sm:$0x1]  ;;  %v4419_v52 = vld [vmem:[%s3808_s17 + $0x68] sm:$0x1] }
  0x5c   : > { %3239 = vrot.lane.b32.xlu0 %v3238_v61, %s3767_s19  ;;  %v3278_v61 = vpack.i.bf16 %v4272_v41, %v344_v18  ;;  %v3273_v12 = vpack.i.bf16 %v890_v45, %v888_v55  ;;  %6153 = vst [vmem:[#allocation40_spill] sm:$0xff] %v4319_v43  ;;  %v2745_v45 = vld [vmem:[%s3808_s17 + $0x9c] sm:$0xff]   ;;  %v1141_v63 = vrot.slane %v348_v1, 1  ;;  %v4380_v1 = vld [vmem:[%s3808_s17 + $0x38] sm:$0x1] }
  0x5d   : > { %v368_v46 = vunpack.c.l.bf16 %v2745_v45  ;;  %v4331_v25 = vunpack.c.h.bf16 %v2745_v45  ;;  %v4372_v45 = vrot.slane %v356_v26, 1  ;;  %v1151_v56 = vrot.slane %v352_v35, 1  ;;  %6158 = vst [vmem:[#allocation42_spill] sm:$0xff] %v4411_v59 }
  0x5f   : > { %v4392_v51 = vrot.slane %v368_v46, 1 }
  0x61   : > { %3264 = vrot.lane.b32.xlu2 %v3263_v33, %s3767_s19  ;;  %v4303_v33 = vunpack.c.h.bf16 %v2733_v58  ;;  %v4342_v58 = vld [vmem:[%s3808_s17 + $0x2c] sm:$0x1] }
  0x62   : > { %3259 = vrot.lane.b32.xlu1 %v3258_v48, %s3767_s19  ;;  %v4310_v48 = vunpack.c.h.bf16 %v2729_v54  ;;  %6154 = vst [vmem:[#allocation41_spill] sm:$0xff] %v4342_v58  ;;  %v4348_v54 = vld [vmem:[%s3808_s17 + $0x14] sm:$0x1] }
  0x63   : > { %v3308_v57 = vpack.i.bf16 %v4303_v33, %v356_v26 }
  0x64   : > { %3254 = vrot.lane.b32.xlu0 %v3253_v7, %s3767_s19  ;;  %v3298_v23 = vpack.i.bf16 %v4310_v48, %v352_v35  ;;  %v360_v7 = vunpack.c.l.bf16 %v2737_v62  ;;  %v2749_v62 = vld [vmem:[%s3808_s17 + $0xb4] sm:$0xff]   ;;  %v1132_v35 = vrot.slane %v4272_v41, 1 }
  0x65   : > { %v372_v47 = vunpack.c.l.bf16 %v2749_v62 }
  0x66   : > { %v3318_v55 = vpack.i.bf16 %v4319_v43, %v360_v7 }
  0x69   : > { %3279 = vrot.lane.b32.xlu2 %v3278_v61, %s3768_s20  ;;  %v3313_v61 = vpack.i.bf16 %v3936_v15, %v3934_v2 }
  0x6a   : > { %3274 = vrot.lane.b32.xlu1 %v3273_v12, %s3767_s19  ;;  %v2741_v12 = vld [vmem:[%s3808_s17 + $0x84] sm:$0xff]  }
  0x6c   : > { %3269 = vrot.lane.b32.xlu0 %v3268_v13, %s3767_s19  ;;  %v364_v13 = vunpack.c.l.bf16 %v2741_v12 }
  0x71   : > { %3294 = vrot.lane.b32.xlu2 %v3293_v37, %s3768_s20  ;;  %v4338_v37 = vunpack.c.h.bf16 %v2741_v12 }
  0x72   : > { %3289 = vrot.lane.b32.xlu1 %v3288_v44, %s3768_s20  ;;  %v3338_v44 = vpack.i.bf16 %v4331_v25, %v368_v46 }
  0x73   : > { %v4307_v28 = vpop.permute.xlu2 %3139 }
  0x74   : > { %3284 = vrot.lane.b32.xlu0 %v3283_v17, %s3768_s20  ;;  %v4345_v17 = vld [vmem:[%s3808_s17 + $0x20] sm:$0x1]  ;;  %v3141_v46 = vunpack.i.l.bf16 %v4307_v28 }
  0x75   : > { %v6156_v22 = vunpack.c.l.bf16 %v4345_v17 }
  0x77   : > { %v1139_v26 = vrot.slane %v6156_v22, 1 }
  0x79   : > { %3309 = vrot.lane.b32.xlu2 %v3308_v57, %s3768_s20  ;;  %v3333_v57 = vpack.i.bf16 %v4093_v27, %v4087_v50  ;;  %v4364_v50 = vunpack.c.h.bf16 %v2749_v62  ;;  %v6155_v62 = vunpack.c.l.bf16 %v4342_v58  ;;  %v4398_v58 = vrot.slane %v364_v13, 1 }
  0x7a   : > { %3304 = vrot.lane.b32.xlu1 %v3303_v29, %s3768_s20  ;;  %v3068_v29 = vld [vmem:[%s3808_s17 + $0xc0] sm:$0xff]   ;;  %v1140_v0 = vsel %vm617_vm0, %v3849_v19, %v1139_v26 }
  0x7b   : > { %v4321_v11 = vpop.permute.xlu2 %3144  ;;  %v2940_v12 = vunpack.c.l.bf16 %v3068_v29  ;;  %v4361_v8 = vunpack.c.h.bf16 %v3068_v29  ;;  %v1142_v29 = vrot.slane %v4293_v40, 1  ;;  %v1144_v38 = vrot.slane %v6155_v62, 1 }
  0x7c   : > { %3299 = vrot.lane.b32.xlu0 %v3298_v23, %s3768_s20  ;;  %v3328_v23 = vpack.i.bf16 %v4338_v37, %v364_v13  ;;  %v3142_v62 = vunpack.i.h.bf16 %v4307_v28  ;;  %v3348_v39 = vpack.i.bf16 %v4364_v50, %v372_v47  ;;  %v4422_v28 = vld [vmem:[%s3808_s17 + $0x5c] sm:$0x1] }
  0x7d   : > { %v3353_v49 = vpack.i.bf16 %v4361_v8, %v2940_v12  ;;  %v4405_v60 = vrot.slane %v2940_v12, 1  ;;  %v1143_v40 = vsel %vm617_vm0, %v1141_v63, %v1142_v29  ;;  %v1145_v13 = vsel %vm617_vm0, %v1142_v29, %v1144_v38 }
  0x7e   : > { %v4432_v19 = vsel %vm2011_vm2, %v3817_v4, %v3142_v62  ;;  %v3146_v62 = vunpack.i.l.bf16 %v4321_v11 }
  0x81   : > { %3324 = vrot.lane.b32.xlu2 %v3323_v32, %s3768_s20  ;;  %v4367_v32 = vld [vmem:[%s3808_s17 + $0x50] sm:$0x1] }
  0x82   : > { %3319 = vrot.lane.b32.xlu1 %v3318_v55, %s3768_s20  ;;  %v4370_v55 = vld [vmem:[%s3808_s17 + $0x44] sm:$0x1]  ;;  %v6159_v12 = vunpack.c.l.bf16 %v4367_v32 }
  0x83   : > { %v4335_v9 = vpop.permute.xlu2 %3159  ;;  %v6160_v38 = vunpack.c.l.bf16 %v4370_v55 }
  0x84   : > { %3314 = vrot.lane.b32.xlu0 %v3313_v61, %s3768_s20  ;;  %v1131_v61 = vrot.slane %v344_v18, 1  ;;  %v4374_v18 = vrot.slane %v360_v7, 1  ;;  %v6157_v7 = vunpack.c.l.bf16 %v4348_v54  ;;  %v1159_v63 = vrot.slane %v6159_v12, 1 }
  0x85   : > { %v1154_v29 = vrot.slane %v6160_v38, 1  ;;  %v3147_v12 = vunpack.i.h.bf16 %v4321_v11  ;;  %v3162_v11 = vunpack.i.h.bf16 %v4335_v9 }
  0x86   : > { %v1134_v27 = vrot.slane %v6157_v7, 1  ;;  %v1133_v24 = vsel %vm617_vm0, %v1131_v61, %v1132_v35  ;;  %v4434_v61 = vrot.slane %v372_v47, 1 }
  0x88   : > { %v1135_v7 = vsel %vm617_vm0, %v1132_v35, %v1134_v27  ;;  %v6161_v27 = vunpack.c.l.bf16 %v4380_v1  ;;  %v4442_v35 = vsel %vm2011_vm2, %v3815_v3, %v3141_v46  ;;  %v4456_v46 = vsel %vm617_vm0, %v3990_v20, %v1159_v63 }
  0x89   : > { %3339 = vrot.lane.b32.xlu2 %v3338_v44, %s3768_s20  ;;  %v3358_v3 = vpack.i.bf16 %v1135_v7, %v1133_v24  ;;  %v4474_v20 = vsel %vm2011_vm2, %v3885_v36, %v3147_v12  ;;  %v6164_v7 = vunpack.c.l.bf16 %v4422_v28  ;;  %v6166_v63 = vunpack.c.l.bf16 %v3839_v14 }
  0x8a   : > { %3334 = vrot.lane.b32.xlu1 %v3333_v57, %s3768_s20  ;;  %v1149_v26 = vrot.slane %v6161_v27, 1  ;;  %v3368_v27 = vpack.i.bf16 %v1145_v13, %v1143_v40  ;;  %v4482_v13 = vld [vmem:[%s3808_s17 + $0x98] sm:$0x1] }
  0x8b   : > { %v4376_v44 = vpop.permute.xlu2 %3174  ;;  %6165 = vst [vmem:[#allocation43_spill] sm:$0xff] %v4482_v13 }
  0x8c   : > { %3329 = vrot.lane.b32.xlu0 %v3328_v23, %s3768_s20  ;;  %v4383_v57 = vpop.permute.xlu1 %3129  ;;  %v3343_v23 = vpack.i.bf16 %v4056_v21, %v4054_v5  ;;  %v1152_v5 = vrot.slane %v4310_v48, 1  ;;  %v4467_v4 = vsel %vm617_vm0, %v3843_v16, %v1149_v26  ;;  %v1164_v16 = vrot.slane %v6164_v7, 1  ;;  %v6168_v26 = vld [vmem:[#allocation14_spill] sm:$0xff]  ;;  %v6169_v7 = vld [vmem:[#allocation4_spill] sm:$0xff] }
  0x8d   : > { %v3383_v36 = vpack.i.bf16 %v4456_v46, %v6168_v26  ;;  %v3373_v14 = vpack.i.bf16 %v4467_v4, %v6169_v7  ;;  %v4505_v46 = vsel %vm2011_vm2, %v3936_v15, %v3162_v11  ;;  %v3177_v4 = vunpack.i.h.bf16 %v4376_v44  ;;  %v6172_v7 = vld [vmem:[#allocation7_spill] sm:$0xff] }
  0x8e   : > { %v4400_v22 = vpop.permute.xlu0 %3119  ;;  %v4459_v21 = vsel %vm617_vm0, %v1151_v56, %v1152_v5  ;;  %v4462_v47 = vsel %vm617_vm0, %v1152_v5, %v1154_v29  ;;  %v6163_v5 = vunpack.c.l.bf16 %v4419_v52  ;;  %v1162_v56 = vrot.slane %v4303_v33, 1  ;;  %6170 = vst [vmem:[#allocation14_spill] sm:$0xff] %v4505_v46 }
  0x8f   : > { %v4487_v29 = vsel %vm2011_vm2, %v6166_v63, %v3146_v62  ;;  %v3378_v12 = vpack.i.bf16 %v4462_v47, %v4459_v21  ;;  %v4501_v62 = vld [vmem:[%s3808_s17 + $0x80] sm:$0x1]  ;;  %v3176_v26 = vunpack.i.l.bf16 %v4376_v44  ;;  %v3131_v47 = vunpack.i.l.bf16 %v4383_v57 }
  0x90   : > { %v1169_v40 = vrot.slane %v6163_v5, 1  ;;  %6167 = vst [vmem:[#allocation44_spill] sm:$0xff] %v4487_v29  ;;  %v4523_v15 = vsel %vm617_vm0, %v4372_v45, %v1162_v56  ;;  %v3132_v45 = vunpack.i.h.bf16 %v4383_v57  ;;  %v6177_v44 = vunpack.c.l.bf16 %v4482_v13  ;;  %v4552_v29 = vld [vmem:[%s3808_s17 + $0xbc] sm:$0x1] }
  0x91   : > { %3354 = vrot.lane.b32.xlu2 %v3353_v49, %s3768_s20  ;;  %v3363_v49 = vpack.i.bf16 %v1140_v0, %v3873_v30  ;;  %v1172_v30 = vrot.slane %v4319_v43, 1  ;;  %v6162_v0 = vunpack.c.l.bf16 %v4411_v59  ;;  %v4498_v43 = vld [vmem:[%s3808_s17 + $0x8c] sm:$0x1]  ;;  %6178 = vst [vmem:[#allocation7_spill] sm:$0xff] %v4552_v29  ;;  %v3121_v57 = vunpack.i.l.bf16 %v4400_v22 }
  0x92   : > { %3349 = vrot.lane.b32.xlu1 %v3348_v39, %s3768_s20  ;;  %v1189_v46 = vrot.slane %v6177_v44, 1  ;;  %v4573_v44 = vld [vmem:[%s3808_s17 + $0xa4] sm:$0x1] }
  0x93   : > { %v4445_v38 = vpop.permute.xlu2 %3189  ;;  %v1174_v24 = vrot.slane %v6162_v0, 1  ;;  %v3161_v0 = vunpack.i.l.bf16 %v4335_v9  ;;  %v4510_v21 = vsel %vm617_vm0, %v4374_v18, %v1172_v30 }
  0x94   : > { %3344 = vrot.lane.b32.xlu0 %v3343_v23, %s3768_s20  ;;  %v4451_v39 = vpop.permute.xlu1 %3134 }
  0x95   : > { %v4513_v9 = vsel %vm617_vm0, %v1172_v30, %v1174_v24 }
  0x96   : > { %v3125_v23 = vpop.permute.xlu0 %3124 }
  0x97   : > { %v3127_v5 = vunpack.i.h.bf16 %v3125_v23  ;;  %v3126_v59 = vunpack.i.l.bf16 %v3125_v23  ;;  %v6171_v23 = vld [vmem:[#allocation9_spill] sm:$0xff] }
  0x98   : > { %v4519_v63 = vsel %vm617_vm0, %v6171_v23, %v1169_v40 }
  0x99   : > { %3369 = vrot.lane.b32.xlu2 %v3368_v27, %s3769_s21 }
  0x9a   : > { %3364 = vrot.lane.b32.xlu1 %v3363_v49, %s3769_s21  ;;  %v4526_v49 = vsel %vm617_vm0, %v1162_v56, %v1164_v16  ;;  %v2015_v56 = vsel %vm2011_vm2, %v6172_v7, %v3127_v5  ;;  %v6173_v16 = vld [vmem:[#allocation6_spill] sm:$0xff]  ;;  %v4556_v5 = vsel %vm2011_vm2, %v3934_v2, %v3161_v0  ;;  %v4562_v7 = vld [vmem:[%s3808_s17 + $0xb0] sm:$0x1]  ;;  %v6181_v2 = vunpack.c.l.bf16 %v4501_v62 }
  0x9b   : > { %v3205_v27 = vpop.permute.xlu2 %3204  ;;  %v6174_v23 = vunpack.c.l.bf16 %v6173_v16 }
  0x9c   : > { %3359 = vrot.lane.b32.xlu0 %v3358_v3, %s3769_s21  ;;  %v4529_v18 = vpop.permute.xlu1 %3154  ;;  %v3207_v11 = vunpack.i.h.bf16 %v3205_v27  ;;  %v3206_v30 = vunpack.i.l.bf16 %v3205_v27  ;;  %v1179_v0 = vrot.slane %v6181_v2, 1  ;;  %v6189_v2 = vld [vmem:[#allocation30_spill] sm:$0xff] }
  0x9d   : > { %v2014_v3 = vsel %vm2011_vm2, %v6174_v23, %v3126_v59  ;;  %v3122_v59 = vunpack.i.h.bf16 %v4400_v22  ;;  %v6180_v23 = vunpack.c.l.bf16 %v4498_v43  ;;  %v4577_v22 = vsel %vm2011_vm2, %v3996_v31, %v3177_v4  ;;  %v6184_v4 = vld [vmem:[#allocation28_spill] sm:$0xff] }
  0x9e   : > { %v4542_v27 = vsel %vm2044_vm3, %v2014_v3, %v3206_v30  ;;  %v4545_v24 = vsel %vm2044_vm3, %v2015_v56, %v3207_v11  ;;  %v4547_v40 = vpop.permute.xlu0 %3149  ;;  %v1182_v30 = vrot.slane %v4338_v37, 1  ;;  %v3398_v11 = vpack.i.bf16 %v4513_v9, %v4510_v21  ;;  %v6179_v56 = vld [vmem:[#allocation11_spill] sm:$0xff] }
  0x9f   : > { %6175 = vst [vmem:[#allocation4_spill] sm:$0xff] %v4542_v27  ;;  %v3393_v16 = vpack.i.bf16 %v4519_v63, %v6179_v56  ;;  %v1184_v3 = vrot.slane %v6180_v23, 1  ;;  %v3388_v21 = vpack.i.bf16 %v4526_v49, %v4523_v15  ;;  %v6090_v9 = vunpack.c.l.bf16 %v4552_v29  ;;  %v6186_v49 = vld [vmem:[#allocation2_spill] sm:$0xff]  ;;  %v6188_v23 = vld [vmem:[#allocation17_spill] sm:$0xff] }
  0xa0   : > { %6176 = vst [vmem:[#allocation9_spill] sm:$0xff] %v4545_v24  ;;  %v6182_v24 = vld [vmem:[#allocation10_spill] sm:$0xff]  ;;  %v4590_v63 = vsel %vm2011_vm2, %v3831_v10, %v3132_v45  ;;  %v4594_v31 = vsel %vm2011_vm2, %v3820_v6, %v3131_v47  ;;  %v6187_v10 = vunpack.c.l.bf16 %v6186_v49  ;;  %v2770_v49 = vld [vmem:[%s3808_s17 + $0x18] sm:$0xe] }
  0xa1   : > { %v6183_v27 = vunpack.c.l.bf16 %v6182_v24  ;;  %3384 = vrot.lane.b32.xlu2 %v3383_v36, %s3769_s21  ;;  %v4599_v24 = vsel %vm617_vm0, %v6184_v4, %v1189_v46  ;;  %v6091_v36 = vunpack.c.l.bf16 %v4562_v7  ;;  %v6093_v46 = vunpack.c.l.bf16 %v4573_v44 }
  0xa2   : > { %3379 = vrot.lane.b32.xlu1 %v3378_v12, %s3769_s21  ;;  %v4609_v45 = vsel %vm2011_vm2, %v6187_v10, %v3121_v57  ;;  %v4613_v12 = vsel %vm617_vm0, %v4398_v58, %v1182_v30  ;;  %v4620_v56 = vsel %vm617_vm0, %v1182_v30, %v1184_v3  ;;  %v4624_v57 = vsel %vm617_vm0, %v6188_v23, %v1179_v0 }
  0xa3   : > { %v4582_v13 = vsel %vm2011_vm2, %v6183_v27, %v3176_v26  ;;  %v6185_v26 = vld [vmem:[#allocation3_spill] sm:$0xff]  ;;  %v3220_v6 = vpop.permute.xlu2 %3219  ;;  %v3137_v58 = vunpack.i.h.bf16 %v4451_v39  ;;  %v3413_v4 = vpack.i.bf16 %v4599_v24, %v6189_v2  ;;  %v1199_v10 = vrot.slane %v6091_v36, 1  ;;  %v6192_v36 = vld [vmem:[#allocation20_spill] sm:$0xff] }
  0xa4   : > { %v4604_v15 = vsel %vm2011_vm2, %v6185_v26, %v3122_v59  ;;  %3374 = vrot.lane.b32.xlu0 %v3373_v14, %s3769_s21  ;;  %v4617_v47 = vpop.permute.xlu1 %3169  ;;  %v3222_v27 = vunpack.i.h.bf16 %v3220_v6  ;;  %v3221_v59 = vunpack.i.l.bf16 %v3220_v6  ;;  %v1202_v14 = vrot.slane %v4364_v50, 1  ;;  %v2769_v6 = vld [vmem:[%s3808_s17 + $0xc] sm:$0xe] }
  0xa5   : > { %v1204_v26 = vrot.slane %v6090_v9, 1  ;;  %v1192_v24 = vrot.slane %v4331_v25, 1  ;;  %v3157_v23 = vunpack.i.h.bf16 %v4529_v18  ;;  %v3156_v2 = vunpack.i.l.bf16 %v4529_v18 }
  0xa6   : > { %v4635_v30 = vsel %vm2044_vm3, %v4432_v19, %v3222_v27  ;;  %v4639_v3 = vsel %vm2044_vm3, %v4442_v35, %v3221_v59  ;;  %v4641_v0 = vpop.permute.xlu0 %3164  ;;  %v3408_v19 = vpack.i.bf16 %v4620_v56, %v4613_v12  ;;  %v1194_v27 = vrot.slane %v6093_v46, 1  ;;  %v4654_v35 = vld [vmem:[%s3808_s17 + $0xc8] sm:$0x1] }
  0xa7   : > { %6190 = vst [vmem:[#allocation6_spill] sm:$0xff] %v4635_v30  ;;  %v425_v30 = vunpack.c.l.bf16 %v2770_v49  ;;  %v4662_v29 = vsel %vm2011_vm2, %v3897_v42, %v3137_v58  ;;  %v3136_v18 = vunpack.i.l.bf16 %v4451_v39  ;;  %v4668_v12 = vsel %vm617_vm0, %v4434_v61, %v1202_v14 }
  0xa8   : > { %6191 = vst [vmem:[#allocation11_spill] sm:$0xff] %v4639_v3  ;;  %v3403_v3 = vpack.i.bf16 %v4624_v57, %v6192_v36  ;;  %v424_v56 = vunpack.c.l.bf16 %v2769_v6  ;;  %v4672_v9 = vsel %vm617_vm0, %v1202_v14, %v1204_v26  ;;  %v6193_v36 = vld [vmem:[#allocation23_spill] sm:$0xff]  ;;  %v4680_v42 = vsel %vm617_vm0, %v4392_v51, %v1192_v24 }
  0xa9   : > { %3399 = vrot.lane.b32.xlu2 %v3398_v11, %s3769_s21  ;;  %v4676_v57 = vsel %vm617_vm0, %v6193_v36, %v1199_v10  ;;  %v6094_v39 = vunpack.c.l.bf16 %v4654_v35  ;;  %v2027_v61 = vsel %vm2011_vm2, %v3951_v34, %v3157_v23  ;;  %v6194_v11 = vld [vmem:[#allocation8_spill] sm:$0xff]  ;;  %v3152_v14 = vunpack.i.h.bf16 %v4547_v40 }
  0xaa   : > { %3394 = vrot.lane.b32.xlu1 %v3393_v16, %s3769_s21  ;;  %v6195_v58 = vunpack.c.l.bf16 %v6194_v11  ;;  %v4690_v49 = vsel %vm617_vm0, %v1192_v24, %v1194_v27  ;;  %v3151_v10 = vunpack.i.l.bf16 %v4547_v40  ;;  %v1328_v34 = vrot.slane %v425_v30, 2  ;;  %v2773_v27 = vld [vmem:[%s3808_s17 + $0x3c] sm:$0xe] }
  0xab   : > { %v3235_v26 = vpop.permute.xlu2 %3234  ;;  %v6196_v23 = vunpack.c.l.bf16 %v4345_v17  ;;  %v6197_v59 = vunpack.c.l.bf16 %v4348_v54  ;;  %v1207_v30 = vrot.slane %v4361_v8, 1  ;;  %v1209_v17 = vrot.slane %v6094_v39, 1 }
  0xac   : > { %v2026_v16 = vsel %vm2011_vm2, %v6195_v58, %v3156_v2  ;;  %3389 = vrot.lane.b32.xlu0 %v3388_v21, %s3769_s21  ;;  %v4694_v51 = vpop.permute.xlu1 %3184  ;;  %v3237_v6 = vunpack.i.h.bf16 %v3235_v26  ;;  %v3236_v36 = vunpack.i.l.bf16 %v3235_v26  ;;  %v1323_v2 = vrot.slane %v424_v56, 2  ;;  %v2772_v56 = vld [vmem:[%s3808_s17 + $0x30] sm:$0xe]  ;;  %v6199_v26 = vld [vmem:[#allocation5_spill] sm:$0xff] }
  0xad   : > { %v1331_v11 = vrot.slane %v6196_v23, 2  ;;  %v1324_v58 = vrot.slane %v4272_v41, 2  ;;  %v1326_v24 = vrot.slane %v6197_v59, 2  ;;  %v6200_v41 = vunpack.c.l.bf16 %v6199_v26 }
  0xae   : > { %v4703_v40 = vsel %vm2044_vm3, %v2027_v61, %v3237_v6  ;;  %v4706_v21 = vsel %vm2044_vm3, %v2026_v16, %v3236_v36  ;;  %v4708_v46 = vpop.permute.xlu0 %3179  ;;  %v3172_v59 = vunpack.i.h.bf16 %v4617_v47  ;;  %v3171_v61 = vunpack.i.l.bf16 %v4617_v47  ;;  %v6201_v36 = vld [vmem:[#allocation27_spill] sm:$0xff]  ;;  %v6203_v47 = vld [vmem:[#allocation33_spill] sm:$0xff] }
  0xaf   : > { %6198 = vst [vmem:[#allocation10_spill] sm:$0xff] %v4706_v21  ;;  %v4717_v54 = vsel %vm2011_vm2, %v6200_v41, %v3136_v18  ;;  %v3428_v16 = vpack.i.bf16 %v4672_v9, %v4668_v12  ;;  %v4725_v6 = vsel %vm2011_vm2, %v3973_v53, %v3152_v14  ;;  %v3423_v23 = vpack.i.bf16 %v4676_v57, %v6201_v36  ;;  %v6202_v18 = vld [vmem:[#allocation12_spill] sm:$0xff] }
  0xb0   : > { %v3418_v26 = vpack.i.bf16 %v4690_v49, %v4680_v42  ;;  %v428_v39 = vunpack.c.l.bf16 %v2773_v27  ;;  %v4733_v41 = vsel %vm2011_vm2, %v6202_v18, %v3151_v10  ;;  %v4738_v9 = vsel %vm810_vm1, %v1328_v34, %v6203_v47  ;;  %v6204_v49 = vld [vmem:[#allocation16_spill] sm:$0xff]  ;;  %v6205_v34 = vld [vmem:[#allocation15_spill] sm:$0xff] }
  0xb1   : > { %3414 = vrot.lane.b32.xlu2 %v3413_v4, %s3769_s21  ;;  %v4742_v53 = vsel %vm810_vm1, %v6203_v47, %v1331_v11  ;;  %v427_v12 = vunpack.c.l.bf16 %v2772_v56  ;;  %v4746_v57 = vsel %vm810_vm1, %v1323_v2, %v1324_v58  ;;  %v4749_v42 = vsel %vm810_vm1, %v1324_v58, %v1326_v24  ;;  %v2771_v56 = vld [vmem:[%s3808_s17 + $0x24] sm:$0xe] }
  0xb2   : > { %3409 = vrot.lane.b32.xlu1 %v3408_v19, %s3769_s21  ;;  %v4753_v4 = vsel %vm617_vm0, %v4405_v60, %v1207_v30  ;;  %v4756_v14 = vsel %vm617_vm0, %v1207_v30, %v1209_v17  ;;  %v2033_v10 = vsel %vm2011_vm2, %v6204_v49, %v3172_v59  ;;  %v2032_v19 = vsel %vm2011_vm2, %v6205_v34, %v3171_v61  ;;  %v2776_v49 = vld [vmem:[%s3808_s17 + $0x60] sm:$0xe] }
  0xb3   : > { %v3167_v11 = vunpack.i.h.bf16 %v4641_v0  ;;  %v3166_v2 = vunpack.i.l.bf16 %v4641_v0  ;;  %v3250_v58 = vpop.permute.xlu2 %3249  ;;  %v1343_v30 = vrot.slane %v428_v39, 2  ;;  %v1344_v17 = vrot.slane %v4310_v48, 2  ;;  %v2775_v48 = vld [vmem:[%s3808_s17 + $0x54] sm:$0xe] }
  0xb4   : > { %3404 = vrot.lane.b32.xlu0 %v3403_v3, %s3769_s21  ;;  %v3252_v60 = vunpack.i.h.bf16 %v3250_v58  ;;  %v3251_v24 = vunpack.i.l.bf16 %v3250_v58  ;;  %v3200_v27 = vpop.permute.xlu1 %3199  ;;  %v6206_v18 = vunpack.c.l.bf16 %v4370_v55  ;;  %v1338_v47 = vrot.slane %v427_v12, 2 }
  0xb5   : > { %v3202_v59 = vunpack.i.h.bf16 %v3200_v27  ;;  %v3201_v36 = vunpack.i.l.bf16 %v3200_v27  ;;  %v6207_v39 = vunpack.c.l.bf16 %v4380_v1  ;;  %v3187_v21 = vunpack.i.h.bf16 %v4694_v51  ;;  %v6208_v27 = vld [vmem:[#allocation18_spill] sm:$0xff] }
  0xb6   : > { %v1346_v61 = vrot.slane %v6206_v18, 2  ;;  %v4771_v0 = vsel %vm2044_vm3, %v2033_v10, %v3252_v60  ;;  %v4774_v3 = vsel %vm2044_vm3, %v2032_v19, %v3251_v24  ;;  %v4776_v34 = vpop.permute.xlu0 %3194  ;;  %v426_v10 = vunpack.c.l.bf16 %v2771_v56  ;;  %v6213_v56 = vld [vmem:[#allocation24_spill] sm:$0xff] }
  0xb7   : > { %v1341_v58 = vrot.slane %v6207_v39, 2  ;;  %v4784_v55 = vsel %vm2044_vm3, %v4609_v45, %v3201_v36  ;;  %v4788_v12 = vsel %vm2044_vm3, %v4604_v15, %v3202_v59  ;;  %v3186_v19 = vunpack.i.l.bf16 %v4694_v51  ;;  %v6209_v45 = vld [vmem:[#allocation13_spill] sm:$0xff] }
  0xb8   : > { %v3443_v60 = vpack.i.bf16 %v4742_v53, %v4738_v9  ;;  %v3438_v1 = vpack.i.bf16 %v4749_v42, %v4746_v57  ;;  %v431_v24 = vunpack.c.l.bf16 %v2776_v49  ;;  %v4797_v18 = vsel %vm2011_vm2, %v6208_v27, %v3167_v11  ;;  %v6211_v57 = vld [vmem:[#allocation32_spill] sm:$0xff]  ;;  %v6212_v11 = vld [vmem:[#allocation39_spill] sm:$0xff] }
  0xb9   : > { %v6210_v36 = vunpack.c.l.bf16 %v6209_v45  ;;  %3429 = vrot.lane.b32.xlu2 %v3428_v16, %s3769_s21  ;;  %v3433_v15 = vpack.i.bf16 %v4756_v14, %v4753_v4  ;;  %v430_v51 = vunpack.c.l.bf16 %v2775_v48  ;;  %v4809_v9 = vsel %vm810_vm1, %v1343_v30, %v1344_v17  ;;  %v6214_v30 = vld [vmem:[#allocation41_spill] sm:$0xff] }
  0xba   : > { %3424 = vrot.lane.b32.xlu1 %v3423_v23, %s3769_s21  ;;  %v4812_v53 = vsel %vm810_vm1, %v1344_v17, %v1346_v61  ;;  %v4816_v42 = vsel %vm810_vm1, %v1338_v47, %v6211_v57  ;;  %v2039_v16 = vsel %vm2011_vm2, %v6213_v56, %v3187_v21  ;;  %v4823_v23 = vsel %vm810_vm1, %v6211_v57, %v1341_v58  ;;  %v6216_v61 = vld [vmem:[#allocation19_spill] sm:$0xff] }
  0xbb   : > { %v4802_v39 = vsel %vm2011_vm2, %v6210_v36, %v3166_v2  ;;  %v1334_v2 = vrot.slane %v6212_v11, 2  ;;  %v3265_v4 = vpop.permute.xlu2 %3264  ;;  %v1333_v14 = vrot.slane %v426_v10, 2  ;;  %v6215_v17 = vunpack.c.l.bf16 %v6214_v30  ;;  %v2774_v56 = vld [vmem:[%s3808_s17 + $0x48] sm:$0xe]  ;;  %v2779_v30 = vld [vmem:[%s3808_s17 + $0x84] sm:$0xe] }
  0xbc   : > { %v6217_v47 = vunpack.c.l.bf16 %v6216_v61  ;;  %3419 = vrot.lane.b32.xlu0 %v3418_v26, %s3769_s21  ;;  %v3267_v48 = vunpack.i.h.bf16 %v3265_v4  ;;  %v3266_v21 = vunpack.i.l.bf16 %v3265_v4  ;;  %v3215_v27 = vpop.permute.xlu1 %3214  ;;  %v1358_v45 = vrot.slane %v431_v24, 2 }
  0xbd   : > { %v1336_v59 = vrot.slane %v6215_v17, 2  ;;  %v3217_v36 = vunpack.i.h.bf16 %v3215_v27  ;;  %v3216_v11 = vunpack.i.l.bf16 %v3215_v27  ;;  %v6218_v58 = vunpack.c.l.bf16 %v4419_v52 }
  0xbe   : > { %v2038_v49 = vsel %vm2011_vm2, %v6217_v47, %v3186_v19  ;;  %v1353_v10 = vrot.slane %v430_v51, 2  ;;  %v4836_v17 = vsel %vm2044_vm3, %v2039_v16, %v3267_v48  ;;  %v3210_v26 = vpop.permute.xlu0 %3209  ;;  %v1354_v4 = vrot.slane %v4303_v33, 2  ;;  %v2778_v48 = vld [vmem:[%s3808_s17 + $0x78] sm:$0xe] }
  0xbf   : > { %v1361_v57 = vrot.slane %v6218_v58, 2  ;;  %v4839_v19 = vsel %vm2044_vm3, %v2038_v49, %v3266_v21  ;;  %v6219_v24 = vunpack.c.l.bf16 %v4422_v28  ;;  %v4846_v47 = vsel %vm2044_vm3, %v4662_v29, %v3217_v36 }
  0xc0   : > { %v4850_v52 = vsel %vm2044_vm3, %v4717_v54, %v3216_v11  ;;  %v3212_v51 = vunpack.i.h.bf16 %v3210_v26  ;;  %v3211_v16 = vunpack.i.l.bf16 %v3210_v26  ;;  %v3458_v49 = vpack.i.bf16 %v4812_v53, %v4809_v9 }
  0xc1   : > { %v1356_v61 = vrot.slane %v6219_v24, 2  ;;  %v3453_v33 = vpack.i.bf16 %v4823_v23, %v4816_v42  ;;  %v429_v21 = vunpack.c.l.bf16 %v2774_v56  ;;  %v434_v28 = vunpack.c.l.bf16 %v2779_v30  ;;  %3444 = vrot.lane.b32.xlu2 %v3443_v60, %s3770_s22  ;;  %v6220_v42 = vld [vmem:[#allocation36_spill] sm:$0xff] }
  0xc2   : > { %v4859_v27 = vsel %vm2044_vm3, %v4590_v63, %v3212_v51  ;;  %v4863_v29 = vsel %vm2044_vm3, %v4594_v31, %v3211_v16  ;;  %v1335_v54 = vsel %vm810_vm1, %v1333_v14, %v1334_v2  ;;  %v1337_v9 = vsel %vm810_vm1, %v1334_v2, %v1336_v59  ;;  %3439 = vrot.lane.b32.xlu1 %v3438_v1, %s3770_s22  ;;  %v2782_v16 = vld [vmem:[%s3808_s17 + $0xa8] sm:$0xe] }
  0xc3   : > { %v3182_v53 = vunpack.i.h.bf16 %v4708_v46  ;;  %v4872_v23 = vsel %vm810_vm1, %v1358_v45, %v6220_v42  ;;  %v4876_v63 = vsel %vm810_vm1, %v6220_v42, %v1361_v57  ;;  %v433_v31 = vunpack.c.l.bf16 %v2778_v48  ;;  %v3280_v36 = vpop.permute.xlu2 %3279 }
  0xc4   : > { %v4879_v60 = vsel %vm810_vm1, %v1353_v10, %v1354_v4  ;;  %v4882_v2 = vsel %vm810_vm1, %v1354_v4, %v1356_v61  ;;  %v6221_v14 = vunpack.c.l.bf16 %v4367_v32  ;;  %3434 = vrot.lane.b32.xlu0 %v3433_v15, %s3769_s21  ;;  %v3282_v59 = vunpack.i.h.bf16 %v3280_v36  ;;  %v3230_v11 = vpop.permute.xlu1 %3229  ;;  %v2777_v4 = vld [vmem:[%s3808_s17 + $0x6c] sm:$0xe] }
  0xc5   : > { %v3281_v45 = vunpack.i.l.bf16 %v3280_v36  ;;  %v1348_v58 = vrot.slane %v429_v21, 2  ;;  %v1373_v57 = vrot.slane %v434_v28, 2  ;;  %v3232_v56 = vunpack.i.h.bf16 %v3230_v11  ;;  %v6223_v28 = vld [vmem:[#allocation26_spill] sm:$0xff] }
  0xc6   : > { %v1351_v1 = vrot.slane %v6221_v14, 2  ;;  %v3231_v30 = vunpack.i.l.bf16 %v3230_v11  ;;  %v1374_v26 = vrot.slane %v4338_v37, 2  ;;  %v6222_v10 = vunpack.c.l.bf16 %v4498_v43  ;;  %v3225_v61 = vpop.permute.xlu0 %3224 }
  0xc7   : > { %v4893_v32 = vsel %vm2077_vm4, %v4784_v55, %v3281_v45  ;;  %v4897_v15 = vsel %vm2077_vm4, %v4788_v12, %v3282_v59  ;;  %v1368_v51 = vrot.slane %v433_v31, 2  ;;  %v4906_v43 = vsel %vm2044_vm3, %v4725_v6, %v3232_v56 }
  0xc8   : > { %v1376_v24 = vrot.slane %v6222_v10, 2  ;;  %v4902_v48 = vsel %vm2044_vm3, %v4733_v41, %v3231_v30  ;;  %v3227_v37 = vunpack.i.h.bf16 %v3225_v61  ;;  %v3226_v21 = vunpack.i.l.bf16 %v3225_v61  ;;  %v6224_v41 = vld [vmem:[#allocation44_spill] sm:$0xff]  ;;  %v6229_v30 = vld [vmem:[#allocation42_spill] sm:$0xff] }
  0xc9   : > { %v4910_v55 = vsel %vm2011_vm2, %v6223_v28, %v3182_v53  ;;  %v3181_v12 = vunpack.i.l.bf16 %v4708_v46  ;;  %v3448_v42 = vpack.i.bf16 %v1337_v9, %v1335_v54  ;;  %v432_v36 = vunpack.c.l.bf16 %v2777_v4  ;;  %3459 = vrot.lane.b32.xlu2 %v3458_v49, %s3770_s22 }
  0xca   : > { %v4915_v31 = vsel %vm2044_vm3, %v4474_v20, %v3227_v37  ;;  %v4919_v14 = vsel %vm2044_vm3, %v6224_v41, %v3226_v21  ;;  %v6225_v6 = vunpack.c.l.bf16 %v4501_v62  ;;  %v437_v45 = vunpack.c.l.bf16 %v2782_v16  ;;  %3454 = vrot.lane.b32.xlu1 %v3453_v33, %s3770_s22  ;;  %v6226_v20 = vld [vmem:[#allocation34_spill] sm:$0xff]  ;;  %v6227_v33 = vld [vmem:[#allocation35_spill] sm:$0xff] }
  0xcb   : > { %v3473_v46 = vpack.i.bf16 %v4876_v63, %v4872_v23  ;;  %v3468_v54 = vpack.i.bf16 %v4882_v2, %v4879_v60  ;;  %v1350_v9 = vsel %vm810_vm1, %v1348_v58, %v6226_v20  ;;  %v1352_v53 = vsel %vm810_vm1, %v6226_v20, %v1351_v1  ;;  %v3295_v49 = vpop.permute.xlu2 %3294  ;;  %v6228_v63 = vld [vmem:[#allocation40_spill] sm:$0xff] }
  0xcc   : > { %v1371_v59 = vrot.slane %v6225_v6, 2  ;;  %v4934_v62 = vsel %vm810_vm1, %v1373_v57, %v1374_v26  ;;  %v4937_v11 = vsel %vm810_vm1, %v1374_v26, %v1376_v24  ;;  %v4941_v23 = vsel %vm810_vm1, %v1368_v51, %v6227_v33  ;;  %3449 = vrot.lane.b32.xlu0 %v3448_v42, %s3770_s22  ;;  %v3245_v56 = vpop.permute.xlu1 %3244  ;;  %v2781_v51 = vld [vmem:[%s3808_s17 + $0x9c] sm:$0xe] }
  0xcd   : > { %v1364_v60 = vrot.slane %v6228_v63, 2  ;;  %v3297_v2 = vunpack.i.h.bf16 %v3295_v49  ;;  %v3296_v58 = vunpack.i.l.bf16 %v3295_v49  ;;  %v1363_v1 = vrot.slane %v432_v36, 2  ;;  %v6233_v63 = vld [vmem:[#allocation14_spill] sm:$0xff] }
  0xce   : > { %v6230_v10 = vunpack.c.l.bf16 %v6229_v30  ;;  %v3247_v4 = vunpack.i.h.bf16 %v3245_v56  ;;  %v3246_v61 = vunpack.i.l.bf16 %v3245_v56  ;;  %v4949_v26 = vsel %vm810_vm1, %v6227_v33, %v1371_v59  ;;  %v3240_v21 = vpop.permute.xlu0 %3239  ;;  %v6234_v30 = vld [vmem:[#allocation38_spill] sm:$0xff] }
  0xcf   : > { %v1388_v24 = vrot.slane %v437_v45, 2  ;;  %v4954_v16 = vsel %vm2077_vm4, %v4850_v52, %v3296_v58  ;;  %v4958_v37 = vsel %vm2077_vm4, %v4846_v47, %v3297_v2  ;;  %v6231_v28 = vunpack.c.l.bf16 %v4562_v7  ;;  %v2780_v52 = vld [vmem:[%s3808_s17 + $0x90] sm:$0xe]  ;;  %v6232_v7 = vld [vmem:[#allocation25_spill] sm:$0xff]  ;;  %v2784_v58 = vld [vmem:[%s3808_s17 + $0xc0] sm:$0xe] }
  0xd0   : > { %v1366_v57 = vrot.slane %v6230_v10, 2  ;;  %v4964_v36 = vsel %vm2044_vm3, %v4802_v39, %v3246_v61  ;;  %v4968_v41 = vsel %vm2044_vm3, %v4797_v18, %v3247_v4  ;;  %v3242_v6 = vunpack.i.h.bf16 %v3240_v21 }
  0xd1   : > { %v1391_v42 = vrot.slane %v6231_v28, 2  ;;  %v3241_v59 = vunpack.i.l.bf16 %v3240_v21  ;;  %v3463_v45 = vpack.i.bf16 %v1352_v53, %v1350_v9  ;;  %v1365_v47 = vsel %vm810_vm1, %v1363_v1, %v1364_v60  ;;  %3474 = vrot.lane.b32.xlu2 %v3473_v46, %s3770_s22  ;;  %v6236_v28 = vld [vmem:[#allocation43_spill] sm:$0xff] }
  0xd2   : > { %v1367_v20 = vsel %vm810_vm1, %v1364_v60, %v1366_v57  ;;  %v436_v49 = vunpack.c.l.bf16 %v2781_v51  ;;  %v2036_v33 = vsel %vm2011_vm2, %v6232_v7, %v3181_v12  ;;  %v3197_v39 = vunpack.i.h.bf16 %v4776_v34  ;;  %3469 = vrot.lane.b32.xlu1 %v3468_v54, %s3770_s22 }
  0xd3   : > { %v4978_v2 = vsel %vm2044_vm3, %v6233_v63, %v3242_v6  ;;  %v4982_v18 = vsel %vm2044_vm3, %v4556_v5, %v3241_v59  ;;  %v3196_v9 = vunpack.i.l.bf16 %v4776_v34  ;;  %v3488_v53 = vpack.i.bf16 %v4937_v11, %v4934_v62  ;;  %v3310_v56 = vpop.permute.xlu2 %3309 }
  0xd4   : > { %v3483_v12 = vpack.i.bf16 %v4949_v26, %v4941_v23  ;;  %v435_v60 = vunpack.c.l.bf16 %v2780_v52  ;;  %v3478_v1 = vpack.i.bf16 %v1367_v20, %v1365_v47  ;;  %v4994_v5 = vsel %vm810_vm1, %v1388_v24, %v6234_v30  ;;  %3464 = vrot.lane.b32.xlu0 %v3463_v45, %s3770_s22  ;;  %v3260_v11 = vpop.permute.xlu1 %3259  ;;  %v3069_v20 = vld [vmem:[%s3808_s17 + $0x18] sm:$0xff]  }
  0xd5   : > { %v4998_v46 = vsel %vm810_vm1, %v6234_v30, %v1391_v42  ;;  %v1384_v34 = vrot.slane %v4331_v25, 2  ;;  %v3312_v54 = vunpack.i.h.bf16 %v3310_v56  ;;  %v3311_v62 = vunpack.i.l.bf16 %v3310_v56  ;;  %v6240_v30 = vld [vmem:[#allocation29_spill] sm:$0xff] }
  0xd6   : > { %v1383_v23 = vrot.slane %v436_v49, 2  ;;  %v6235_v10 = vunpack.c.l.bf16 %v4573_v44  ;;  %v3262_v4 = vunpack.i.h.bf16 %v3260_v11  ;;  %v3261_v61 = vunpack.i.l.bf16 %v3260_v11  ;;  %v3255_v51 = vpop.permute.xlu0 %3254 }
  0xd7   : > { %v439_v26 = vunpack.c.l.bf16 %v2784_v58  ;;  %v5006_v24 = vsel %vm2077_vm4, %v4902_v48, %v3311_v62  ;;  %v5010_v25 = vsel %vm2077_vm4, %v4906_v43, %v3312_v54  ;;  %v1378_v21 = vrot.slane %v435_v60, 2  ;;  %v2783_v48 = vld [vmem:[%s3808_s17 + $0xb4] sm:$0xe]  ;;  %v6239_v60 = vld [vmem:[#allocation31_spill] sm:$0xff] }
  0xd8   : > { %v1386_v57 = vrot.slane %v6235_v10, 2  ;;  %v6237_v42 = vunpack.c.l.bf16 %v6236_v28  ;;  %v5015_v44 = vsel %vm2044_vm3, %v2036_v33, %v3261_v61  ;;  %v5019_v59 = vsel %vm2044_vm3, %v4910_v55, %v3262_v4  ;;  %v2817_v10 = vld [vmem:[%s3808_s17 + $0x20] sm:$0x1] }
  0xd9   : > { %v3257_v52 = vunpack.i.h.bf16 %v3255_v51  ;;  %v3256_v45 = vunpack.i.l.bf16 %v3255_v51  ;;  %v1385_v47 = vsel %vm810_vm1, %v1383_v23, %v1384_v34  ;;  %v1399_v49 = vrot.slane %v4361_v8, 2  ;;  %3489 = vrot.lane.b32.xlu2 %v3488_v53, %s3770_s22  ;;  %v6243_v51 = vld [vmem:[#allocation7_spill] sm:$0xff] }
  0xda   : > { %v1381_v6 = vrot.slane %v6237_v42, 2  ;;  %v1387_v43 = vsel %vm810_vm1, %v1384_v34, %v1386_v57  ;;  %v6238_v7 = vunpack.c.l.bf16 %v4654_v35  ;;  %v2043_v33 = vsel %vm2011_vm2, %v6239_v60, %v3197_v39  ;;  %3484 = vrot.lane.b32.xlu1 %v3483_v12, %s3770_s22  ;;  %v6242_v34 = vld [vmem:[#allocation37_spill] sm:$0xff] }
  0xdb   : > { %v5032_v55 = vsel %vm2044_vm3, %v4577_v22, %v3257_v52  ;;  %v5036_v58 = vsel %vm2044_vm3, %v4582_v13, %v3256_v45  ;;  %v1398_v56 = vrot.slane %v439_v26, 2  ;;  %v6241_v8 = vunpack.c.l.bf16 %v6240_v30  ;;  %v3325_v62 = vpop.permute.xlu2 %3324  ;;  %v2833_v42 = vld [vmem:[%s3808_s17 + $0x18] sm:$0xe]  ;;  %v2787_v30 = vld [vmem:[%s3808_s17 + $0x24] sm:$0xff]  }
  0xdc   : > { %v1401_v63 = vrot.slane %v6238_v7, 2  ;;  %v3503_v39 = vpack.i.bf16 %v4998_v46, %v4994_v5  ;;  %v1382_v22 = vsel %vm810_vm1, %v6242_v34, %v1381_v6  ;;  %v438_v54 = vunpack.c.l.bf16 %v2783_v48  ;;  %3479 = vrot.lane.b32.xlu0 %v3478_v1, %s3770_s22  ;;  %v3275_v57 = vpop.permute.xlu1 %3274 }
  0xdd   : > { %v2042_v35 = vsel %vm2011_vm2, %v6241_v8, %v3196_v9  ;;  %v3498_v13 = vpack.i.bf16 %v1387_v43, %v1385_v47  ;;  %v1380_v53 = vsel %vm810_vm1, %v1378_v21, %v6242_v34  ;;  %v2944_v11 = vunpack.c.l.bf16 %v3069_v20 }
  0xde   : > { %v5049_v23 = vunpack.c.h.bf16 %v3069_v20  ;;  %v3327_v9 = vunpack.i.h.bf16 %v3325_v62  ;;  %v3326_v12 = vunpack.i.l.bf16 %v3325_v62  ;;  %v5054_v5 = vsel %vm810_vm1, %v1399_v49, %v1401_v63  ;;  %v3270_v52 = vpop.permute.xlu0 %3269  ;;  %v6248_v63 = vld [vmem:[#allocation21_spill] sm:$0xff] }
  0xdf   : > { %v1394_v46 = vrot.slane %v4364_v50, 2  ;;  %v3277_v4 = vunpack.i.h.bf16 %v3275_v57  ;;  %v3276_v61 = vunpack.i.l.bf16 %v3275_v57  ;;  %v5058_v26 = vsel %vm810_vm1, %v1398_v56, %v1399_v49 }
  0xe0   : > { %v6244_v21 = vunpack.c.l.bf16 %v6243_v51  ;;  %v5065_v1 = vsel %vm2077_vm4, %v4964_v36, %v3326_v12  ;;  %v5069_v6 = vsel %vm2077_vm4, %v4968_v41, %v3327_v9  ;;  %v1393_v50 = vrot.slane %v438_v54, 2  ;;  %v6246_v36 = vld [vmem:[#allocation22_spill] sm:$0xff] }
  0xe1   : > { %v521_v45 = vunpack.c.l.bf16 %v2817_v10  ;;  %v5072_v48 = vsel %vm2044_vm3, %v2042_v35, %v3276_v61  ;;  %v5075_v47 = vsel %vm2044_vm3, %v2043_v33, %v3277_v4  ;;  %v3272_v43 = vunpack.i.h.bf16 %v3270_v52  ;;  %3504 = vrot.lane.b32.xlu2 %v3503_v39, %s3770_s22  ;;  %v5106_v4 = vld [vmem:[%s3808_s17 + $0x50] sm:$0x1] }
  0xe2   : > { %v1396_v28 = vrot.slane %v6244_v21, 2  ;;  %v3271_v20 = vunpack.i.l.bf16 %v3270_v52  ;;  %v6245_v49 = vunpack.i.h.bf16 %v4445_v38  ;;  %v6247_v41 = vunpack.i.l.bf16 %v4445_v38  ;;  %3499 = vrot.lane.b32.xlu1 %v3498_v13, %s3770_s22 }
  0xe3   : > { %v3493_v56 = vpack.i.bf16 %v1382_v22, %v1380_v53  ;;  %v553_v8 = vunpack.c.l.bf16 %v2833_v42  ;;  %v3518_v34 = vpack.i.bf16 %v5049_v23, %v2944_v11  ;;  %v1643_v38 = vrot.slane %v2944_v11, 1  ;;  %v5100_v53 = vld [vmem:[%s3808_s17 + $0x48] sm:$0xff]   ;;  %v3340_v10 = vpop.permute.xlu2 %3339 }
  0xe4   : > { %v2041_v7 = vsel %vm2011_vm2, %v6246_v36, %v6245_v49  ;;  %v2040_v60 = vsel %vm2011_vm2, %v6248_v63, %v6247_v41  ;;  %v3513_v54 = vpack.i.bf16 %v5054_v5, %v5058_v26  ;;  %v1395_v22 = vsel %vm810_vm1, %v1393_v50, %v1394_v46  ;;  %v3290_v5 = vpop.permute.xlu1 %3289  ;;  %v5112_v42 = vld [vmem:[%s3808_s17 + $0x2c] sm:$0x1] }
  0xe5   : > { %v5087_v33 = vsel %vm2044_vm3, %v2041_v7, %v3272_v43  ;;  %v5090_v35 = vsel %vm2044_vm3, %v2040_v60, %v3271_v20  ;;  %v1397_v62 = vsel %vm810_vm1, %v1394_v46, %v1396_v28  ;;  %v475_v9 = vunpack.c.l.bf16 %v2787_v30  ;;  %3494 = vrot.lane.b32.xlu0 %v3493_v56, %s3770_s22  ;;  %v6249_v60 = vld [vmem:[#allocation4_spill] sm:$0xff] }
  0xe6   : > { %v5102_v12 = vunpack.c.h.bf16 %v2787_v30  ;;  %v1836_v39 = vrot.slane %v5049_v23, 2  ;;  %v1838_v57 = vrot.slane %v521_v45, 2  ;;  %v3342_v13 = vunpack.i.h.bf16 %v3340_v10  ;;  %v3285_v43 = vpop.permute.xlu0 %3284  ;;  %v6250_v30 = vld [vmem:[#allocation9_spill] sm:$0xff] }
  0xe7   : > { %v3341_v11 = vunpack.i.l.bf16 %v3340_v10  ;;  %v1835_v61 = vrot.slane %v553_v8, 2  ;;  %v1644_v46 = vrot.slane %v5049_v23, 1  ;;  %v3292_v26 = vunpack.i.h.bf16 %v3290_v5 }
  0xe8   : > { %v3291_v51 = vunpack.i.l.bf16 %v3290_v5  ;;  %v1646_v21 = vrot.slane %v521_v45, 1  ;;  %v2952_v28 = vunpack.c.l.bf16 %v5100_v53  ;;  %v5120_v50 = vsel %vm2077_vm4, %v5019_v59, %v3342_v13 }
  0xe9   : > { %v5116_v52 = vsel %vm2077_vm4, %v5015_v44, %v3341_v11  ;;  %v5123_v20 = vunpack.c.h.bf16 %v5100_v53  ;;  %v525_v23 = vunpack.c.l.bf16 %v5106_v4  ;;  %v5132_v49 = vsel %vm2077_vm4, %v4859_v27, %v3292_v26  ;;  %3519 = vrot.lane.b32.xlu2 %v3518_v34, %s3771_s23 }
  0xea   : > { %v5128_v45 = vsel %vm2077_vm4, %v4863_v29, %v3291_v51  ;;  %v3287_v44 = vunpack.i.h.bf16 %v3285_v43  ;;  %v3286_v36 = vunpack.i.l.bf16 %v3285_v43  ;;  %v3508_v7 = vpack.i.bf16 %v1397_v62, %v1395_v22  ;;  %v2837_v22 = vld [vmem:[%s3808_s17 + $0x48] sm:$0xe]  ;;  %3514 = vrot.lane.b32.xlu1 %v3513_v54, %s3770_s22 }
  0xeb   : > { %v1648_v59 = vrot.slane %v475_v9, 1  ;;  %v1839_v41 = vsel %vm810_vm1, %v1836_v39, %v1838_v57  ;;  %v522_v63 = vunpack.c.l.bf16 %v5112_v42  ;;  %v1837_v27 = vsel %vm810_vm1, %v1835_v61, %v1836_v39  ;;  %v3355_v13 = vpop.permute.xlu2 %3354 }
  0xec   : > { %v5138_v56 = vsel %vm2077_vm4, %v6249_v60, %v3286_v36  ;;  %v5142_v29 = vsel %vm2077_vm4, %v6250_v30, %v3287_v44  ;;  %v1645_v8 = vsel %vm617_vm0, %v1643_v38, %v1644_v46  ;;  %v1647_v62 = vsel %vm617_vm0, %v1644_v46, %v1646_v21  ;;  %v3305_v5 = vpop.permute.xlu1 %3304  ;;  %v2834_v60 = vld [vmem:[%s3808_s17 + $0x24] sm:$0xe] }
  0xed   : > { %v1663_v10 = vrot.slane %v2952_v28, 1  ;;  %v1664_v57 = vrot.slane %v5123_v20, 1  ;;  %v1649_v4 = vrot.slane %v5102_v12, 1  ;;  %v3533_v11 = vpack.i.bf16 %v5102_v12, %v475_v9  ;;  %3509 = vrot.lane.b32.xlu0 %v3508_v7, %s3770_s22 }
  0xee   : > { %v1666_v34 = vrot.slane %v525_v23, 1  ;;  %v3357_v38 = vunpack.i.h.bf16 %v3355_v13  ;;  %v3356_v39 = vunpack.i.l.bf16 %v3355_v13  ;;  %v1651_v54 = vrot.slane %v522_v63, 1  ;;  %v3300_v44 = vpop.permute.xlu0 %3299 }
  0xef   : > { %v557_v61 = vunpack.c.l.bf16 %v2837_v22  ;;  %v3307_v46 = vunpack.i.h.bf16 %v3305_v5  ;;  %v3306_v26 = vunpack.i.l.bf16 %v3305_v5  ;;  %v3528_v51 = vpack.i.bf16 %v1839_v41, %v1837_v27  ;;  %v3073_v22 = vld [vmem:[%s3808_s17 + $0x78] sm:$0xff]  }
  0xf0   : > { %v3523_v21 = vpack.i.bf16 %v1647_v62, %v1645_v8  ;;  %v5160_v43 = vsel %vm2077_vm4, %v5072_v48, %v3356_v39  ;;  %v5164_v9 = vsel %vm2077_vm4, %v5075_v47, %v3357_v38  ;;  %v1665_v36 = vsel %vm617_vm0, %v1663_v10, %v1664_v57  ;;  %v6251_v10 = vld [vmem:[#allocation6_spill] sm:$0xff] }
  0xf1   : > { %v1650_v7 = vsel %vm617_vm0, %v1648_v59, %v1649_v4  ;;  %v5171_v30 = vsel %vm2077_vm4, %v4919_v14, %v3306_v26  ;;  %v5175_v41 = vsel %vm2077_vm4, %v4915_v31, %v3307_v46  ;;  %v3302_v48 = vunpack.i.h.bf16 %v3300_v44  ;;  %v6252_v14 = vld [vmem:[#allocation11_spill] sm:$0xff]  ;;  %3534 = vrot.lane.b32.xlu2 %v3533_v11, %s3771_s23 }
  0xf2   : > { %v3301_v27 = vunpack.i.l.bf16 %v3300_v44  ;;  %v1667_v8 = vsel %vm617_vm0, %v1664_v57, %v1666_v34  ;;  %v1652_v47 = vsel %vm617_vm0, %v1649_v4, %v1651_v54  ;;  %v1855_v62 = vrot.slane %v557_v61, 2  ;;  %3529 = vrot.lane.b32.xlu1 %v3528_v51, %s3772_s24  ;;  %v2825_v61 = vld [vmem:[%s3808_s17 + $0x80] sm:$0x1] }
  0xf3   : > { %v1856_v59 = vrot.slane %v5123_v20, 2  ;;  %v5183_v13 = vsel %vm2077_vm4, %v6251_v10, %v3302_v48  ;;  %v1858_v31 = vrot.slane %v525_v23, 2  ;;  %v554_v39 = vunpack.c.l.bf16 %v2834_v60  ;;  %v3370_v57 = vpop.permute.xlu2 %3369  ;;  %v2841_v48 = vld [vmem:[%s3808_s17 + $0x78] sm:$0xe]  ;;  %v3070_v10 = vld [vmem:[%s3808_s17 + $0x30] sm:$0xff]  }
  0xf4   : > { %v5187_v38 = vsel %vm2077_vm4, %v6252_v14, %v3301_v27  ;;  %v3548_v4 = vpack.i.bf16 %v1667_v8, %v1665_v36  ;;  %v3543_v34 = vpack.i.bf16 %v1652_v47, %v1650_v7  ;;  %v2960_v5 = vunpack.c.l.bf16 %v3073_v22  ;;  %v3320_v11 = vpop.permute.xlu1 %3319 }
  0xf5   : > { %v5191_v54 = vunpack.c.h.bf16 %v3073_v22  ;;  %3524 = vrot.lane.b32.xlu0 %v3523_v21, %s3773_s25  ;;  %v3372_v46 = vunpack.i.h.bf16 %v3370_v57  ;;  %v3371_v26 = vunpack.i.l.bf16 %v3370_v57  ;;  %v1857_v23 = vsel %vm810_vm1, %v1855_v62, %v1856_v59 }
  0xf6   : > { %v1841_v44 = vrot.slane %v5102_v12, 2  ;;  %v3322_v51 = vunpack.i.h.bf16 %v3320_v11  ;;  %v3321_v60 = vunpack.i.l.bf16 %v3320_v11  ;;  %v1859_v36 = vsel %vm810_vm1, %v1856_v59, %v1858_v31  ;;  %v3315_v8 = vpop.permute.xlu0 %3314 }
  0xf7   : > { %v1840_v7 = vrot.slane %v554_v39, 2  ;;  %v5201_v27 = vsel %vm2110_vm5, %v5128_v45, %v3371_v26  ;;  %v5205_v21 = vsel %vm2110_vm5, %v5132_v49, %v3372_v46  ;;  %v1843_v47 = vrot.slane %v522_v63, 2  ;;  %v5235_v39 = vld [vmem:[%s3808_s17 + $0x54] sm:$0xff]   ;;  %v5241_v26 = vld [vmem:[%s3808_s17 + $0x5c] sm:$0x1] }
  0xf8   : > { %v529_v12 = vunpack.c.l.bf16 %v2825_v61  ;;  %v5211_v22 = vsel %vm2077_vm4, %v4982_v18, %v3321_v60  ;;  %v5215_v62 = vsel %vm2077_vm4, %v4978_v2, %v3322_v51  ;;  %v3317_v45 = vunpack.i.h.bf16 %v3315_v8  ;;  %v6253_v18 = vld [vmem:[#allocation10_spill] sm:$0xff] }
  0xf9   : > { %v3316_v59 = vunpack.i.l.bf16 %v3315_v8  ;;  %v3538_v49 = vpack.i.bf16 %v5123_v20, %v2952_v28  ;;  %v561_v14 = vunpack.c.l.bf16 %v2841_v48  ;;  %3549 = vrot.lane.b32.xlu2 %v3548_v4, %s3773_s25  ;;  %v3563_v2 = vpack.i.bf16 %v5191_v54, %v2960_v5  ;;  %v5250_v48 = vld [vmem:[%s3808_s17 + $0x38] sm:$0x1] }
  0xfa   : > { %v5223_v42 = vsel %vm2077_vm4, %v4703_v40, %v3317_v45  ;;  %3544 = vrot.lane.b32.xlu1 %v3543_v34, %s3773_s25  ;;  %v1683_v53 = vrot.slane %v2960_v5, 1  ;;  %v3558_v31 = vpack.i.bf16 %v1859_v36, %v1857_v23  ;;  %v1842_v28 = vsel %vm810_vm1, %v1840_v7, %v1841_v44 }
  0xfb   : > { %v5227_v63 = vsel %vm2077_vm4, %v6253_v18, %v3316_v59  ;;  %v1844_v20 = vsel %vm810_vm1, %v1841_v44, %v1843_v47  ;;  %v3385_v40 = vpop.permute.xlu2 %3384  ;;  %v2948_v57 = vunpack.c.l.bf16 %v3070_v10  ;;  %v5237_v61 = vunpack.c.h.bf16 %v3070_v10 }
  0xfc   : > { %v1876_v46 = vrot.slane %v5191_v54, 2  ;;  %v1878_v4 = vrot.slane %v529_v12, 2  ;;  %v3387_v34 = vunpack.i.h.bf16 %v3385_v40  ;;  %v3386_v5 = vunpack.i.l.bf16 %v3385_v40  ;;  %v3335_v11 = vpop.permute.xlu1 %3334 }
  0xfd   : > { %3539 = vrot.lane.b32.xlu0 %v3538_v49, %s3771_s23  ;;  %v1875_v23 = vrot.slane %v561_v14, 2  ;;  %v1684_v44 = vrot.slane %v5191_v54, 1  ;;  %v3337_v51 = vunpack.i.h.bf16 %v3335_v11  ;;  %v3336_v60 = vunpack.i.l.bf16 %v3335_v11  ;;  %v2838_v11 = vld [vmem:[%s3808_s17 + $0x54] sm:$0xe] }
  0xfe   : > { %v483_v36 = vunpack.c.l.bf16 %v5235_v39  ;;  %v5247_v7 = vunpack.c.h.bf16 %v5235_v39  ;;  %v5254_v8 = vsel %vm2110_vm5, %v5171_v30, %v3386_v5  ;;  %v5258_v47 = vsel %vm2110_vm5, %v5175_v41, %v3387_v34  ;;  %v3330_v45 = vpop.permute.xlu0 %3329 }
  0xff   : > { %v1686_v59 = vrot.slane %v529_v12, 1  ;;  %v526_v54 = vunpack.c.l.bf16 %v5241_v26  ;;  %v5263_v49 = vsel %vm2077_vm4, %v5036_v58, %v3336_v60  ;;  %v5267_v10 = vsel %vm2077_vm4, %v5032_v55, %v3337_v51 }
 0x100   : > { %v3332_v14 = vunpack.i.h.bf16 %v3330_v45  ;;  %v3331_v18 = vunpack.i.l.bf16 %v3330_v45  ;;  %v3553_v30 = vpack.i.bf16 %v1844_v20, %v1842_v28  ;;  %v523_v40 = vunpack.c.l.bf16 %v5250_v48 }
 0x101   : > { %3564 = vrot.lane.b32.xlu2 %v3563_v2, %s3771_s23  ;;  %v1668_v55 = vrot.slane %v483_v36, 1  ;;  %v1669_v58 = vrot.slane %v5247_v7, 1  ;;  %v1877_v28 = vsel %vm810_vm1, %v1875_v23, %v1876_v46  ;;  %v1879_v20 = vsel %vm810_vm1, %v1876_v46, %v1878_v4 }
 0x102   : > { %v5272_v41 = vsel %vm2077_vm4, %v4771_v0, %v3332_v14  ;;  %v5276_v12 = vsel %vm2077_vm4, %v4774_v3, %v3331_v18  ;;  %3559 = vrot.lane.b32.xlu1 %v3558_v31, %s3772_s24  ;;  %v1671_v26 = vrot.slane %v526_v54, 1  ;;  %v3578_v34 = vpack.i.bf16 %v5237_v61, %v2948_v57 }
 0x103   : > { %v3400_v0 = vpop.permute.xlu2 %3399  ;;  %v1653_v5 = vrot.slane %v2948_v57, 1  ;;  %v1685_v3 = vsel %vm617_vm0, %v1683_v53, %v1684_v44  ;;  %v1687_v2 = vsel %vm617_vm0, %v1684_v44, %v1686_v59  ;;  %v1654_v23 = vrot.slane %v5237_v61, 1 }
 0x104   : > { %v3402_v51 = vunpack.i.h.bf16 %v3400_v0  ;;  %v3401_v60 = vunpack.i.l.bf16 %v3400_v0  ;;  %v3350_v31 = vpop.permute.xlu1 %3349  ;;  %v1656_v46 = vrot.slane %v523_v40, 1  ;;  %v3573_v57 = vpack.i.bf16 %v1879_v20, %v1877_v28  ;;  %v2835_v0 = vld [vmem:[%s3808_s17 + $0x30] sm:$0xe] }
 0x105   : > { %3554 = vrot.lane.b32.xlu0 %v3553_v30, %s3772_s24  ;;  %v3352_v4 = vunpack.i.h.bf16 %v3350_v31  ;;  %v3351_v45 = vunpack.i.l.bf16 %v3350_v31  ;;  %v1670_v53 = vsel %vm617_vm0, %v1668_v55, %v1669_v58  ;;  %v1672_v18 = vsel %vm617_vm0, %v1669_v58, %v1671_v26 }
 0x106   : > { %v5296_v44 = vsel %vm2110_vm5, %v5211_v22, %v3401_v60  ;;  %v5300_v59 = vsel %vm2110_vm5, %v5215_v62, %v3402_v51  ;;  %v3345_v14 = vpop.permute.xlu0 %3344  ;;  %v558_v30 = vunpack.c.l.bf16 %v2838_v11  ;;  %v3568_v20 = vpack.i.bf16 %v1687_v2, %v1685_v3  ;;  %v2803_v60 = vld [vmem:[%s3808_s17 + $0x84] sm:$0xff]  }
 0x107   : > { %v5306_v31 = vsel %vm2077_vm4, %v5090_v35, %v3351_v45  ;;  %v5310_v55 = vsel %vm2077_vm4, %v5087_v33, %v3352_v4  ;;  %v3347_v28 = vunpack.i.h.bf16 %v3345_v14  ;;  %v3346_v22 = vunpack.i.l.bf16 %v3345_v14 }
 0x108   : > { %v1655_v62 = vsel %vm617_vm0, %v1653_v5, %v1654_v23  ;;  %v1657_v51 = vsel %vm617_vm0, %v1654_v23, %v1656_v46  ;;  %v555_v33 = vunpack.c.l.bf16 %v2835_v0  ;;  %v3593_v26 = vpack.i.bf16 %v1672_v18, %v1670_v53  ;;  %v5328_v46 = vld [vmem:[%s3808_s17 + $0xa8] sm:$0xff]  }
 0x109   : > { %v5317_v58 = vsel %vm2077_vm4, %v4836_v17, %v3347_v28  ;;  %v5321_v35 = vsel %vm2077_vm4, %v4839_v19, %v3346_v22  ;;  %3579 = vrot.lane.b32.xlu2 %v3578_v34, %s3771_s23  ;;  %v3588_v2 = vpack.i.bf16 %v1657_v51, %v1655_v62  ;;  %v491_v5 = vunpack.c.l.bf16 %v2803_v60  ;;  %v5348_v62 = vld [vmem:[%s3808_s17 + $0x8c] sm:$0x1] }
 0x10a   : > { %3574 = vrot.lane.b32.xlu1 %v3573_v57, %s3772_s24  ;;  %v5325_v11 = vunpack.c.h.bf16 %v2803_v60  ;;  %v1860_v23 = vrot.slane %v558_v30, 2  ;;  %v1861_v34 = vrot.slane %v5247_v7, 2  ;;  %v1863_v45 = vrot.slane %v526_v54, 2  ;;  %v5345_v54 = vld [vmem:[%s3808_s17 + $0xb0] sm:$0x1] }
 0x10b   : > { %v3415_v3 = vpop.permute.xlu2 %3414  ;;  %v1845_v14 = vrot.slane %v555_v33, 2  ;;  %v1846_v18 = vrot.slane %v5237_v61, 2  ;;  %v1848_v22 = vrot.slane %v523_v40, 2  ;;  %v3583_v48 = vpack.i.bf16 %v5247_v7, %v483_v36 }
 0x10c   : > { %v3417_v17 = vunpack.i.h.bf16 %v3415_v3  ;;  %v3416_v19 = vunpack.i.l.bf16 %v3415_v3  ;;  %v3365_v4 = vpop.permute.xlu1 %3364  ;;  %v5362_v40 = vunpack.c.h.bf16 %v5328_v46  ;;  %v530_v33 = vunpack.c.l.bf16 %v5348_v62 }
 0x10d   : > { %3569 = vrot.lane.b32.xlu0 %v3568_v20, %s3773_s25  ;;  %v3367_v57 = vunpack.i.h.bf16 %v3365_v4  ;;  %v3366_v53 = vunpack.i.l.bf16 %v3365_v4  ;;  %v2968_v20 = vunpack.c.l.bf16 %v5328_v46  ;;  %v3608_v39 = vpack.i.bf16 %v5325_v11, %v491_v5 }
 0x10e   : > { %v5335_v30 = vsel %vm2110_vm5, %v5263_v49, %v3416_v19  ;;  %v5339_v0 = vsel %vm2110_vm5, %v5267_v10, %v3417_v17  ;;  %v3360_v28 = vpop.permute.xlu0 %3359  ;;  %v1688_v36 = vrot.slane %v491_v5, 1  ;;  %v1862_v7 = vsel %vm810_vm1, %v1860_v23, %v1861_v34 }
 0x10f   : > { %v5352_v61 = vsel %vm2110_vm5, %v5138_v56, %v3366_v53  ;;  %v5356_v49 = vsel %vm2110_vm5, %v5142_v29, %v3367_v57  ;;  %v3362_v10 = vunpack.i.h.bf16 %v3360_v28  ;;  %v3361_v51 = vunpack.i.l.bf16 %v3360_v28 }
 0x110   : > { %v533_v29 = vunpack.c.l.bf16 %v5345_v54  ;;  %v1864_v3 = vsel %vm810_vm1, %v1861_v34, %v1863_v45  ;;  %v1849_v46 = vsel %vm810_vm1, %v1846_v18, %v1848_v22  ;;  %v1689_v5 = vrot.slane %v5325_v11, 1  ;;  %v2845_v34 = vld [vmem:[%s3808_s17 + $0xa8] sm:$0xe] }
 0x111   : > { %v5366_v60 = vsel %vm2110_vm5, %v4893_v32, %v3361_v51  ;;  %v5370_v56 = vsel %vm2110_vm5, %v4897_v15, %v3362_v10  ;;  %3594 = vrot.lane.b32.xlu2 %v3593_v26, %s3773_s25  ;;  %v1847_v15 = vsel %vm810_vm1, %v1845_v14, %v1846_v18  ;;  %v1703_v26 = vrot.slane %v2968_v20, 1 }
 0x112   : > { %3589 = vrot.lane.b32.xlu1 %v3588_v2, %s3773_s25  ;;  %v1704_v2 = vrot.slane %v5362_v40, 1  ;;  %v1706_v53 = vrot.slane %v533_v29, 1  ;;  %v1691_v28 = vrot.slane %v530_v33, 1  ;;  %v3603_v22 = vpack.i.bf16 %v1864_v3, %v1862_v7 }
 0x113   : > { %v3430_v32 = vpop.permute.xlu2 %3429 }
 0x114   : > { %v3432_v17 = vunpack.i.h.bf16 %v3430_v32  ;;  %v3431_v19 = vunpack.i.l.bf16 %v3430_v32  ;;  %v3380_v4 = vpop.permute.xlu1 %3379  ;;  %v1705_v32 = vsel %vm617_vm0, %v1703_v26, %v1704_v2  ;;  %v1692_v3 = vsel %vm617_vm0, %v1689_v5, %v1691_v28  ;;  %v5429_v28 = vld [vmem:[%s3808_s17 + $0x44] sm:$0x1] }
 0x115   : > { %3584 = vrot.lane.b32.xlu0 %v3583_v48, %s3771_s23  ;;  %v3382_v23 = vunpack.i.h.bf16 %v3380_v4  ;;  %v3381_v57 = vunpack.i.l.bf16 %v3380_v4  ;;  %v2842_v48 = vld [vmem:[%s3808_s17 + $0x84] sm:$0xe] }
 0x116   : > { %v5387_v45 = vsel %vm2110_vm5, %v5306_v31, %v3431_v19  ;;  %v5391_v14 = vsel %vm2110_vm5, %v5310_v55, %v3432_v17  ;;  %v3375_v18 = vpop.permute.xlu0 %3374  ;;  %v3598_v31 = vpack.i.bf16 %v1849_v46, %v1847_v15  ;;  %v1690_v55 = vsel %vm617_vm0, %v1688_v36, %v1689_v5  ;;  %v5419_v46 = vld [vmem:[%s3808_s17 + $0x60] sm:$0xff]  }
 0x117   : > { %v5395_v54 = vsel %vm2110_vm5, %v5187_v38, %v3381_v57  ;;  %v5399_v62 = vsel %vm2110_vm5, %v5183_v13, %v3382_v23  ;;  %v3377_v10 = vunpack.i.h.bf16 %v3375_v18  ;;  %v3376_v51 = vunpack.i.l.bf16 %v3375_v18  ;;  %v2791_v19 = vld [vmem:[%s3808_s17 + $0x3c] sm:$0xff]  }
 0x118   : > { %v565_v17 = vunpack.c.l.bf16 %v2845_v34  ;;  %v1707_v13 = vsel %vm617_vm0, %v1704_v2, %v1706_v53  ;;  %v562_v36 = vunpack.c.l.bf16 %v2842_v48  ;;  %v3618_v26 = vpack.i.bf16 %v1692_v3, %v1690_v55  ;;  %v5426_v53 = vld [vmem:[%s3808_s17 + $0x68] sm:$0x1] }
 0x119   : > { %v5406_v7 = vsel %vm2110_vm5, %v4958_v37, %v3377_v10  ;;  %v5410_v38 = vsel %vm2110_vm5, %v4954_v16, %v3376_v51  ;;  %3609 = vrot.lane.b32.xlu2 %v3608_v39, %s3771_s23  ;;  %v3623_v16 = vpack.i.bf16 %v1707_v13, %v1705_v32  ;;  %v3613_v39 = vpack.i.bf16 %v5362_v40, %v2968_v20 }
 0x11a   : > { %3604 = vrot.lane.b32.xlu1 %v3603_v22, %s3772_s24  ;;  %v1895_v4 = vrot.slane %v565_v17, 2  ;;  %v1896_v23 = vrot.slane %v5362_v40, 2  ;;  %v1898_v57 = vrot.slane %v533_v29, 2  ;;  %v1880_v18 = vrot.slane %v562_v36, 2 }
 0x11b   : > { %v5416_v15 = vpop.permute.xlu2 %3444  ;;  %v1881_v22 = vrot.slane %v5325_v11, 2  ;;  %v1883_v10 = vrot.slane %v530_v33, 2  ;;  %v6095_v51 = vunpack.c.l.bf16 %v5419_v46  ;;  %v5442_v32 = vunpack.c.h.bf16 %v5419_v46 }
 0x11c   : > { %v3395_v37 = vpop.permute.xlu1 %3394  ;;  %v527_v11 = vunpack.c.l.bf16 %v5426_v53  ;;  %v524_v33 = vunpack.c.l.bf16 %v5429_v28  ;;  %v1897_v13 = vsel %vm810_vm1, %v1895_v4, %v1896_v23  ;;  %v1899_v36 = vsel %vm810_vm1, %v1896_v23, %v1898_v57 }
 0x11d   : > { %3599 = vrot.lane.b32.xlu0 %v3598_v31, %s3772_s24  ;;  %v3397_v2 = vunpack.i.h.bf16 %v3395_v37  ;;  %v3396_v5 = vunpack.i.l.bf16 %v3395_v37  ;;  %v479_v31 = vunpack.c.l.bf16 %v2791_v19  ;;  %v1884_v37 = vsel %vm810_vm1, %v1881_v22, %v1883_v10  ;;  %v2836_v10 = vld [vmem:[%s3808_s17 + $0x3c] sm:$0xe] }
 0x11e   : > { %v3390_v34 = vpop.permute.xlu0 %3389 }
 0x11f   : > { %v5435_v20 = vsel %vm2110_vm5, %v5227_v63, %v3396_v5  ;;  %v5439_v48 = vsel %vm2110_vm5, %v5223_v42, %v3397_v2  ;;  %v3392_v40 = vunpack.i.h.bf16 %v3390_v34  ;;  %v3391_v29 = vunpack.i.l.bf16 %v3390_v34 }
 0x120   : > { %v5455_v42 = vunpack.c.h.bf16 %v2791_v19  ;;  %v1658_v17 = vrot.slane %v479_v31, 1  ;;  %v1676_v2 = vrot.slane %v527_v11, 1  ;;  %v1661_v5 = vrot.slane %v524_v33, 1 }
 0x121   : > { %v5448_v55 = vsel %vm2110_vm5, %v5006_v24, %v3391_v29  ;;  %v5452_v63 = vsel %vm2110_vm5, %v5010_v25, %v3392_v40  ;;  %3624 = vrot.lane.b32.xlu2 %v3623_v16, %s3773_s25  ;;  %v1882_v24 = vsel %vm810_vm1, %v1880_v18, %v1881_v22  ;;  %v1673_v25 = vrot.slane %v6095_v51, 1  ;;  %v2839_v16 = vld [vmem:[%s3808_s17 + $0x60] sm:$0xe] }
 0x122   : > { %3619 = vrot.lane.b32.xlu1 %v3618_v26, %s3773_s25  ;;  %v1674_v26 = vrot.slane %v5442_v32, 1  ;;  %v1659_v4 = vrot.slane %v5455_v42, 1  ;;  %v3638_v57 = vpack.i.bf16 %v5455_v42, %v479_v31  ;;  %v3633_v34 = vpack.i.bf16 %v1899_v36, %v1897_v13 }
 0x123   : > { %v5459_v3 = vpop.permute.xlu2 %3459  ;;  %v3628_v18 = vpack.i.bf16 %v1884_v37, %v1882_v24  ;;  %v559_v22 = vunpack.c.l.bf16 %v2839_v16 }
 0x124   : > { %v3410_v19 = vpop.permute.xlu1 %3409  ;;  %v1677_v31 = vsel %vm617_vm0, %v1674_v26, %v1676_v2  ;;  %v1660_v13 = vsel %vm617_vm0, %v1658_v17, %v1659_v4  ;;  %v1662_v36 = vsel %vm617_vm0, %v1659_v4, %v1661_v5  ;;  %v3074_v4 = vld [vmem:[%s3808_s17 + $0x90] sm:$0xff]   ;;  %v1868_v5 = vrot.slane %v527_v11, 2 }
 0x125   : > { %3614 = vrot.lane.b32.xlu0 %v3613_v39, %s3771_s23  ;;  %v3412_v53 = vunpack.i.h.bf16 %v3410_v19  ;;  %v3411_v23 = vunpack.i.l.bf16 %v3410_v19  ;;  %v1675_v19 = vsel %vm617_vm0, %v1673_v25, %v1674_v26  ;;  %v3648_v17 = vpack.i.bf16 %v1662_v36, %v1660_v13 }
 0x126   : > { %v3405_v28 = vpop.permute.xlu0 %3404  ;;  %v3653_v25 = vpack.i.bf16 %v1677_v31, %v1675_v19  ;;  %v1865_v16 = vrot.slane %v559_v22, 2  ;;  %v5505_v22 = vld [vmem:[%s3808_s17 + $0x98] sm:$0x1]  ;;  %v6255_v36 = vunpack.c.l.bf16 %v5419_v46 }
 0x127   : > { %v5474_v40 = vsel %vm2110_vm5, %v5276_v12, %v3411_v23  ;;  %v5478_v39 = vsel %vm2110_vm5, %v5272_v41, %v3412_v53  ;;  %v3407_v29 = vunpack.i.h.bf16 %v3405_v28  ;;  %v3406_v51 = vunpack.i.l.bf16 %v3405_v28 }
 0x128   : > { %v556_v12 = vunpack.c.l.bf16 %v2836_v10  ;;  %v1851_v53 = vrot.slane %v5455_v42, 2  ;;  %v5502_v10 = vld [vmem:[%s3808_s17 + $0xbc] sm:$0x1] }
 0x129   : > { %v5486_v24 = vsel %vm2110_vm5, %v5065_v1, %v3406_v51  ;;  %v5490_v41 = vsel %vm2110_vm5, %v5069_v6, %v3407_v29  ;;  %3639 = vrot.lane.b32.xlu2 %v3638_v57, %s3771_s23  ;;  %v1866_v1 = vrot.slane %v5442_v32, 2  ;;  %v5496_v51 = vld [vmem:[%s3808_s17 + $0xb4] sm:$0xff]  }
 0x12a   : > { %3634 = vrot.lane.b32.xlu1 %v3633_v34, %s3772_s24  ;;  %v1850_v28 = vrot.slane %v556_v12, 2  ;;  %v1853_v34 = vrot.slane %v524_v33, 2  ;;  %v499_v11 = vunpack.c.l.bf16 %v5496_v51  ;;  %v5517_v42 = vunpack.c.h.bf16 %v5496_v51 }
 0x12b   : > { %v3475_v37 = vpop.permute.xlu2 %3474  ;;  %v2964_v12 = vunpack.c.l.bf16 %v3074_v4  ;;  %v6096_v51 = vunpack.c.l.bf16 %v5505_v22 }
 0x12c   : > { %v3477_v6 = vunpack.i.h.bf16 %v3475_v37  ;;  %v3476_v26 = vunpack.i.l.bf16 %v3475_v37  ;;  %v3425_v2 = vpop.permute.xlu1 %3424  ;;  %v534_v37 = vunpack.c.l.bf16 %v5502_v10 }
 0x12d   : > { %3629 = vrot.lane.b32.xlu0 %v3628_v18, %s3772_s24  ;;  %v3427_v23 = vunpack.i.h.bf16 %v3425_v2  ;;  %v3426_v57 = vunpack.i.l.bf16 %v3425_v2  ;;  %v1693_v46 = vrot.slane %v2964_v12, 1  ;;  %v1852_v2 = vsel %vm810_vm1, %v1850_v28, %v1851_v53 }
 0x12e   : > { %v5509_v29 = vsel %vm2143_vm6, %v5435_v20, %v3476_v26  ;;  %v5513_v18 = vsel %vm2143_vm6, %v5439_v48, %v3477_v6  ;;  %v3420_v19 = vpop.permute.xlu0 %3419  ;;  %v3643_v48 = vpack.i.bf16 %v5442_v32, %v6255_v36  ;;  %v1867_v32 = vsel %vm810_vm1, %v1865_v16, %v1866_v1 }
 0x12f   : > { %6254 = vst [vmem:[#allocation28_spill] sm:$0xff] %v5513_v18  ;;  %v5521_v33 = vsel %vm2110_vm5, %v5321_v35, %v3426_v57  ;;  %v5525_v31 = vsel %vm2110_vm5, %v5317_v58, %v3427_v23  ;;  %v3422_v20 = vunpack.i.h.bf16 %v3420_v19  ;;  %v3421_v13 = vunpack.i.l.bf16 %v3420_v19 }
 0x130   : > { %v5541_v58 = vunpack.c.h.bf16 %v3074_v4  ;;  %v1869_v26 = vsel %vm810_vm1, %v1866_v1, %v1868_v5  ;;  %v1708_v57 = vrot.slane %v499_v11, 1  ;;  %v1711_v16 = vrot.slane %v534_v37, 1 }
 0x131   : > { %v5534_v6 = vsel %vm2110_vm5, %v5116_v52, %v3421_v13  ;;  %v5538_v35 = vsel %vm2110_vm5, %v5120_v50, %v3422_v20  ;;  %3654 = vrot.lane.b32.xlu2 %v3653_v25, %s3773_s25  ;;  %v1854_v52 = vsel %vm810_vm1, %v1851_v53, %v1853_v34  ;;  %v1709_v50 = vrot.slane %v5517_v42, 1 }
 0x132   : > { %3649 = vrot.lane.b32.xlu1 %v3648_v17, %s3773_s25  ;;  %v1694_v25 = vrot.slane %v5541_v58, 1  ;;  %v1696_v1 = vrot.slane %v6096_v51, 1  ;;  %v3668_v5 = vpack.i.bf16 %v5541_v58, %v2964_v12  ;;  %v3663_v19 = vpack.i.bf16 %v1869_v26, %v1867_v32  ;;  %v5579_v32 = vld [vmem:[%s3808_s17 + $0x6c] sm:$0xff]  }
 0x133   : > { %v3490_v23 = vpop.permute.xlu2 %3489  ;;  %v3658_v36 = vpack.i.bf16 %v1854_v52, %v1852_v2  ;;  %v1712_v12 = vsel %vm617_vm0, %v1709_v50, %v1711_v16  ;;  %v2843_v2 = vld [vmem:[%s3808_s17 + $0x90] sm:$0xe]  ;;  %v1901_v16 = vrot.slane %v5517_v42, 2 }
 0x134   : > { %v3492_v4 = vunpack.i.h.bf16 %v3490_v23  ;;  %v3491_v17 = vunpack.i.l.bf16 %v3490_v23  ;;  %v5551_v10 = vpop.permute.xlu1 %3439  ;;  %v1710_v23 = vsel %vm617_vm0, %v1708_v57, %v1709_v50  ;;  %v1695_v51 = vsel %vm617_vm0, %v1693_v46, %v1694_v25 }
 0x135   : > { %3644 = vrot.lane.b32.xlu0 %v3643_v48, %s3771_s23  ;;  %v2846_v48 = vld [vmem:[%s3808_s17 + $0xb4] sm:$0xe]  ;;  %v3683_v46 = vpack.i.bf16 %v1712_v12, %v1710_v23  ;;  %v3673_v50 = vpack.i.bf16 %v5517_v42, %v499_v11 }
 0x136   : > { %v5558_v53 = vsel %vm2143_vm6, %v5474_v40, %v3491_v17  ;;  %v5562_v28 = vsel %vm2143_vm6, %v5478_v39, %v3492_v4  ;;  %v3435_v34 = vpop.permute.xlu0 %3434  ;;  %v1697_v40 = vsel %vm617_vm0, %v1694_v25, %v1696_v1  ;;  %v566_v26 = vunpack.c.l.bf16 %v2846_v48  ;;  %v2295_v1 = vld [vmem:[%s6015_s1 + $0x10] sm:$0x3] }
 0x137   : > { %v3437_v20 = vunpack.i.h.bf16 %v3435_v34  ;;  %v3436_v13 = vunpack.i.l.bf16 %v3435_v34  ;;  %v3678_v57 = vpack.i.bf16 %v1697_v40, %v1695_v51  ;;  %v1903_v51 = vrot.slane %v534_v37, 2  ;;  %v2824_v40 = vld [vmem:[%s3808_s17 + $0x74] sm:$0x1] }
 0x138   : > { %v2305_v42 = vunpack.c.l.b16 %v2295_v1 }
 0x139   : > { %v5571_v17 = vsel %vm2110_vm5, %v5160_v43, %v3436_v13  ;;  %v5575_v39 = vsel %vm2110_vm5, %v5164_v9, %v3437_v20  ;;  %3669 = vrot.lane.b32.xlu2 %v3668_v5, %s3771_s23  ;;  %v487_v9 = vunpack.c.l.bf16 %v5579_v32 }
 0x13a   : > { %3664 = vrot.lane.b32.xlu1 %v3663_v19, %s3772_s24  ;;  %v563_v19 = vunpack.c.l.bf16 %v2843_v2  ;;  %v5609_v2 = vunpack.c.h.bf16 %v5579_v32  ;;  %v528_v32 = vunpack.c.l.bf16 %v2824_v40 }
 0x13b   : > { %v3505_v52 = vpop.permute.xlu2 %3504 }
 0x13c   : > { %v3507_v43 = vunpack.i.h.bf16 %v3505_v52  ;;  %v3506_v25 = vunpack.i.l.bf16 %v3505_v52  ;;  %v3455_v4 = vpop.permute.xlu1 %3454  ;;  %v2308_v52 = vpack.c.b16 %v2305_v42, %v2305_v42  ;;  %v1871_v42 = vrot.slane %v5609_v2, 2 }
 0x13d   : > { %3659 = vrot.lane.b32.xlu0 %v3658_v36, %s3772_s24  ;;  %v3457_v5 = vunpack.i.h.bf16 %v3455_v4  ;;  %v3456_v34 = vunpack.i.l.bf16 %v3455_v4  ;;  %v1900_v36 = vrot.slane %v566_v26, 2 }
 0x13e   : > { %v5592_v11 = vsel %vm2143_vm6, %v5521_v33, %v3506_v25  ;;  %v5596_v20 = vsel %vm2143_vm6, %v5525_v31, %v3507_v43  ;;  %v3450_v13 = vpop.permute.xlu0 %3449  ;;  %v2840_v33 = vld [vmem:[%s3808_s17 + $0x6c] sm:$0xe]  ;;  %v1886_v31 = vrot.slane %v5541_v58, 2  ;;  %v6256_v43 = vunpack.c.l.bf16 %v5505_v22 }
 0x13f   : > { %v5600_v48 = vsel %vm2143_vm6, %v5410_v38, %v3456_v34  ;;  %v5604_v23 = vsel %vm2143_vm6, %v5406_v7, %v3457_v5  ;;  %v3452_v37 = vunpack.i.h.bf16 %v3450_v13  ;;  %v3451_v12 = vunpack.i.l.bf16 %v3450_v13 }
 0x140   : > { %v1885_v7 = vrot.slane %v563_v19, 2  ;;  %v1888_v25 = vrot.slane %v6256_v43, 2  ;;  %v560_v58 = vunpack.c.l.bf16 %v2840_v33  ;;  %v2362_v4 = vsel %vm2360_vm7, %v2308_v52, 0 }
 0x141   : > { %v5614_v26 = vsel %vm2143_vm6, %v5201_v27, %v3451_v12  ;;  %v5618_v38 = vsel %vm2143_vm6, %v5205_v21, %v3452_v37  ;;  %3684 = vrot.lane.b32.xlu2 %v3683_v46, %s3773_s25  ;;  %v1902_v27 = vsel %vm810_vm1, %v1900_v36, %v1901_v16  ;;  %v1904_v5 = vsel %vm810_vm1, %v1901_v16, %v1903_v51  ;;  %v2877_v46 = vld [vmem:[%s6015_s1 + $0x8] sm:$0xff]  ;;  %v2807_v51 = vld [vmem:[%s3808_s17 + $0x9c] sm:$0xff]  }
 0x142   : > { %3679 = vrot.lane.b32.xlu1 %v3678_v57, %s3773_s25  ;;  %2369 = vmatpush.bf16.msra.mxu0 %v2362_v4  ;;  %v3698_v22 = vpack.i.bf16 %v5609_v2, %v487_v9  ;;  %v1887_v19 = vsel %vm810_vm1, %v1885_v7, %v1886_v31  ;;  %v1889_v16 = vsel %vm810_vm1, %v1886_v31, %v1888_v25  ;;  %v1870_v36 = vrot.slane %v560_v58, 2  ;;  %v5646_v31 = vld [vmem:[%s3808_s17 + $0xc0] sm:$0xff]   ;;  %v5649_v7 = vld [vmem:[%s3808_s17 + $0xc8] sm:$0x1] }
 0x143   : > { %v5624_v1 = vpop.permute.xlu2 %3519  ;;  %3092 = vmatpush.bf16.msra.mxu1 %v2362_v4  ;;  %3093 = vmatpush.bf16.msra.mxu2 %v2362_v4  ;;  %v1873_v37 = vrot.slane %v528_v32, 2  ;;  %v1678_v43 = vrot.slane %v487_v9, 1  ;;  %v3688_v25 = vpack.i.bf16 %v1889_v16, %v1887_v19  ;;  %v495_v58 = vunpack.c.l.bf16 %v2807_v51 }
 0x144   : > { %v3470_v21 = vpop.permute.xlu1 %3469  ;;  %3094 = vmatpush.bf16.msra.mxu3 %v2362_v4  ;;  %v5651_v4 = vunpack.c.h.bf16 %v2807_v51  ;;  %v1679_v9 = vrot.slane %v5609_v2, 1  ;;  %v1872_v19 = vsel %vm810_vm1, %v1870_v36, %v1871_v42 }
 0x145   : > { %3674 = vrot.lane.b32.xlu0 %v3673_v50, %s3771_s23  ;;  %v3472_v57 = vunpack.i.h.bf16 %v3470_v21  ;;  %v3471_v34 = vunpack.i.l.bf16 %v3470_v21  ;;  %v3693_v50 = vpack.i.bf16 %v1904_v5, %v1902_v27  ;;  %v5654_v27 = vld [vmem:[%s3808_s17 + $0xa4] sm:$0x1]  ;;  %v1681_v21 = vrot.slane %v528_v32, 1 }
 0x146   : > { %v3465_v13 = vpop.permute.xlu0 %3464  ;;  %2370 = vmatpush.bf16.msra.mxu0 %v2877_v46  ;;  %v532_v16 = vunpack.c.l.bf16 %v5654_v27  ;;  %v3713_v32 = vpack.i.bf16 %v5651_v4, %v495_v58  ;;  %v2847_v27 = vld [vmem:[%s3808_s17 + $0xc0] sm:$0xe] }
 0x147   : > { %v5639_v12 = vsel %vm2143_vm6, %v5448_v55, %v3471_v34  ;;  %v5643_v40 = vsel %vm2143_vm6, %v5452_v63, %v3472_v57  ;;  %v3467_v33 = vunpack.i.h.bf16 %v3465_v13  ;;  %v3466_v52 = vunpack.i.l.bf16 %v3465_v13  ;;  %3095 = vmatpush.bf16.msra.mxu1 %v2877_v46  ;;  %v2876_v55 = vld [vmem:[%s6015_s1] sm:$0xff]  ;;  %3096 = vmatpush.bf16.msra.mxu2 %v2877_v46 }
 0x148   : > { %3097 = vmatpush.bf16.msra.mxu3 %v2877_v46  ;;  %v2972_v57 = vunpack.c.l.bf16 %v5646_v31  ;;  %v5672_v34 = vunpack.c.h.bf16 %v5646_v31  ;;  %v1682_v36 = vsel %vm617_vm0, %v1679_v9, %v1681_v21 }
 0x149   : > { %v5661_v63 = vsel %vm2143_vm6, %v5254_v8, %v3466_v52  ;;  %v5665_v5 = vsel %vm2143_vm6, %v5258_v47, %v3467_v33  ;;  %3699 = vrot.lane.b32.xlu2 %v3698_v22, %s3771_s23  ;;  %v535_v8 = vunpack.c.l.bf16 %v5649_v7  ;;  %v1874_v47 = vsel %vm810_vm1, %v1871_v42, %v1873_v37 }
 0x14a   : > { %3694 = vrot.lane.b32.xlu1 %v3693_v50, %s3772_s24  ;;  %2371 = vmatpush.bf16.msra.mxu0 %v2876_v55  ;;  %v1698_v22 = vrot.slane %v495_v58, 1  ;;  %v1680_v50 = vsel %vm617_vm0, %v1678_v43, %v1679_v9  ;;  %v3708_v37 = vpack.i.bf16 %v1874_v47, %v1872_v19  ;;  %v1713_v33 = vrot.slane %v2972_v57, 1  ;;  %v2844_v19 = vld [vmem:[%s3808_s17 + $0x9c] sm:$0xe] }
 0x14b   : > { %3098 = vmatpush.bf16.msra.mxu1 %v2876_v55  ;;  %3099 = vmatpush.bf16.msra.mxu2 %v2876_v55  ;;  %v5680_v46 = vpop.permute.xlu2 %3534  ;;  %v1714_v52 = vrot.slane %v5672_v34, 1  ;;  %v1716_v31 = vrot.slane %v535_v8, 1  ;;  %v1699_v43 = vrot.slane %v5651_v4, 1  ;;  %v1701_v58 = vrot.slane %v532_v16, 1 }
 0x14c   : > { %v3485_v2 = vpop.permute.xlu1 %3484  ;;  %3100 = vmatpush.bf16.msra.mxu3 %v2876_v55  ;;  %v3703_v55 = vpack.i.bf16 %v1682_v36, %v1680_v50  ;;  %v2815_v50 = vld [vmem:[%s3808_s17 + $0xcc] sm:$0xff]   ;;  %v564_v36 = vunpack.c.l.bf16 %v2844_v19  ;;  %v3718_v19 = vpack.i.bf16 %v5672_v34, %v2972_v57 }
 0x14d   : > { %3689 = vrot.lane.b32.xlu0 %v3688_v25, %s3772_s24  ;;  %v3487_v51 = vunpack.i.h.bf16 %v3485_v2  ;;  %v3486_v13 = vunpack.i.l.bf16 %v3485_v2  ;;  %v1715_v9 = vsel %vm617_vm0, %v1713_v33, %v1714_v52  ;;  %v1717_v21 = vsel %vm617_vm0, %v1714_v52, %v1716_v31 }
 0x14e   : > { %v5684_v42 = vpop.permute.xlu0 %3479  ;;  %v1700_v47 = vsel %vm617_vm0, %v1698_v22, %v1699_v43  ;;  %v1906_v52 = vrot.slane %v5672_v34, 2  ;;  %v1908_v31 = vrot.slane %v535_v8, 2  ;;  %v1891_v8 = vrot.slane %v5651_v4, 2 }
 0x14f   : > { %v5689_v7 = vsel %vm2143_vm6, %v5486_v24, %v3486_v13  ;;  %v5693_v25 = vsel %vm2143_vm6, %v5490_v41, %v3487_v51  ;;  %v567_v24 = vunpack.c.l.bf16 %v2847_v27  ;;  %v1702_v41 = vsel %vm617_vm0, %v1699_v43, %v1701_v58 }
 0x150   : > { %v3723_v33 = vpack.i.bf16 %v1702_v41, %v1700_v47  ;;  %v504_v47 = vunpack.c.h.bf16 %v2815_v50  ;;  %v1909_v4 = vsel %vm810_vm1, %v1906_v52, %v1908_v31 }
 0x151   : > { %3714 = vrot.lane.b32.xlu2 %v3713_v32, %s3771_s23  ;;  %v3728_v32 = vpack.i.bf16 %v1717_v21, %v1715_v9  ;;  %v1905_v18 = vrot.slane %v567_v24, 2  ;;  %v2832_v9 = vld [vmem:[%s3808_s17 + $0xd4] sm:$0x1]  ;;  %v2848_v21 = vld [vmem:[%s3808_s17 + $0xcc] sm:$0xe]  ;;  %v503_v24 = vunpack.c.l.bf16 %v2815_v50 }
 0x152   : > { %3709 = vrot.lane.b32.xlu1 %v3708_v37, %s3772_s24  ;;  %v568_v57 = vunpack.c.l.bf16 %v2848_v21  ;;  %v3441_v21 = vunpack.i.l.bf16 %v5551_v10 }
 0x153   : > { %v5707_v27 = vpop.permute.xlu2 %3549  ;;  %v1907_v34 = vsel %vm810_vm1, %v1905_v18, %v1906_v52 }
 0x154   : > { %v3500_v2 = vpop.permute.xlu1 %3499 }
 0x155   : > { %3704 = vrot.lane.b32.xlu0 %v3703_v55, %s3773_s25  ;;  %v3502_v51 = vunpack.i.h.bf16 %v3500_v2  ;;  %v3501_v13 = vunpack.i.l.bf16 %v3500_v2  ;;  %v1893_v2 = vrot.slane %v532_v16, 2  ;;  %v3738_v16 = vpack.i.bf16 %v1909_v4, %v1907_v34 }
 0x156   : > { %v3442_v34 = vunpack.i.h.bf16 %v5551_v10 }
 0x157   : > { %v3495_v37 = vpop.permute.xlu0 %3494  ;;  %v5711_v22 = vsel %vm2143_vm6, %v5534_v6, %v3501_v13  ;;  %v5715_v43 = vsel %vm2143_vm6, %v5538_v35, %v3502_v51  ;;  %v1890_v35 = vrot.slane %v564_v36, 2  ;;  %v536_v51 = vunpack.c.l.bf16 %v2832_v9 }
 0x158   : > { %v3497_v58 = vunpack.i.h.bf16 %v3495_v37  ;;  %v3496_v55 = vunpack.i.l.bf16 %v3495_v37  ;;  %v3743_v13 = vpack.i.bf16 %v504_v47, %v503_v24 }
 0x159   : > { %3729 = vrot.lane.b32.xlu2 %v3728_v32, %s3773_s25  ;;  %v1894_v32 = vsel %vm810_vm1, %v1891_v8, %v1893_v2 }
 0x15a   : > { %v5723_v41 = vsel %vm2143_vm6, %v5335_v30, %v3496_v55  ;;  %v5727_v6 = vsel %vm2143_vm6, %v5339_v0, %v3497_v58  ;;  %3724 = vrot.lane.b32.xlu1 %v3723_v33, %s3773_s25  ;;  %v1892_v0 = vsel %vm810_vm1, %v1890_v35, %v1891_v8  ;;  %v1910_v58 = vrot.slane %v568_v57, 2 }
 0x15b   : > { %v1911_v33 = vrot.slane %v504_v47, 2  ;;  %v1913_v55 = vrot.slane %v536_v51, 2  ;;  %v3733_v35 = vpack.i.bf16 %v1894_v32, %v1892_v0  ;;  %v5745_v8 = vpop.permute.xlu2 %3564  ;;  %v1721_v57 = vrot.slane %v536_v51, 1 }
 0x15c   : > { %v3515_v30 = vpop.permute.xlu1 %3514  ;;  %v2145_v32 = vsel %vm2143_vm6, %v5370_v56, %v3442_v34 }
 0x15d   : > { %3719 = vrot.lane.b32.xlu0 %v3718_v19, %s3771_s23  ;;  %v3517_v50 = vunpack.i.h.bf16 %v3515_v30  ;;  %v3516_v37 = vunpack.i.l.bf16 %v3515_v30  ;;  %v1718_v19 = vrot.slane %v503_v24, 1  ;;  %v1912_v24 = vsel %vm810_vm1, %v1910_v58, %v1911_v33 }
 0x15e   : > { %v1914_v4 = vsel %vm810_vm1, %v1911_v33, %v1913_v55  ;;  %v3522_v30 = vunpack.i.h.bf16 %v5624_v1 }
 0x15f   : > { %v3510_v36 = vpop.permute.xlu0 %3509  ;;  %v5738_v18 = vsel %vm2143_vm6, %v5571_v17, %v3516_v37  ;;  %v5742_v52 = vsel %vm2143_vm6, %v5575_v39, %v3517_v50  ;;  %v1719_v39 = vrot.slane %v504_v47, 1  ;;  %v3753_v0 = vpack.i.bf16 %v1914_v4, %v1912_v24 }
 0x160   : > { %v3512_v31 = vunpack.i.h.bf16 %v3510_v36  ;;  %v3511_v9 = vunpack.i.l.bf16 %v3510_v36  ;;  %v3447_v4 = vunpack.i.h.bf16 %v5416_v15 }
 0x161   : > { %3744 = vrot.lane.b32.xlu2 %v3743_v13, %s3771_s23  ;;  %v2144_v13 = vsel %vm2143_vm6, %v5366_v60, %v3441_v21  ;;  %v1720_v47 = vsel %vm617_vm0, %v1718_v19, %v1719_v39  ;;  %v1722_v51 = vsel %vm617_vm0, %v1719_v39, %v1721_v57  ;;  %v2178_v60 = vsel %vm2176_vm8, %v2145_v32, %v3522_v30 }
 0x162   : > { %v5749_v2 = vsel %vm2143_vm6, %v5387_v45, %v3511_v9  ;;  %v5753_v17 = vsel %vm2143_vm6, %v5391_v14, %v3512_v31  ;;  %3739 = vrot.lane.b32.xlu1 %v3738_v16, %s3772_s24  ;;  %v3521_v45 = vunpack.i.l.bf16 %v5624_v1  ;;  %v3748_v58 = vpack.i.bf16 %v1722_v51, %v1720_v47 }
 0x163   : > { %v5776_v56 = vpop.permute.xlu2 %3579  ;;  %v3461_v39 = vunpack.i.l.bf16 %v5459_v3  ;;  %v3446_v30 = vunpack.i.l.bf16 %v5416_v15  ;;  %v3536_v47 = vunpack.i.l.bf16 %v5680_v46  ;;  %v3551_v51 = vunpack.i.l.bf16 %v5707_v27 }
 0x164   : > { %v3530_v14 = vpop.permute.xlu1 %3529  ;;  %v2177_v16 = vsel %vm2176_vm8, %v2144_v13, %v3521_v45  ;;  %v3537_v13 = vunpack.i.h.bf16 %v5680_v46 }
 0x165   : > { %3734 = vrot.lane.b32.xlu0 %v3733_v35, %s3772_s24  ;;  %v3532_v10 = vunpack.i.h.bf16 %v3530_v14  ;;  %v3531_v50 = vunpack.i.l.bf16 %v3530_v14  ;;  %v3462_v35 = vunpack.i.h.bf16 %v5459_v3  ;;  %v2152_v45 = vsel %vm2143_vm6, %v5395_v54, %v3461_v39 }
 0x166   : > { %v3552_v3 = vunpack.i.h.bf16 %v5707_v27  ;;  %v2146_v54 = vsel %vm2143_vm6, %v5352_v61, %v3446_v30 }
 0x167   : > { %v3525_v37 = vpop.permute.xlu0 %3524  ;;  %v2153_v14 = vsel %vm2143_vm6, %v5399_v62, %v3462_v35  ;;  %v2147_v62 = vsel %vm2143_vm6, %v5356_v49, %v3447_v4  ;;  %v3566_v4 = vunpack.i.l.bf16 %v5745_v8 }
 0x168   : > { %v3527_v1 = vunpack.i.h.bf16 %v3525_v37  ;;  %v3526_v36 = vunpack.i.l.bf16 %v3525_v37  ;;  %v2180_v27 = vsel %vm2176_vm8, %v2147_v62, %v3537_v13 }
 0x16a   : > { %v2210_v33 = vsel %vm2209_vm9, %v2177_v16, %v3526_v36  ;;  %v2211_v55 = vsel %vm2209_vm9, %v2178_v60, %v3527_v1  ;;  %3754 = vrot.lane.b32.xlu1 %v3753_v0, %s3772_s24  ;;  %v2179_v36 = vsel %vm2176_vm8, %v2146_v54, %v3536_v47 }
 0x16b   : > { %v2243_v31 = vsel %vm2242_vm10, %v2210_v33, %v3531_v50  ;;  %v2244_v9 = vsel %vm2242_vm10, %v2211_v55, %v3532_v10  ;;  %v5798_v32 = vpop.permute.xlu2 %3594 }
 0x16c   : > { %v2275_v21 = vpack.c.bf16 %v2244_v9, %v2243_v31  ;;  %v3545_v19 = vpop.permute.xlu1 %3544 }
 0x16d   : > { %3749 = vrot.lane.b32.xlu0 %v3748_v58, %s3773_s25  ;;  %v3547_v37 = vunpack.i.h.bf16 %v3545_v19  ;;  %v3546_v15 = vunpack.i.l.bf16 %v3545_v19 }
 0x16e   : > { %2857 = vmatmul.msk.bf16.vlgmr.msra.gmra.mxu0 %vm2311_vm11, %v2275_v21 }
 0x16f   : > { %v3540_v57 = vpop.permute.xlu0 %3539  ;;  %v2212_v49 = vsel %vm2209_vm9, %v2179_v36, %v3546_v15  ;;  %v2213_v9 = vsel %vm2209_vm9, %v2180_v27, %v3547_v37  ;;  %v3582_v27 = vunpack.i.h.bf16 %v5776_v56 }
 0x170   : > { %v3542_v34 = vunpack.i.h.bf16 %v3540_v57  ;;  %v3541_v24 = vunpack.i.l.bf16 %v3540_v57  ;;  %v3482_v57 = vunpack.i.h.bf16 %v5684_v42 }
 0x172   : > { %v2185_v10 = vsel %vm2176_vm8, %v2152_v45, %v3541_v24  ;;  %v2186_v50 = vsel %vm2176_vm8, %v2153_v14, %v3542_v34  ;;  %v3481_v34 = vunpack.i.l.bf16 %v5684_v42  ;;  %v3567_v24 = vunpack.i.h.bf16 %v5745_v8 }
 0x173   : > { %v2218_v60 = vsel %vm2209_vm9, %v2185_v10, %v3551_v51  ;;  %v2219_v58 = vsel %vm2209_vm9, %v2186_v50, %v3552_v3  ;;  %v2161_v3 = vsel %vm2143_vm6, %v5300_v59, %v3482_v57  ;;  %v5820_v51 = vpop.permute.xlu2 %3609 }
 0x174   : > { %v3560_v0 = vpop.permute.xlu1 %3559  ;;  %v2160_v47 = vsel %vm2143_vm6, %v5296_v44, %v3481_v34  ;;  %v2194_v8 = vsel %vm2176_vm8, %v2161_v3, %v3567_v24 }
 0x175   : > { %v3562_v46 = vunpack.i.h.bf16 %v3560_v0  ;;  %v3561_v1 = vunpack.i.l.bf16 %v3560_v0  ;;  %v2193_v50 = vsel %vm2176_vm8, %v2160_v47, %v3566_v4 }
 0x177   : > { %v3555_v16 = vpop.permute.xlu0 %3554  ;;  %v2251_v61 = vsel %vm2242_vm10, %v2218_v60, %v3561_v1  ;;  %v2252_v31 = vsel %vm2242_vm10, %v2219_v58, %v3562_v46  ;;  %v3597_v60 = vunpack.i.h.bf16 %v5798_v32  ;;  %v3596_v58 = vunpack.i.l.bf16 %v5798_v32 }
 0x178   : > { %v3557_v33 = vunpack.i.h.bf16 %v3555_v16  ;;  %v3556_v55 = vunpack.i.l.bf16 %v3555_v16  ;;  %v2279_v21 = vpack.c.bf16 %v2252_v31, %v2251_v61  ;;  %v3581_v16 = vunpack.i.l.bf16 %v5776_v56 }
 0x179   : > { %v2182_v56 = vsel %vm2176_vm8, %v5618_v38, %v3582_v27 }
 0x17a   : > { %v2245_v19 = vsel %vm2242_vm10, %v2212_v49, %v3556_v55  ;;  %v2246_v35 = vsel %vm2242_vm10, %v2213_v9, %v3557_v33  ;;  %2861 = vmatmul.msk.bf16.vlgmr.msra.gmra.mxu1 %vm2311_vm11, %v2279_v21 }
 0x17b   : > { %v2276_v39 = vpack.c.bf16 %v2246_v35, %v2245_v19  ;;  %v3625_v36 = vpop.permute.xlu2 %3624  ;;  %v2181_v19 = vsel %vm2176_vm8, %v5614_v26, %v3581_v16 }
 0x17c   : > { %v3575_v30 = vpop.permute.xlu1 %3574 }
 0x17d   : > { %v3577_v45 = vunpack.i.h.bf16 %v3575_v30  ;;  %v3576_v14 = vunpack.i.l.bf16 %v3575_v30 }
 0x17e   : > { %2858 = vmatmul.msk.bf16.gmra.mxu0 %vm2311_vm11, %v2276_v39 }
 0x17f   : > { %v3570_v13 = vpop.permute.xlu0 %3569 }
 0x180   : > { %v3572_v10 = vunpack.i.h.bf16 %v3570_v13  ;;  %v3571_v42 = vunpack.i.l.bf16 %v3570_v13 }
 0x182   : > { %v2226_v37 = vsel %vm2209_vm9, %v2193_v50, %v3571_v42  ;;  %v2227_v15 = vsel %vm2209_vm9, %v2194_v8, %v3572_v10  ;;  %v3612_v42 = vunpack.i.h.bf16 %v5820_v51  ;;  %v3611_v50 = vunpack.i.l.bf16 %v5820_v51 }
 0x183   : > { %v2259_v0 = vsel %vm2242_vm10, %v2226_v37, %v3576_v14  ;;  %v2260_v54 = vsel %vm2242_vm10, %v2227_v15, %v3577_v45  ;;  %v3640_v14 = vpop.permute.xlu2 %3639  ;;  %v3627_v8 = vunpack.i.h.bf16 %v3625_v36  ;;  %v3626_v37 = vunpack.i.l.bf16 %v3625_v36 }
 0x184   : > { %v2283_v44 = vpack.c.bf16 %v2260_v54, %v2259_v0  ;;  %v3590_v62 = vpop.permute.xlu1 %3589  ;;  %v2195_v27 = vsel %vm2176_vm8, %v5689_v7, %v3611_v50  ;;  %v2196_v51 = vsel %vm2176_vm8, %v5693_v25, %v3612_v42 }
 0x185   : > { %v3592_v61 = vunpack.i.h.bf16 %v3590_v62  ;;  %v3591_v31 = vunpack.i.l.bf16 %v3590_v62 }
 0x186   : > { %2865 = vmatmul.msk.bf16.vlgmr.msra.gmra.mxu2 %vm2311_vm11, %v2283_v44 }
 0x187   : > { %v3585_v59 = vpop.permute.xlu0 %3584  ;;  %v2214_v24 = vsel %vm2209_vm9, %v2181_v19, %v3591_v31  ;;  %v2215_v4 = vsel %vm2209_vm9, %v2182_v56, %v3592_v61 }
 0x188   : > { %v3587_v46 = vunpack.i.h.bf16 %v3585_v59  ;;  %v3586_v1 = vunpack.i.l.bf16 %v3585_v59 }
 0x18a   : > { %v2187_v33 = vsel %vm2176_vm8, %v5661_v63, %v3586_v1  ;;  %v2188_v55 = vsel %vm2176_vm8, %v5665_v5, %v3587_v46 }
 0x18b   : > { %v2220_v32 = vsel %vm2209_vm9, %v2187_v33, %v3596_v58  ;;  %v2221_v39 = vsel %vm2209_vm9, %v2188_v55, %v3597_v60  ;;  %v3655_v59 = vpop.permute.xlu2 %3654 }
 0x18c   : > { %v3605_v49 = vpop.permute.xlu1 %3604 }
 0x18d   : > { %v3607_v9 = vunpack.i.h.bf16 %v3605_v49  ;;  %v3606_v21 = vunpack.i.l.bf16 %v3605_v49 }
 0x18f   : > { %v3600_v35 = vpop.permute.xlu0 %3599  ;;  %v2253_v5 = vsel %vm2242_vm10, %v2220_v32, %v3606_v21  ;;  %v2254_v34 = vsel %vm2242_vm10, %v2221_v39, %v3607_v9  ;;  %v3642_v32 = vunpack.i.h.bf16 %v3640_v14  ;;  %v3641_v39 = vunpack.i.l.bf16 %v3640_v14 }
 0x190   : > { %v3602_v63 = vunpack.i.h.bf16 %v3600_v35  ;;  %v3601_v57 = vunpack.i.l.bf16 %v3600_v35  ;;  %v2280_v30 = vpack.c.bf16 %v2254_v34, %v2253_v5 }
 0x192   : > { %v2247_v26 = vsel %vm2242_vm10, %v2214_v24, %v3601_v57  ;;  %v2248_v38 = vsel %vm2242_vm10, %v2215_v4, %v3602_v63  ;;  %2862 = vmatmul.msk.bf16.gmra.mxu1 %vm2311_vm11, %v2280_v30  ;;  %v3657_v63 = vunpack.i.h.bf16 %v3655_v59  ;;  %v3656_v57 = vunpack.i.l.bf16 %v3655_v59 }
 0x193   : > { %v2277_v45 = vpack.c.bf16 %v2248_v38, %v2247_v26  ;;  %v3670_v19 = vpop.permute.xlu2 %3669 }
 0x194   : > { %v3620_v13 = vpop.permute.xlu1 %3619 }
 0x195   : > { %2859 = vmatmul.msk.bf16.gmra.mxu0 %vm2311_vm11, %v2277_v45  ;;  %v3622_v54 = vunpack.i.h.bf16 %v3620_v13  ;;  %v3621_v44 = vunpack.i.l.bf16 %v3620_v13  ;;  %v2183_v45 = vsel %vm2176_vm8, %v5600_v48, %v3641_v39  ;;  %v2184_v13 = vsel %vm2176_vm8, %v5604_v23, %v3642_v32 }
 0x197   : > { %v3615_v47 = vpop.permute.xlu0 %3614  ;;  %v2228_v55 = vsel %vm2209_vm9, %v2195_v27, %v3621_v44  ;;  %v2229_v61 = vsel %vm2209_vm9, %v2196_v51, %v3622_v54 }
 0x198   : > { %v3617_v3 = vunpack.i.h.bf16 %v3615_v47  ;;  %v3616_v10 = vunpack.i.l.bf16 %v3615_v47 }
 0x19a   : > { %v2201_v15 = vsel %vm2176_vm8, %v5711_v22, %v3616_v10  ;;  %v2202_v0 = vsel %vm2176_vm8, %v5715_v43, %v3617_v3 }
 0x19b   : > { %v2234_v36 = vsel %vm2209_vm9, %v2201_v15, %v3626_v37  ;;  %v2235_v22 = vsel %vm2209_vm9, %v2202_v0, %v3627_v8  ;;  %v3685_v48 = vpop.permute.xlu2 %3684 }
 0x19c   : > { %v3635_v62 = vpop.permute.xlu1 %3634  ;;  %v3687_v27 = vunpack.i.h.bf16 %v3685_v48  ;;  %v3686_v51 = vunpack.i.l.bf16 %v3685_v48 }
 0x19d   : > { %v3637_v46 = vunpack.i.h.bf16 %v3635_v62  ;;  %v3636_v1 = vunpack.i.l.bf16 %v3635_v62 }
 0x19f   : > { %v3630_v16 = vpop.permute.xlu0 %3629  ;;  %v2267_v43 = vsel %vm2242_vm10, %v2234_v36, %v3636_v1  ;;  %v2268_v33 = vsel %vm2242_vm10, %v2235_v22, %v3637_v46  ;;  %v3672_v46 = vunpack.i.h.bf16 %v3670_v19  ;;  %v3671_v1 = vunpack.i.l.bf16 %v3670_v19 }
 0x1a0   : > { %v3632_v60 = vunpack.i.h.bf16 %v3630_v16  ;;  %v3631_v58 = vunpack.i.l.bf16 %v3630_v16  ;;  %v2287_v31 = vpack.c.bf16 %v2268_v33, %v2267_v43 }
 0x1a2   : > { %v2261_v7 = vsel %vm2242_vm10, %v2228_v55, %v3631_v58  ;;  %v2262_v25 = vsel %vm2242_vm10, %v2229_v61, %v3632_v60  ;;  %2869 = vmatmul.msk.bf16.vlgmr.msra.gmra.mxu3 %vm2311_vm11, %v2287_v31  ;;  %v2197_v61 = vsel %vm2176_vm8, %v5558_v53, %v3671_v1  ;;  %v2198_v31 = vsel %vm2176_vm8, %v5562_v28, %v3672_v46 }
 0x1a3   : > { %v2284_v49 = vpack.c.bf16 %v2262_v25, %v2261_v7  ;;  %v3700_v16 = vpop.permute.xlu2 %3699 }
 0x1a4   : > { %v3650_v9 = vpop.permute.xlu1 %3649  ;;  %v3702_v39 = vunpack.i.h.bf16 %v3700_v16 }
 0x1a5   : > { %2866 = vmatmul.msk.bf16.gmra.mxu2 %vm2311_vm11, %v2284_v49  ;;  %v3652_v24 = vunpack.i.h.bf16 %v3650_v9  ;;  %v3651_v4 = vunpack.i.l.bf16 %v3650_v9 }
 0x1a7   : > { %v3645_v21 = vpop.permute.xlu0 %3644  ;;  %v2216_v50 = vsel %vm2209_vm9, %v2183_v45, %v3651_v4  ;;  %v2217_v8 = vsel %vm2209_vm9, %v2184_v13, %v3652_v24  ;;  %v6257_v45 = vld [vmem:[#allocation28_spill] sm:$0xff] }
 0x1a8   : > { %v3647_v56 = vunpack.i.h.bf16 %v3645_v21  ;;  %v3646_v35 = vunpack.i.l.bf16 %v3645_v21  ;;  %v2192_v13 = vsel %vm2176_vm8, %v6257_v45, %v3702_v39 }
 0x1aa   : > { %v2189_v5 = vsel %vm2176_vm8, %v5639_v12, %v3646_v35  ;;  %v2190_v34 = vsel %vm2176_vm8, %v5643_v40, %v3647_v56 }
 0x1ab   : > { %v2222_v47 = vsel %vm2209_vm9, %v2189_v5, %v3656_v57  ;;  %v2223_v3 = vsel %vm2209_vm9, %v2190_v34, %v3657_v63  ;;  %v3701_v63 = vunpack.i.l.bf16 %v3700_v16  ;;  %v3715_v5 = vpop.permute.xlu2 %3714 }
 0x1ac   : > { %v3665_v30 = vpop.permute.xlu1 %3664  ;;  %v3716_v48 = vunpack.i.l.bf16 %v3715_v5 }
 0x1ad   : > { %v3667_v26 = vunpack.i.h.bf16 %v3665_v30  ;;  %v3666_v38 = vunpack.i.l.bf16 %v3665_v30 }
 0x1af   : > { %v3660_v14 = vpop.permute.xlu0 %3659  ;;  %v2255_v40 = vsel %vm2242_vm10, %v2222_v47, %v3666_v38  ;;  %v2256_v42 = vsel %vm2242_vm10, %v2223_v3, %v3667_v26  ;;  %v2191_v38 = vsel %vm2176_vm8, %v5509_v29, %v3701_v63  ;;  %v3717_v29 = vunpack.i.h.bf16 %v3715_v5 }
 0x1b0   : > { %v3662_v12 = vunpack.i.h.bf16 %v3660_v14  ;;  %v3661_v10 = vunpack.i.l.bf16 %v3660_v14  ;;  %v2281_v37 = vpack.c.bf16 %v2256_v42, %v2255_v40 }
 0x1b2   : > { %v2249_v15 = vsel %vm2242_vm10, %v2216_v50, %v3661_v10  ;;  %v2250_v23 = vsel %vm2242_vm10, %v2217_v8, %v3662_v12  ;;  %2863 = vmatmul.msk.bf16.gmra.mxu1 %vm2311_vm11, %v2281_v37 }
 0x1b3   : > { %v2278_v0 = vpack.c.bf16 %v2250_v23, %v2249_v15  ;;  %v3730_v50 = vpop.permute.xlu2 %3729 }
 0x1b4   : > { %v3680_v54 = vpop.permute.xlu1 %3679  ;;  %v3732_v15 = vunpack.i.h.bf16 %v3730_v50  ;;  %v3731_v23 = vunpack.i.l.bf16 %v3730_v50 }
 0x1b5   : > { %2860 = vmatmul.msk.bf16.gmra.mxu0 %vm2311_vm11, %v2278_v0  ;;  %v3682_v60 = vunpack.i.h.bf16 %v3680_v54  ;;  %v3681_v58 = vunpack.i.l.bf16 %v3680_v54 }
 0x1b7   : > { %v3675_v44 = vpop.permute.xlu0 %3674  ;;  %v2230_v19 = vsel %vm2209_vm9, %v2197_v61, %v3681_v58  ;;  %v2231_v56 = vsel %vm2209_vm9, %v2198_v31, %v3682_v60 }
 0x1b8   : > { %v3677_v62 = vunpack.i.h.bf16 %v3675_v44  ;;  %v3676_v59 = vunpack.i.l.bf16 %v3675_v44 }
 0x1ba   : > { %v2203_v36 = vsel %vm2176_vm8, %v5592_v11, %v3676_v59  ;;  %v2204_v22 = vsel %vm2176_vm8, %v5596_v20, %v3677_v62 }
 0x1bb   : > { %v2236_v25 = vsel %vm2209_vm9, %v2203_v36, %v3686_v51  ;;  %v2237_v49 = vsel %vm2209_vm9, %v2204_v22, %v3687_v27  ;;  %v2199_v27 = vsel %vm2176_vm8, %v5723_v41, %v3716_v48  ;;  %v2200_v51 = vsel %vm2176_vm8, %v5727_v6, %v3717_v29  ;;  %v3745_v41 = vpop.permute.xlu2 %3744 }
 0x1bc   : > { %v3695_v43 = vpop.permute.xlu1 %3694 }
 0x1bd   : > { %v3697_v33 = vunpack.i.h.bf16 %v3695_v43  ;;  %v3696_v55 = vunpack.i.l.bf16 %v3695_v43 }
 0x1bf   : > { %v3690_v7 = vpop.permute.xlu0 %3689  ;;  %v2269_v20 = vsel %vm2242_vm10, %v2236_v25, %v3696_v55  ;;  %v2270_v21 = vsel %vm2242_vm10, %v2237_v49, %v3697_v33  ;;  %v3746_v25 = vunpack.i.l.bf16 %v3745_v41 }
 0x1c0   : > { %v3692_v11 = vunpack.i.h.bf16 %v3690_v7  ;;  %v3691_v9 = vunpack.i.l.bf16 %v3690_v7  ;;  %v2288_v35 = vpack.c.bf16 %v2270_v21, %v2269_v20  ;;  %v3747_v7 = vunpack.i.h.bf16 %v3745_v41 }
 0x1c2   : > { %v2263_v53 = vsel %vm2242_vm10, %v2230_v19, %v3691_v9  ;;  %v2264_v28 = vsel %vm2242_vm10, %v2231_v56, %v3692_v11  ;;  %2870 = vmatmul.msk.bf16.gmra.mxu3 %vm2311_vm11, %v2288_v35  ;;  %v2207_v56 = vsel %vm2176_vm8, %v5738_v18, %v3746_v25  ;;  %v2208_v35 = vsel %vm2176_vm8, %v5742_v52, %v3747_v7 }
 0x1c3   : > { %v2285_v32 = vpack.c.bf16 %v2264_v28, %v2263_v53 }
 0x1c4   : > { %v3710_v57 = vpop.permute.xlu1 %3709 }
 0x1c5   : > { %2867 = vmatmul.msk.bf16.gmra.mxu2 %vm2311_vm11, %v2285_v32  ;;  %v3712_v34 = vunpack.i.h.bf16 %v3710_v57  ;;  %v3711_v24 = vunpack.i.l.bf16 %v3710_v57 }
 0x1c7   : > { %v3705_v4 = vpop.permute.xlu0 %3704 }
 0x1c8   : > { %v3707_v30 = vunpack.i.h.bf16 %v3705_v4  ;;  %v3706_v26 = vunpack.i.l.bf16 %v3705_v4 }
 0x1ca   : > { %v2224_v14 = vsel %vm2209_vm9, %v2191_v38, %v3706_v26  ;;  %v2225_v47 = vsel %vm2209_vm9, %v2192_v13, %v3707_v30 }
 0x1cb   : > { %v2257_v3 = vsel %vm2242_vm10, %v2224_v14, %v3711_v24  ;;  %v2258_v12 = vsel %vm2242_vm10, %v2225_v47, %v3712_v34 }
 0x1cc   : > { %v2282_v10 = vpack.c.bf16 %v2258_v12, %v2257_v3  ;;  %v3725_v40 = vpop.permute.xlu1 %3724 }
 0x1cd   : > { %v3727_v44 = vunpack.i.h.bf16 %v3725_v40  ;;  %v3726_v62 = vunpack.i.l.bf16 %v3725_v40 }
 0x1ce   : > { %2864 = vmatmul.msk.bf16.gmra.mxu1 %vm2311_vm11, %v2282_v10 }
 0x1cf   : > { %v3720_v42 = vpop.permute.xlu0 %3719  ;;  %v2232_v43 = vsel %vm2209_vm9, %v2199_v27, %v3726_v62  ;;  %v2233_v33 = vsel %vm2209_vm9, %v2200_v51, %v3727_v44 }
 0x1d0   : > { %v3722_v8 = vunpack.i.h.bf16 %v3720_v42  ;;  %v3721_v37 = vunpack.i.l.bf16 %v3720_v42 }
 0x1d2   : > { %v2205_v0 = vsel %vm2176_vm8, %v5749_v2, %v3721_v37  ;;  %v2206_v54 = vsel %vm2176_vm8, %v5753_v17, %v3722_v8 }
 0x1d3   : > { %v2238_v36 = vsel %vm2209_vm9, %v2205_v0, %v3731_v23  ;;  %v2239_v22 = vsel %vm2209_vm9, %v2206_v54, %v3732_v15 }
 0x1d4   : > { %v3740_v59 = vpop.permute.xlu1 %3739 }
 0x1d5   : > { %v3742_v46 = vunpack.i.h.bf16 %v3740_v59  ;;  %v3741_v1 = vunpack.i.l.bf16 %v3740_v59 }
 0x1d7   : > { %v3735_v16 = vpop.permute.xlu0 %3734  ;;  %v2271_v17 = vsel %vm2242_vm10, %v2238_v36, %v3741_v1  ;;  %v2272_v58 = vsel %vm2242_vm10, %v2239_v22, %v3742_v46 }
 0x1d8   : > { %v3737_v2 = vunpack.i.h.bf16 %v3735_v16  ;;  %v3736_v60 = vunpack.i.l.bf16 %v3735_v16  ;;  %v2289_v55 = vpack.c.bf16 %v2272_v58, %v2271_v17 }
 0x1da   : > { %v2265_v61 = vsel %vm2242_vm10, %v2232_v43, %v3736_v60  ;;  %v2266_v6 = vsel %vm2242_vm10, %v2233_v33, %v3737_v2  ;;  %2871 = vmatmul.msk.bf16.gmra.mxu3 %vm2311_vm11, %v2289_v55 }
 0x1db   : > { %v2286_v31 = vpack.c.bf16 %v2266_v6, %v2265_v61 }
 0x1dc   : > { %v3755_v49 = vpop.permute.xlu1 %3754 }
 0x1dd   : > { %2868 = vmatmul.msk.bf16.gmra.mxu2 %vm2311_vm11, %v2286_v31  ;;  %v3757_v9 = vunpack.i.h.bf16 %v3755_v49  ;;  %v3756_v20 = vunpack.i.l.bf16 %v3755_v49 }
 0x1df   : > { %v3750_v11 = vpop.permute.xlu0 %3749 }
 0x1e0   : > { %v3752_v21 = vunpack.i.h.bf16 %v3750_v11  ;;  %v3751_v19 = vunpack.i.l.bf16 %v3750_v11 }
 0x1e2   : > { %v2240_v53 = vsel %vm2209_vm9, %v2207_v56, %v3751_v19  ;;  %v2241_v28 = vsel %vm2209_vm9, %v2208_v35, %v3752_v21 }
 0x1e3   : > { %v2273_v32 = vsel %vm2242_vm10, %v2240_v53, %v3756_v20  ;;  %v2274_v39 = vsel %vm2242_vm10, %v2241_v28, %v3757_v9 }
 0x1e4   : > { %v2290_v63 = vpack.c.bf16 %v2274_v39, %v2273_v32 }
 0x1ea   : > { %2872 = vmatmul.msk.bf16.gmra.mxu3 %vm2311_vm11, %v2290_v63 }
 0x1eb   : > { %v2373_v57 = vpop.f32.mrf.mxu0 }
 0x1ec   : > { %v2554_v52 = vmul.f32 %v2373_v57, %v2373_v57 }
 0x1f3   : > { %v2375_v18 = vpop.f32.mrf.mxu0 }
 0x1f4   : > { %v2977_v5 = vpack.c.bf16 %v2375_v18, %v2373_v57  ;;  %v2517_v34 = vadd.f32 %v2375_v18, %v2373_v57  ;;  %v2555_v24 = vmul.f32 %v2375_v18, %v2375_v18 }
 0x1f6   : > { %2978 = vst [vmem:[%s5947_s8] sm:$0xff] %v2977_v5   ;;  %v2586_v4 = vadd.f32 %v2555_v24, %v2554_v52 }
 0x1f7   : > { %v2393_v30 = vpop.f32.mrf.mxu1 }
 0x1f8   : > { %v2562_v49 = vmul.f32 %v2393_v30, %v2393_v30 }
 0x1fb   : > { %v2378_v26 = vpop.f32.mrf.mxu0 }
 0x1fc   : > { %v2518_v38 = vadd.f32 %v2517_v34, %v2378_v26  ;;  %v2556_v45 = vmul.f32 %v2378_v26, %v2378_v26 }
 0x1fe   : > { %v2587_v13 = vadd.f32 %v2586_v4, %v2556_v45 }
 0x1ff   : > { %v2395_v14 = vpop.f32.mrf.mxu1 }
 0x200   : > { %v2997_v47 = vpack.c.bf16 %v2395_v14, %v2393_v30  ;;  %v2563_v20 = vmul.f32 %v2395_v14, %v2395_v14 }
 0x202   : > { %3080 = vst [vmem:[%s5947_s8 + $0x20] sm:$0xff] %v2997_v47  }
 0x203   : > { %v2380_v3 = vpop.f32.mrf.mxu0 }
 0x204   : > { %v2982_v12 = vpack.c.bf16 %v2380_v3, %v2378_v26  ;;  %v2557_v46 = vmul.f32 %v2380_v3, %v2380_v3  ;;  %v2519_v51 = vadd.f32 %v2518_v38, %v2380_v3 }
 0x206   : > { %3077 = vst [vmem:[%s5947_s8 + $0x8] sm:$0xff] %v2982_v12   ;;  %v2588_v36 = vadd.f32 %v2587_v13, %v2557_v46 }
 0x209   : > { %v5952_v10 = vpop.f32.mrf.mxu2 }
 0x20f   : > { %v2398_v40 = vpop.f32.mrf.mxu1 }
 0x210   : > { %v2564_v53 = vmul.f32 %v2398_v40, %v2398_v40 }
 0x211   : > { %v5954_v42 = vpop.f32.mrf.mxu2 }
 0x212   : > { %v3017_v50 = vpack.c.bf16 %v5954_v42, %v5952_v10  ;;  %v2383_v8 = vpop.f32.mrf.mxu0 }
 0x213   : > { %v2558_v16 = vmul.f32 %v2383_v8, %v2383_v8  ;;  %v2520_v22 = vadd.f32 %v2519_v51, %v2383_v8 }
 0x214   : > { %3084 = vst [vmem:[%s5947_s8 + $0x40] sm:$0xff] %v3017_v50  }
 0x215   : > { %v2589_v60 = vadd.f32 %v2588_v36, %v2558_v16 }
 0x217   : > { %v2400_v37 = vpop.f32.mrf.mxu1 }
 0x218   : > { %v3002_v29 = vpack.c.bf16 %v2400_v37, %v2398_v40  ;;  %v2565_v39 = vmul.f32 %v2400_v37, %v2400_v37 }
 0x21a   : > { %v2385_v48 = vpop.f32.mrf.mxu0  ;;  %3081 = vst [vmem:[%s5947_s8 + $0x28] sm:$0xff] %v3002_v29   ;;  %v2570_v29 = vmul.f32 %v5952_v10, %v5952_v10 }
 0x21b   : > { %v2987_v15 = vpack.c.bf16 %v2385_v48, %v2383_v8  ;;  %v2559_v2 = vmul.f32 %v2385_v48, %v2385_v48  ;;  %v2521_v17 = vadd.f32 %v2520_v22, %v2385_v48 }
 0x21d   : > { %3078 = vst [vmem:[%s5947_s8 + $0x10] sm:$0xff] %v2987_v15   ;;  %v2590_v33 = vadd.f32 %v2589_v60, %v2559_v2 }
 0x225   : > { %v5961_v23 = vpop.f32.mrf.mxu3 }
 0x228   : > { %v5963_v0 = vpop.f32.mrf.mxu2 }
 0x22d   : > { %v5965_v54 = vpop.f32.mrf.mxu3 }
 0x22e   : > { %v3037_v44 = vpack.c.bf16 %v5965_v54, %v5961_v23 }
 0x22f   : > { %v2403_v59 = vpop.f32.mrf.mxu1 }
 0x230   : > { %v5969_v62 = vpop.f32.mrf.mxu2  ;;  %3088 = vst [vmem:[%s5947_s8 + $0x60] sm:$0xff] %v3037_v44   ;;  %v2566_v5 = vmul.f32 %v2403_v59, %v2403_v59  ;;  %v2571_v44 = vmul.f32 %v5954_v42, %v5954_v42 }
 0x231   : > { %v3022_v1 = vpack.c.bf16 %v5969_v62, %v5963_v0  ;;  %v2573_v16 = vmul.f32 %v5969_v62, %v5969_v62 }
 0x232   : > { %v2388_v27 = vpop.f32.mrf.mxu0 }
 0x233   : > { %3085 = vst [vmem:[%s5947_s8 + $0x48] sm:$0xff] %v3022_v1   ;;  %v2560_v58 = vmul.f32 %v2388_v27, %v2388_v27  ;;  %v2522_v55 = vadd.f32 %v2521_v17, %v2388_v27  ;;  %v2572_v1 = vmul.f32 %v5963_v0, %v5963_v0 }
 0x235   : > { %v2591_v6 = vadd.f32 %v2590_v33, %v2560_v58 }
 0x237   : > { %v2405_v43 = vpop.f32.mrf.mxu1 }
 0x238   : > { %v3007_v41 = vpack.c.bf16 %v2405_v43, %v2403_v59  ;;  %v2567_v38 = vmul.f32 %v2405_v43, %v2405_v43 }
 0x23a   : > { %v2390_v61 = vpop.f32.mrf.mxu0  ;;  %3082 = vst [vmem:[%s5947_s8 + $0x30] sm:$0xff] %v3007_v41  }
 0x23b   : > { %v2992_v31 = vpack.c.bf16 %v2390_v61, %v2388_v27  ;;  %v2523_v7 = vadd.f32 %v2522_v55, %v2390_v61  ;;  %v2561_v25 = vmul.f32 %v2390_v61, %v2390_v61 }
 0x23d   : > { %3079 = vst [vmem:[%s5947_s8 + $0x18] sm:$0xff] %v2992_v31   ;;  %v2524_v11 = vadd.f32 %v2523_v7, %v2393_v30  ;;  %v2592_v9 = vadd.f32 %v2591_v6, %v2561_v25 }
 0x23f   : > { %v2525_v21 = vadd.f32 %v2524_v11, %v2395_v14  ;;  %v2593_v19 = vadd.f32 %v2592_v9, %v2562_v49  ;;  %v2578_v11 = vmul.f32 %v5961_v23, %v5961_v23 }
 0x241   : > { %v2526_v56 = vadd.f32 %v2525_v21, %v2398_v40  ;;  %v2594_v35 = vadd.f32 %v2593_v19, %v2563_v20  ;;  %v2579_v21 = vmul.f32 %v5965_v54, %v5965_v54 }
 0x243   : > { %v2595_v28 = vadd.f32 %v2594_v35, %v2564_v53  ;;  %v2527_v63 = vadd.f32 %v2526_v56, %v2400_v37 }
 0x245   : > { %v5977_v32 = vpop.f32.mrf.mxu3  ;;  %v2596_v18 = vadd.f32 %v2595_v28, %v2565_v39  ;;  %v2528_v34 = vadd.f32 %v2527_v63, %v2403_v59 }
 0x246   : > { %v2580_v53 = vmul.f32 %v5977_v32, %v5977_v32 }
 0x247   : > { %v2597_v24 = vadd.f32 %v2596_v18, %v2566_v5  ;;  %v2529_v26 = vadd.f32 %v2528_v34, %v2405_v43 }
 0x248   : > { %v2423_v57 = vpop.f32.mrf.mxu2 }
 0x249   : > { %v2598_v47 = vadd.f32 %v2597_v24, %v2567_v38  ;;  %v2574_v60 = vmul.f32 %v2423_v57, %v2423_v57 }
 0x24b   : > { %v2408_v52 = vpop.f32.mrf.mxu1 }
 0x24c   : > { %v2568_v45 = vmul.f32 %v2408_v52, %v2408_v52  ;;  %v2530_v3 = vadd.f32 %v2529_v26, %v2408_v52 }
 0x24d   : > { %v2440_v4 = vpop.f32.mrf.mxu3 }
 0x24e   : > { %v3042_v30 = vpack.c.bf16 %v2440_v4, %v5977_v32  ;;  %v2599_v40 = vadd.f32 %v2598_v47, %v2568_v45  ;;  %v2581_v63 = vmul.f32 %v2440_v4, %v2440_v4 }
 0x250   : > { %v2425_v13 = vpop.f32.mrf.mxu2  ;;  %3089 = vst [vmem:[%s5947_s8 + $0x68] sm:$0xff] %v3042_v30  }
 0x251   : > { %v3027_v14 = vpack.c.bf16 %v2425_v13, %v2423_v57  ;;  %v2575_v43 = vmul.f32 %v2425_v13, %v2425_v13 }
 0x253   : > { %3086 = vst [vmem:[%s5947_s8 + $0x50] sm:$0xff] %v3027_v14   ;;  %v2410_v12 = vpop.f32.mrf.mxu1 }
 0x254   : > { %v3012_v50 = vpack.c.bf16 %v2410_v12, %v2408_v52  ;;  %v2531_v8 = vadd.f32 %v2530_v3, %v2410_v12  ;;  %v2569_v37 = vmul.f32 %v2410_v12, %v2410_v12 }
 0x256   : > { %3083 = vst [vmem:[%s5947_s8 + $0x38] sm:$0xff] %v3012_v50   ;;  %v2532_v48 = vadd.f32 %v2531_v8, %v5952_v10  ;;  %v2600_v15 = vadd.f32 %v2599_v40, %v2569_v37 }
 0x258   : > { %v2533_v59 = vadd.f32 %v2532_v48, %v5954_v42  ;;  %v2601_v46 = vadd.f32 %v2600_v15, %v2570_v29 }
 0x25a   : > { %v2534_v27 = vadd.f32 %v2533_v59, %v5963_v0  ;;  %v2602_v51 = vadd.f32 %v2601_v46, %v2571_v44 }
 0x25c   : > { %v2603_v36 = vadd.f32 %v2602_v51, %v2572_v1  ;;  %v2535_v22 = vadd.f32 %v2534_v27, %v5969_v62 }
 0x25d   : > { %v2443_v2 = vpop.f32.mrf.mxu3 }
 0x25e   : > { %v2604_v10 = vadd.f32 %v2603_v36, %v2573_v16  ;;  %v2536_v17 = vadd.f32 %v2535_v22, %v2423_v57  ;;  %v2582_v52 = vmul.f32 %v2443_v2, %v2443_v2 }
 0x260   : > { %v2428_v58 = vpop.f32.mrf.mxu2  ;;  %v2605_v42 = vadd.f32 %v2604_v10, %v2574_v60  ;;  %v2537_v33 = vadd.f32 %v2536_v17, %v2425_v13 }
 0x261   : > { %v2576_v55 = vmul.f32 %v2428_v58, %v2428_v58 }
 0x262   : > { %v2606_v41 = vadd.f32 %v2605_v42, %v2575_v43  ;;  %v2538_v61 = vadd.f32 %v2537_v33, %v2428_v58 }
 0x264   : > { %v2607_v7 = vadd.f32 %v2606_v41, %v2576_v55 }
 0x265   : > { %v2445_v0 = vpop.f32.mrf.mxu3 }
 0x266   : > { %v3047_v6 = vpack.c.bf16 %v2445_v0, %v2443_v2  ;;  %v2583_v24 = vmul.f32 %v2445_v0, %v2445_v0 }
 0x268   : > { %v2430_v31 = vpop.f32.mrf.mxu2  ;;  %3090 = vst [vmem:[%s5947_s8 + $0x70] sm:$0xff] %v3047_v6  }
 0x269   : > { %v3032_v25 = vpack.c.bf16 %v2430_v31, %v2428_v58  ;;  %v2539_v49 = vadd.f32 %v2538_v61, %v2430_v31  ;;  %v2577_v62 = vmul.f32 %v2430_v31, %v2430_v31 }
 0x26b   : > { %3087 = vst [vmem:[%s5947_s8 + $0x58] sm:$0xff] %v3032_v25   ;;  %v2540_v9 = vadd.f32 %v2539_v49, %v5961_v23  ;;  %v2608_v20 = vadd.f32 %v2607_v7, %v2577_v62 }
 0x26d   : > { %v2541_v19 = vadd.f32 %v2540_v9, %v5965_v54  ;;  %v2609_v56 = vadd.f32 %v2608_v20, %v2578_v11  ;;  %v2448_v35 = vpop.f32.mrf.mxu3 }
 0x26e   : > { %v2584_v26 = vmul.f32 %v2448_v35, %v2448_v35 }
 0x26f   : > { %v2542_v28 = vadd.f32 %v2541_v19, %v5977_v32  ;;  %v2610_v39 = vadd.f32 %v2609_v56, %v2579_v21 }
 0x271   : > { %v2611_v57 = vadd.f32 %v2610_v39, %v2580_v53  ;;  %v2543_v18 = vadd.f32 %v2542_v28, %v2440_v4 }
 0x273   : > { %v2544_v23 = vadd.f32 %v2543_v18, %v2443_v2  ;;  %v2612_v5 = vadd.f32 %v2611_v57, %v2581_v63 }
 0x275   : > { %v2545_v34 = vadd.f32 %v2544_v23, %v2445_v0  ;;  %v2613_v30 = vadd.f32 %v2612_v5, %v2582_v52  ;;  %v2450_v54 = vpop.f32.mrf.mxu3 }
 0x276   : > { %v3052_v13 = vpack.c.bf16 %v2450_v54, %v2448_v35  ;;  %v2585_v14 = vmul.f32 %v2450_v54, %v2450_v54 }
 0x277   : > { %v2614_v38 = vadd.f32 %v2613_v30, %v2583_v24  ;;  %v2546_v45 = vadd.f32 %v2545_v34, %v2448_v35 }
 0x278   : > { %3091 = vst [vmem:[%s5947_s8 + $0x78] sm:$0xff] %v3052_v13  }
 0x279   : > { %v2615_v47 = vadd.f32 %v2614_v38, %v2584_v26  ;;  %v2547_v32 = vadd.f32 %v2546_v45, %v2450_v54 }
 0x27b   : > { %v2548_v3 = vrot.slane %v2547_v32, 4  ;;  %v2616_v12 = vadd.f32 %v2615_v47, %v2585_v14 }
 0x27d   : > { %v2549_v40 = vadd.f32 %v2548_v3, %v2547_v32  ;;  %v2617_v4 = vrot.slane %v2616_v12, 4 }
 0x27f   : > { %v2550_v50 = vrot.slane %v2549_v40, 2  ;;  %v2618_v8 = vadd.f32 %v2617_v4, %v2616_v12 }
 0x281   : > { %v2551_v37 = vadd.f32 %v2550_v50, %v2549_v40  ;;  %v2619_v29 = vrot.slane %v2618_v8, 2 }
 0x283   : > { %v2552_v48 = vrot.slane %v2551_v37, 1  ;;  %v2620_v15 = vadd.f32 %v2619_v29, %v2618_v8 }
 0x285   : > { %v2621_v44 = vrot.slane %v2620_v15, 1  ;;  %v2553_v59 = vadd.f32 %v2552_v48, %v2551_v37 }
 0x287   : > { %v2622_v46 = vadd.f32 %v2621_v44, %v2620_v15 }
 0x289   : > { %v2624_v1 = vsel %vm2623_vm12, %v2553_v59, %v2622_v46 }
 0x28a   : > { %2625 = vst [vmem:[%s181_s14] sm:$0x3] %v2624_v1 }
 0x28b PF: > { %s14_s12 = sadd.s32 1, %s3764_s12  }
 0x28c   : > { %p11_p4 = scmp.ge.s32.totalorder %s14_s12, 4  }
 0x28e   :  { %13 = sbr.rel (!%p11_p4) target bundleno = 1 (0x1), region = 72 }

</bundles_post_ra>
